<compile_context>
chip_gen: v7x
topology: tpu7x:2x2x1
jax: 0.10.0
libtpu: 0.0.40
codegen_flags: <defaults>
</compile_context>

<pallas_src>
import functools

import jax
import jax.numpy as jnp
from jax.experimental import pallas as pl
from jax.experimental.pallas import tpu as pltpu

BN_EPS = 1e-5
LEAKY_SLOPE = 0.01                       # nn.LeakyReLU() default
LANE = 128                               # TPU lane width
MAX_TILE_L = 4096                        # spatial tile (multiple of 128)
VMEM_LIMIT_BYTES = 32 * 1024 * 1024      # explicit budget; worst tile stays far below v7x's 64 MiB
# Streamed-intermediate / matmul-operand dtype.  f32 keeps exact PyTorch numerics; setting
# STORE_DTYPE = jnp.bfloat16 halves HBM bytes for every streamed tensor (accumulation, BN
# statistics and the (C,1) scalars stay f32 either way).
STORE_DTYPE = jnp.float32
MM_DTYPE = jnp.float32


# ---------------------------------------------------------------------------
# small Python helpers
# ---------------------------------------------------------------------------
def _round_up(x, m):
    return (x + m - 1) // m * m


def _cdiv(a, b):
    return -(-a // b)


def _tiles(valid):
    lp = _round_up(max(valid, 1), LANE)
    tl = min(MAX_TILE_L, lp)
    return _cdiv(lp, tl), tl             # (num_tiles, tile_len)


def _ensure_cols(x, cols):
    """Zero-pad the last axis up to `cols` (no-op if already wide enough)."""
    if x.shape[-1] >= cols:
        return x
    return jnp.pad(x, [(0, 0)] * (x.ndim - 1) + [(0, cols - x.shape[-1])])


def _x_spec(c, tl):
    # (1, C, TILE_L) block of an (N, C, total) array.
    return pl.BlockSpec((1, c, tl), lambda n, j: (n, 0, j))


def _full_spec(shape):
    nd = len(shape)
    return pl.BlockSpec(shape, lambda n, j, _nd=nd: (0,) * _nd)


def _cparams(parallel):
    # TODO(synk): on v7x the stats passes could emit per-batch partial sums so the batch
    # axis can be "parallel" across the two TensorCores; kept "arbitrary" here because the
    # resident (C,1) accumulators require sequential grid execution.
    sem = ("parallel", "parallel") if parallel else ("arbitrary", "arbitrary")
    return pltpu.CompilerParams(dimension_semantics=sem,
                                vmem_limit_bytes=VMEM_LIMIT_BYTES)


# ---------------------------------------------------------------------------
# helpers traced inside kernels
# ---------------------------------------------------------------------------
def _nan_to_num(x):
    # torch.nan_to_num: NaN->0, +inf->f32 max, -inf->f32 min (one clip + one isnan-select).
    fin = jnp.finfo(jnp.float32)
    x = jnp.clip(x, fin.min, fin.max)
    return jnp.where(jnp.isnan(x), jnp.zeros_like(x), x)


def _activation(x, kind):
    if kind == "leaky_relu":
        return jnp.where(x >= 0, x, LEAKY_SLOPE * x)
    if kind == "gelu":                    # exact (erf) GELU = nn.GELU default
        return 0.5 * x * (1.0 + jax.lax.erf(x * 0.7071067811865476))
    return jnp.tanh(x)


def _bn(v, sum_ref, ssq_ref, gamma_ref, beta_ref, count):
    # Training-mode BatchNorm1d from precomputed per-channel sum / sum-of-squares.
    # NOTE: E[x^2]-E[x]^2 can cancel in f32 for large-mean inputs (known limitation).
    inv_n = 1.0 / count
    mean = sum_ref[...] * inv_n
    var = jnp.maximum(ssq_ref[...] * inv_n - mean * mean, 0.0)
    scale = gamma_ref[...] * jax.lax.rsqrt(var + BN_EPS)
    return _nan_to_num((v - mean) * scale + beta_ref[...])


def _accum_stats(sum_ref, ssq_ref, v, j, tile_l, valid, total, rsl=slice(None)):
    """Per-channel sum / sum^2; the iota mask only runs on tiles that touch padding."""
    if valid >= total:
        sum_ref[rsl, :] += jnp.sum(v, axis=1, keepdims=True)
        ssq_ref[rsl, :] += jnp.sum(v * v, axis=1, keepdims=True)
        return
    fm = valid // tile_l                  # first tile index containing padding

    @pl.when(j < fm)
    def _():
        sum_ref[rsl, :] += jnp.sum(v, axis=1, keepdims=True)
        ssq_ref[rsl, :] += jnp.sum(v * v, axis=1, keepdims=True)

    @pl.when(j >= fm)
    def _():
        lane = j * tile_l + jax.lax.broadcasted_iota(jnp.int32, v.shape, 1)
        vm = jnp.where(lane < valid, v, 0.0)
        sum_ref[rsl, :] += jnp.sum(vm, axis=1, keepdims=True)
        ssq_ref[rsl, :] += jnp.sum(vm * vm, axis=1, keepdims=True)


def _store_masked(o_ref, y, j, tile_l, valid, total):
    """Store y, zeroing lanes >= valid so downstream kernels can rely on zero padding."""
    if valid >= total:
        o_ref[0] = y.astype(o_ref.dtype)
        return
    fm = valid // tile_l

    @pl.when(j < fm)
    def _():
        o_ref[0] = y.astype(o_ref.dtype)

    @pl.when(j >= fm)
    def _():
        lane = j * tile_l + jax.lax.broadcasted_iota(jnp.int32, y.shape, 1)
        o_ref[0] = jnp.where(lane < valid, y, 0.0).astype(o_ref.dtype)


# ---------------------------------------------------------------------------
# Pallas kernels
# ---------------------------------------------------------------------------
def conv_pass1_kernel(*refs, m, cis, tile_l, valid, total, scale_pow, has_halo):
    """Conv1d (phase-split input, m shifted dots) + bias + nan_to_num + BN statistics.
    Optionally fuses the UNet input scaling sign*|x|^p onto the streamed input."""
    if has_halo:
        xm_ref, xh_ref, w_ref, b_ref, y_ref, sum_ref, ssq_ref = refs
    else:
        xm_ref, w_ref, b_ref, y_ref, sum_ref, ssq_ref = refs
        xh_ref = None
    ni, j = pl.program_id(0), pl.program_id(1)

    @pl.when(jnp.logical_and(ni == 0, j == 0))
    def _():
        sum_ref[...] = jnp.zeros_like(sum_ref)
        ssq_ref[...] = jnp.zeros_like(ssq_ref)

    def prep(v):
        v = v.astype(jnp.float32)
        if scale_pow is not None:
            sign = jnp.where(v > 0, 1.0, -1.0)
            a = jnp.abs(v)
            mag = jnp.sqrt(a) if scale_pow == 0.5 else jnp.power(a, scale_pow)
            v = sign * mag
        return v.astype(MM_DTYPE)

    xm = prep(xm_ref[0])                                   # (Cin*s, TL)
    if has_halo:
        xh = prep(xh_ref[0][:, : m - 1])                   # (Cin*s, m-1) right halo
        xw = jnp.concatenate([xm, xh], axis=-1)            # (Cin*s, TL+m-1)
    else:
        xw = xm

    w = w_ref[...].astype(MM_DTYPE)                        # (Co, m*Cin*s)
    acc = jnp.dot(w[:, :cis], xm, preferred_element_type=jnp.float32)
    for q in range(1, m):
        acc = acc + jnp.dot(w[:, q * cis:(q + 1) * cis], xw[:, q:q + tile_l],
                            preferred_element_type=jnp.float32)
    v = _nan_to_num(acc + b_ref[...])                      # (Co, TL)
    y_ref[0] = v.astype(y_ref.dtype)
    _accum_stats(sum_ref, ssq_ref, v, j, tile_l, valid, total)


def convt_pass1_kernel(*refs, k, s, co, split, tile_l, valid_b, total):
    """ConvTranspose1d tap matmul + in-VMEM overlap-add (phase-major output) + bias +
    nan_to_num + BN statistics.  If `split` is set, the logical input is
    concat([x1, x2], channel) but the concat is never materialized."""
    m = _cdiv(k, s)
    if split is None:
        x1m_ref, x1h_ref, w_ref, b_ref, y_ref, sum_ref, ssq_ref = refs
        x2m_ref = x2h_ref = None
    else:
        x1m_ref, x1h_ref, x2m_ref, x2h_ref, w_ref, b_ref, y_ref, sum_ref, ssq_ref = refs
    ni, j = pl.program_id(0), pl.program_id(1)

    @pl.when(jnp.logical_and(ni == 0, j == 0))
    def _():
        sum_ref[...] = jnp.zeros_like(sum_ref)
        ssq_ref[...] = jnp.zeros_like(ssq_ref)

    def window(xm_ref, xh_ref):
        xm = xm_ref[0].astype(MM_DTYPE)                    # (Ci, TL)
        if m == 1:
            return xm
        hal = xh_ref[0][:, LANE - (m - 1):].astype(MM_DTYPE)   # last m-1 cols of prev tile
        hal = jnp.where(j > 0, hal, jnp.zeros_like(hal))   # no left neighbour at j == 0
        return jnp.concatenate([hal, xm], axis=-1)         # (Ci, TL+m-1)

    w = w_ref[...].astype(MM_DTYPE)                        # (k*Co, Ci_tot), rows (t, co)
    xw1 = window(x1m_ref, x1h_ref)
    if split is None:
        taps = jnp.dot(w, xw1, preferred_element_type=jnp.float32)
    else:
        taps = (jnp.dot(w[:, :split], xw1, preferred_element_type=jnp.float32)
                + jnp.dot(w[:, split:], window(x2m_ref, x2h_ref),
                          preferred_element_type=jnp.float32))
    # taps: (k*Co, TL+m-1); column c corresponds to input local index c-(m-1).
    b = b_ref[...]                                         # (Co, 1)
    for r in range(s):                                     # overlap-add per output phase
        acc = None
        for q in range(m):
            t = q * s + r
            if t >= k:
                continue
            piece = taps[t * co:(t + 1) * co, (m - 1 - q):(m - 1 - q) + tile_l]
            acc = piece if acc is None else acc + piece
        v = _nan_to_num(acc + b)                           # (Co, TL) phase r
        y_ref[0, r * co:(r + 1) * co, :] = v.astype(y_ref.dtype)
        _accum_stats(sum_ref, ssq_ref, v, j, tile_l, valid_b[r], total,
                     rsl=slice(r * co, (r + 1) * co))


def bn_act_kernel(x_ref, sum_ref, ssq_ref, gamma_ref, beta_ref, o_ref,
                  *, act, count, tile_l, valid, total):
    """Pass 2: normalize with batch statistics + activation; zero the padded tail."""
    j = pl.program_id(1)
    y = _bn(x_ref[0].astype(jnp.float32), sum_ref, ssq_ref, gamma_ref, beta_ref, count)
    y = _activation(y, act)       # activation(finite) is finite -> trailing nan_to_num elided
    _store_masked(o_ref, y, j, tile_l, valid, total)


def bn_tanh_gate_kernel(y_ref, xs_ref, sum_ref, ssq_ref, gamma_ref, beta_ref, o_ref, *, count):
    """Shortcut gate: tanh(BN(1x1-conv output)) * raw shortcut (shortcut is zero-padded)."""
    filt = jnp.tanh(_bn(y_ref[0].astype(jnp.float32), sum_ref, ssq_ref,
                        gamma_ref, beta_ref, count))
    o_ref[0] = (xs_ref[0].astype(jnp.float32) * filt).astype(o_ref.dtype)


# ---------------------------------------------------------------------------
# building blocks (Conv1D_Block_With_Activation equivalents)
# ---------------------------------------------------------------------------
def conv_block(x, x_valid, p, *, kernel_size, stride, act, scale_pow=None):
    """Conv1d(K, stride) -> nan_to_num -> BatchNorm1d(train) -> activation (NCL).
    Returns a lane-padded activation (zero beyond the valid length) plus the valid length."""
    n, ci, _ = x.shape
    k, s = kernel_size, stride
    w, b = p["w"], p["b"]
    co = w.shape[0]
    lout = (x_valid - k) // s + 1
    m = _cdiv(k, s)
    assert m - 1 < LANE
    nt, tl = _tiles(lout)
    total = nt * tl
    grid = (n, nt)

    if k == 1 and s == 1:
        cis, has_halo = ci, False
        xp = _ensure_cols(x, total)
        w2 = w[:, :, 0]
        in_specs = [_x_spec(cis, tl), _full_spec((co, cis)), _full_spec((co, 1))]
        operands = (xp,)
    else:
        cis = ci * s
        has_halo = m > 1
        u_total = total + (LANE if has_halo else 0)
        if s == 1:
            xp = _ensure_cols(x, u_total)
        else:
            # One phase-split copy instead of a K-times-larger im2col tensor:
            #   xp[n, ci*s + r, u] = x[n, ci, u*s + r]
            xs_ = _ensure_cols(x, u_total * s)[:, :, : u_total * s]
            xp = xs_.reshape(n, ci, u_total, s).transpose(0, 1, 3, 2).reshape(n, cis, u_total)
        wpad = jnp.pad(w, ((0, 0), (0, 0), (0, m * s - k)))
        w2 = wpad.reshape(co, ci, m, s).transpose(0, 2, 1, 3).reshape(co, m * cis)
        in_specs = [_x_spec(cis, tl)]
        operands = (xp,)
        if has_halo:
            halo = pl.BlockSpec((1, cis, LANE),
                                lambda n_, j_, _t=tl // LANE: (n_, 0, (j_ + 1) * _t))
            in_specs.append(halo)
            operands = (xp, xp)
        in_specs += [_full_spec((co, m * cis)), _full_spec((co, 1))]

    y, ssum, ssq = pl.pallas_call(
        functools.partial(conv_pass1_kernel, m=m, cis=cis, tile_l=tl, valid=lout,
                          total=total, scale_pow=scale_pow, has_halo=has_halo),
        grid=grid,
        in_specs=in_specs,
        out_specs=[_x_spec(co, tl), _full_spec((co, 1)), _full_spec((co, 1))],
        out_shape=[jax.ShapeDtypeStruct((n, co, total), STORE_DTYPE),
                   jax.ShapeDtypeStruct((co, 1), jnp.float32),
                   jax.ShapeDtypeStruct((co, 1), jnp.float32)],
        compiler_params=_cparams(parallel=False),
    )(*operands, w2, b.reshape(co, 1))

    out = pl.pallas_call(
        functools.partial(bn_act_kernel, act=act, count=float(n * lout),
                          tile_l=tl, valid=lout, total=total),
        grid=grid,
        in_specs=[_x_spec(co, tl)] + [_full_spec((co, 1))] * 4,
        out_specs=_x_spec(co, tl),
        out_shape=jax.ShapeDtypeStruct((n, co, total), STORE_DTYPE),
        compiler_params=_cparams(parallel=True),
    )(y, ssum, ssq, p["gamma"].reshape(co, 1), p["beta"].reshape(co, 1))
    return out, lout


def shortcut_gate_block(xs, valid, p):
    """Conv1d(C,C,1) -> nan_to_num -> BN(train) -> tanh, then multiply the raw shortcut."""
    n, c, _ = xs.shape
    nt, tl = _tiles(valid)
    total = nt * tl
    grid = (n, nt)
    xs_p = _ensure_cols(xs, total)
    y, ssum, ssq = pl.pallas_call(
        functools.partial(conv_pass1_kernel, m=1, cis=c, tile_l=tl, valid=valid,
                          total=total, scale_pow=None, has_halo=False),
        grid=grid,
        in_specs=[_x_spec(c, tl), _full_spec((c, c)), _full_spec((c, 1))],
        out_specs=[_x_spec(c, tl), _full_spec((c, 1)), _full_spec((c, 1))],
        out_shape=[jax.ShapeDtypeStruct((n, c, total), STORE_DTYPE),
                   jax.ShapeDtypeStruct((c, 1), jnp.float32),
                   jax.ShapeDtypeStruct((c, 1), jnp.float32)],
        compiler_params=_cparams(parallel=False),
    )(xs_p, p["w"][:, :, 0], p["b"].reshape(c, 1))
    out = pl.pallas_call(
        functools.partial(bn_tanh_gate_kernel, count=float(n * valid)),
        grid=grid,
        in_specs=[_x_spec(c, tl), _x_spec(c, tl)] + [_full_spec((c, 1))] * 4,
        out_specs=_x_spec(c, tl),
        out_shape=jax.ShapeDtypeStruct((n, c, total), STORE_DTYPE),
        compiler_params=_cparams(parallel=True),
    )(y, xs_p, ssum, ssq, p["gamma"].reshape(c, 1), p["beta"].reshape(c, 1))
    return out, valid


def convt_block(x, x_valid, p, *, kernel_size, stride, act, x2=None):
    """ConvTranspose1d(K, stride) -> nan_to_num -> BatchNorm1d(train) -> activation."""
    n, ci, _ = x.shape
    k, s = kernel_size, stride
    m = _cdiv(k, s)
    assert m - 1 < LANE
    w, b = p["w"], p["b"]                                  # w: (Cin_total, Co, K)
    ci_tot, co = w.shape[0], w.shape[1]
    L = x_valid
    lo = (L - 1) * s + k
    B = _cdiv(lo, s)                                       # phase-major column count
    nt, tl = _tiles(B)
    total = nt * tl
    grid = (n, nt)
    wt = jnp.transpose(w, (2, 1, 0)).reshape(k * co, ci_tot)   # rows ordered (tap, co)
    b2 = b.reshape(co, 1)
    x1 = _ensure_cols(x, total)

    def halo_spec(c):
        return pl.BlockSpec((1, c, LANE),
                            lambda n_, j_, _t=tl // LANE: (n_, 0, jnp.maximum(j_ * _t - 1, 0)))

    if x2 is None:
        assert ci == ci_tot
        split = None
        in_specs = [_x_spec(ci, tl), halo_spec(ci),
                    _full_spec((k * co, ci_tot)), _full_spec((co, 1))]
        operands = (x1, x1, wt, b2)
    else:
        c2 = ci_tot - ci
        assert x2.shape[1] == c2
        split = ci
        x2p = _ensure_cols(x2, total)
        in_specs = [_x_spec(ci, tl), halo_spec(ci), _x_spec(c2, tl), halo_spec(c2),
                    _full_spec((k * co, ci_tot)), _full_spec((co, 1))]
        operands = (x1, x1, x2p, x2p, wt, b2)

    valid_b = [_cdiv(lo - r, s) for r in range(s)]         # valid columns per output phase

    yp, ssum2, ssq2 = pl.pallas_call(
        functools.partial(convt_pass1_kernel, k=k, s=s, co=co, split=split,
                          tile_l=tl, valid_b=valid_b, total=total),
        grid=grid,
        in_specs=in_specs,
        out_specs=[_x_spec(s * co, tl), _full_spec((s * co, 1)), _full_spec((s * co, 1))],
        out_shape=[jax.ShapeDtypeStruct((n, s * co, total), STORE_DTYPE),
                   jax.ShapeDtypeStruct((s * co, 1), jnp.float32),
                   jax.ShapeDtypeStruct((s * co, 1), jnp.float32)],
        compiler_params=_cparams(parallel=False),
    )(*operands)

    # per-phase stats -> per-channel stats (tiny)
    ssum = ssum2.reshape(s, co, 1).sum(axis=0)
    ssq = ssq2.reshape(s, co, 1).sum(axis=0)
    # phase-major -> position-major interleave (only XLA copy left in the ConvT path).
    ypos = yp.reshape(n, s, co, total).transpose(0, 2, 3, 1).reshape(n, co, total * s)

    tl2 = tl * s if tl * s <= MAX_TILE_L else tl
    nt2 = _cdiv(lo, tl2)
    total2 = nt2 * tl2
    out = pl.pallas_call(
        functools.partial(bn_act_kernel, act=act, count=float(n * lo),
                          tile_l=tl2, valid=lo, total=total2),
        grid=(n, nt2),
        in_specs=[_x_spec(co, tl2)] + [_full_spec((co, 1))] * 4,
        out_specs=_x_spec(co, tl2),
        out_shape=jax.ShapeDtypeStruct((n, co, total2), STORE_DTYPE),
        compiler_params=_cparams(parallel=True),
    )(ypos, ssum, ssq, p["gamma"].reshape(co, 1), p["beta"].reshape(co, 1))
    return out, lo


# ---------------------------------------------------------------------------
# UNet composition
# ---------------------------------------------------------------------------
def basic_unet_forward(x, params, *, kernel_size, activation_type,
                       sample_block_depth=1, scale_pow=0.5):
    # TODO(synk): training-mode dropout on the Upsampling_Block postshortcut convs is not
    # implemented (module default dropout=False).
    del sample_block_depth  # depth is implied by the params structure
    k = kernel_size
    s = max(k // 2, 1)
    act = activation_type
    cur, valid = x, x.shape[-1]
    need_scale = True
    shortcuts = []
    for p in params["down"]:
        for pp in p["pre"]:
            cur, valid = conv_block(cur, valid, pp, kernel_size=k, stride=s, act=act,
                                    scale_pow=scale_pow if need_scale else None)
            need_scale = False
        shortcuts.append((cur, valid))
        for pp in p["post"]:
            cur, valid = conv_block(cur, valid, pp, kernel_size=k, stride=s, act=act)
    if need_scale:  # degenerate config without downsampling blocks
        cur = jnp.where(cur > 0, 1.0, -1.0) * jnp.power(jnp.abs(cur), scale_pow)
    for pp in params["bottleneck"]:
        cur, valid = conv_block(cur, valid, pp, kernel_size=1, stride=1, act=act)
    for p in params["up"]:
        sc, sc_valid = shortcuts.pop()
        for pp in p["pre"]:
            cur, valid = convt_block(cur, valid, pp, kernel_size=k, stride=s, act=act)
        gate, gvalid = shortcut_gate_block(sc, sc_valid, p["shortcut"])
        assert gvalid == valid, (gvalid, valid)
        cur, valid = convt_block(cur, valid, p["post"][0], kernel_size=k, stride=s, act=act,
                                 x2=gate)                  # channel concat fused away
        for pp in p["post"][1:]:
            cur, valid = convt_block(cur, valid, pp, kernel_size=k, stride=s, act=act)
    # TODO(synk): the final 1x1 conv + tanh (and the bottleneck 1x1) could be fused into
    # the neighbouring normalize passes to save one more activation round trip each.
    cur, valid = conv_block(cur, valid, params["out"], kernel_size=1, stride=1, act="tanh")
    return cur[:, :, :valid]


# ---------------------------------------------------------------------------
# deterministic parameter init (shapes follow the module's __init__)
# ---------------------------------------------------------------------------
def init_params(key, feature_count_list, kernel_size, *, sample_block_depth=1,
                bottleneck_depth=1):
    fcl = list(feature_count_list)
    k = kernel_size
    keys = iter(jax.random.split(key, 64))

    def conv_p(cin, cout, ksz, transpose=False):
        k0, k1, k2, k3 = jax.random.split(next(keys), 4)
        wshape = (cin, cout, ksz) if transpose else (cout, cin, ksz)
        return {
            "w": 0.1 * jax.random.normal(k0, wshape, jnp.float32),
            "b": 0.1 * jax.random.normal(k1, (cout,), jnp.float32),
            "gamma": 1.0 + 0.1 * jax.random.normal(k2, (cout,), jnp.float32),
            "beta": 0.1 * jax.random.normal(k3, (cout,), jnp.float32),
        }

    params = {"down": [], "bottleneck": [], "up": []}
    for i in range(len(fcl) - 1):
        blk = {"pre": [], "post": []}
        for d in range(sample_block_depth):
            blk["pre"].append(conv_p(fcl[i] if d == 0 else fcl[i + 1], fcl[i + 1], k))
        for d in range(sample_block_depth):
            blk["post"].append(conv_p(fcl[i + 1], fcl[i + 1], k))
        params["down"].append(blk)
    for _ in range(bottleneck_depth):
        params["bottleneck"].append(conv_p(fcl[-1], fcl[-1], 1))
    for i in range(len(fcl) - 1, 0, -1):
        ci, co = fcl[i], fcl[i - 1]
        blk = {"pre": [], "post": [], "shortcut": conv_p(ci, ci, 1)}
        for d in range(sample_block_depth):
            blk["pre"].append(conv_p(ci, ci, k, transpose=True))
        for d in range(sample_block_depth):
            blk["post"].append(conv_p(2 * ci if d == 0 else co, co, k, transpose=True))
        params["up"].append(blk)
    params["out"] = conv_p(fcl[0], fcl[0], 1)
    return params


if __name__ == "__main__":
    FEATURES = [4, 8]        # feature_count_list
    K = 4                    # kernel_size (stride = K // 2 = 2)
    N, L = 2, 18             # L chosen so every stride-2 conv divides exactly (UNet shape match)

    key = jax.random.PRNGKey(0)
    kp, kx = jax.random.split(key)
    params = init_params(kp, FEATURES, K, sample_block_depth=1, bottleneck_depth=1)
    x = jax.random.normal(kx, (N, FEATURES[0], L), jnp.float32)     # NCL, like PyTorch

    fwd = jax.jit(functools.partial(
        basic_unet_forward, kernel_size=K, activation_type="leaky_relu",
        sample_block_depth=1, scale_pow=0.5))
    out = jax.block_until_ready(fwd(x, params))

    assert out.shape == (N, FEATURES[0], L), out.shape
    assert bool(jnp.all(jnp.isfinite(out)))
    print("KERNEL_OK")
</pallas_src>

<mosaic_0001>
module attributes {stable_mosaic.version = 11 : i64} {
  func.func @bn_act_kernel(%arg0: i32, %arg1: i32, %arg2: memref<1x8x128xf32, #tpu.memory_space<vmem>>, %arg3: memref<8x1xf32, #tpu.memory_space<vmem>>, %arg4: memref<8x1xf32, #tpu.memory_space<vmem>>, %arg5: memref<8x1xf32, #tpu.memory_space<vmem>>, %arg6: memref<8x1xf32, #tpu.memory_space<vmem>>, %arg7: memref<1x8x128xf32, #tpu.memory_space<vmem>>) attributes {dimension_semantics = [#tpu.dimension_semantics<parallel>, #tpu.dimension_semantics<parallel>], iteration_bounds = array<i64: 2, 1>, scalar_prefetch = 0 : i64, scratch_operands = 0 : i64, tpu.core_type = #tpu.core_type<tc>, window_params = [{transform_indices = @transform_0, window_bounds = array<i64: 1, 8, 128>}, {pipeline_mode = #tpu.pipeline_mode<synchronous>, transform_indices = @transform_1, window_bounds = array<i64: 8, 1>}, {pipeline_mode = #tpu.pipeline_mode<synchronous>, transform_indices = @transform_2, window_bounds = array<i64: 8, 1>}, {pipeline_mode = #tpu.pipeline_mode<synchronous>, transform_indices = @transform_3, window_bounds = array<i64: 8, 1>}, {pipeline_mode = #tpu.pipeline_mode<synchronous>, transform_indices = @transform_4, window_bounds = array<i64: 8, 1>}, {transform_indices = @transform_5, window_bounds = array<i64: 1, 8, 128>}]} {
    %c0 = arith.constant 0 : index
    %c0_0 = arith.constant 0 : index
    %c0_1 = arith.constant 0 : index
    %0 = vector.load %arg2[%c0, %c0_0, %c0_1] : memref<1x8x128xf32, #tpu.memory_space<vmem>>, vector<1x8x128xf32>
    %1 = vector.shape_cast %0 : vector<1x8x128xf32> to vector<8x128xf32>
    %c0_2 = arith.constant 0 : index
    %c0_3 = arith.constant 0 : index
    %2 = vector.load %arg3[%c0_2, %c0_3] : memref<8x1xf32, #tpu.memory_space<vmem>>, vector<8x1xf32>
    %cst = arith.constant 6.250000e-02 : f32
    %3 = vector.broadcast %cst : f32 to vector<8x1xf32>
    %4 = arith.mulf %2, %3 : vector<8x1xf32>
    %c0_4 = arith.constant 0 : index
    %c0_5 = arith.constant 0 : index
    %5 = vector.load %arg4[%c0_4, %c0_5] : memref<8x1xf32, #tpu.memory_space<vmem>>, vector<8x1xf32>
    %cst_6 = arith.constant 6.250000e-02 : f32
    %6 = vector.broadcast %cst_6 : f32 to vector<8x1xf32>
    %7 = arith.mulf %5, %6 : vector<8x1xf32>
    %8 = arith.mulf %4, %4 : vector<8x1xf32>
    %9 = arith.subf %7, %8 : vector<8x1xf32>
    %cst_7 = arith.constant 0.000000e+00 : f32
    %10 = vector.broadcast %cst_7 : f32 to vector<8x1xf32>
    %11 = arith.maximumf %9, %10 : vector<8x1xf32>
    %c0_8 = arith.constant 0 : index
    %c0_9 = arith.constant 0 : index
    %12 = vector.load %arg5[%c0_8, %c0_9] : memref<8x1xf32, #tpu.memory_space<vmem>>, vector<8x1xf32>
    %cst_10 = arith.constant 9.99999974E-6 : f32
    %13 = vector.broadcast %cst_10 : f32 to vector<8x1xf32>
    %14 = arith.addf %11, %13 : vector<8x1xf32>
    %15 = math.rsqrt %14 : vector<8x1xf32>
    %16 = arith.mulf %12, %15 : vector<8x1xf32>
    %17 = vector.broadcast %4 : vector<8x1xf32> to vector<8x128xf32>
    %18 = arith.subf %1, %17 : vector<8x128xf32>
    %19 = vector.broadcast %16 : vector<8x1xf32> to vector<8x128xf32>
    %20 = arith.mulf %18, %19 : vector<8x128xf32>
    %c0_11 = arith.constant 0 : index
    %c0_12 = arith.constant 0 : index
    %21 = vector.load %arg6[%c0_11, %c0_12] : memref<8x1xf32, #tpu.memory_space<vmem>>, vector<8x1xf32>
    %22 = vector.broadcast %21 : vector<8x1xf32> to vector<8x128xf32>
    %23 = arith.addf %20, %22 : vector<8x128xf32>
    %cst_13 = arith.constant -3.40282347E+38 : f32
    %cst_14 = arith.constant 3.40282347E+38 : f32
    %24 = vector.broadcast %cst_13 : f32 to vector<8x128xf32>
    %25 = arith.maximumf %24, %23 : vector<8x128xf32>
    %26 = vector.broadcast %cst_14 : f32 to vector<8x128xf32>
    %27 = arith.minimumf %26, %25 : vector<8x128xf32>
    %28 = arith.cmpf one, %27, %27 : vector<8x128xf32>
    %cst_15 = arith.constant 0.000000e+00 : f32
    %29 = vector.broadcast %cst_15 : f32 to vector<8x128xf32>
    %30 = arith.select %28, %29, %27 : vector<8x128xi1>, vector<8x128xf32>
    %cst_16 = arith.constant 0.000000e+00 : f32
    %31 = vector.broadcast %cst_16 : f32 to vector<8x128xf32>
    %32 = arith.cmpf oge, %30, %31 : vector<8x128xf32>
    %cst_17 = arith.constant 0.00999999977 : f32
    %33 = vector.broadcast %cst_17 : f32 to vector<8x128xf32>
    %34 = arith.mulf %33, %30 : vector<8x128xf32>
    %35 = arith.select %32, %30, %34 : vector<8x128xi1>, vector<8x128xf32>
    %c0_i32 = arith.constant 0 : i32
    %36 = arith.cmpi slt, %arg1, %c0_i32 : i32
    %37 = arith.extui %36 : i1 to i32
    %c0_i32_18 = arith.constant 0 : i32
    %38 = arith.cmpi ne, %37, %c0_i32_18 : i32
    scf.if %38 {
      %c0_21 = arith.constant 0 : index
      %c0_22 = arith.constant 0 : index
      %c0_23 = arith.constant 0 : index
      %42 = vector.load %arg7[%c0_21, %c0_22, %c0_23] : memref<1x8x128xf32, #tpu.memory_space<vmem>>, vector<1x8x128xf32>
      %43 = vector.shape_cast %42 : vector<1x8x128xf32> to vector<8x128xf32>
      %44 = vector.shape_cast %35 : vector<8x128xf32> to vector<1x8x128xf32>
      tpu.vector_store %arg7[%c0_21, %c0_22, %c0_23], %44 {strides = array<i32>} : memref<1x8x128xf32, #tpu.memory_space<vmem>>, vector<1x8x128xf32>,
    } else {
    }
    %c0_i32_19 = arith.constant 0 : i32
    %39 = arith.cmpi sge, %arg1, %c0_i32_19 : i32
    %40 = arith.extui %39 : i1 to i32
    %c0_i32_20 = arith.constant 0 : i32
    %41 = arith.cmpi ne, %40, %c0_i32_20 : i32
    scf.if %41 {
      %c128_i32 = arith.constant 128 : i32
      %42 = arith.muli %arg1, %c128_i32 : i32
      %43 = tpu.iota {dimensions = array<i32: 1>} : vector<8x128xi32>
      %44 = vector.broadcast %42 : i32 to vector<8x128xi32>
      %45 = arith.addi %44, %43 : vector<8x128xi32>
      %c8_i32 = arith.constant 8 : i32
      %46 = vector.broadcast %c8_i32 : i32 to vector<8x128xi32>
      %47 = arith.cmpi slt, %45, %46 : vector<8x128xi32>
      %cst_21 = arith.constant 0.000000e+00 : f32
      %48 = vector.broadcast %cst_21 : f32 to vector<8x128xf32>
      %49 = arith.select %47, %35, %48 : vector<8x128xi1>, vector<8x128xf32>
      %c0_22 = arith.constant 0 : index
      %c0_23 = arith.constant 0 : index
      %c0_24 = arith.constant 0 : index
      %50 = vector.load %arg7[%c0_22, %c0_23, %c0_24] : memref<1x8x128xf32, #tpu.memory_space<vmem>>, vector<1x8x128xf32>
      %51 = vector.shape_cast %50 : vector<1x8x128xf32> to vector<8x128xf32>
      %52 = vector.shape_cast %49 : vector<8x128xf32> to vector<1x8x128xf32>
      tpu.vector_store %arg7[%c0_22, %c0_23, %c0_24], %52 {strides = array<i32>} : memref<1x8x128xf32, #tpu.memory_space<vmem>>, vector<1x8x128xf32>,
    } else {
    }
    return
  }
  func.func @transform_0(%arg0: i32, %arg1: i32) -> (i32, i32, i32) {
    %c0_i32 = arith.constant 0 : i32
    %c0_i32_0 = arith.constant 0 : i32
    return %arg0, %c0_i32, %arg1 : i32, i32, i32
  }
  func.func @transform_1(%arg0: i32, %arg1: i32) -> (i32, i32) {
    %c0_i32 = arith.constant 0 : i32
    %c0_i32_0 = arith.constant 0 : i32
    %c0_i32_1 = arith.constant 0 : i32
    return %c0_i32, %c0_i32_0 : i32, i32
  }
  func.func @transform_2(%arg0: i32, %arg1: i32) -> (i32, i32) {
    %c0_i32 = arith.constant 0 : i32
    %c0_i32_0 = arith.constant 0 : i32
    %c0_i32_1 = arith.constant 0 : i32
    return %c0_i32, %c0_i32_0 : i32, i32
  }
  func.func @transform_3(%arg0: i32, %arg1: i32) -> (i32, i32) {
    %c0_i32 = arith.constant 0 : i32
    %c0_i32_0 = arith.constant 0 : i32
    %c0_i32_1 = arith.constant 0 : i32
    return %c0_i32, %c0_i32_0 : i32, i32
  }
  func.func @transform_4(%arg0: i32, %arg1: i32) -> (i32, i32) {
    %c0_i32 = arith.constant 0 : i32
    %c0_i32_0 = arith.constant 0 : i32
    %c0_i32_1 = arith.constant 0 : i32
    return %c0_i32, %c0_i32_0 : i32, i32
  }
  func.func @transform_5(%arg0: i32, %arg1: i32) -> (i32, i32, i32) {
    %c0_i32 = arith.constant 0 : i32
    %c0_i32_0 = arith.constant 0 : i32
    return %arg0, %c0_i32, %arg1 : i32, i32, i32
  }
}

module attributes {stable_mosaic.version = 11 : i64} {
  func.func @conv_pass1_kernel(%arg0: i32, %arg1: i32, %arg2: memref<1x8x128xf32, #tpu.memory_space<vmem>>, %arg3: memref<1x8x128xf32, #tpu.memory_space<vmem>>, %arg4: memref<8x16xf32, #tpu.memory_space<vmem>>, %arg5: memref<8x1xf32, #tpu.memory_space<vmem>>, %arg6: memref<1x8x128xf32, #tpu.memory_space<vmem>>, %arg7: memref<8x1xf32, #tpu.memory_space<vmem>>, %arg8: memref<8x1xf32, #tpu.memory_space<vmem>>) attributes {dimension_semantics = [#tpu.dimension_semantics<arbitrary>, #tpu.dimension_semantics<arbitrary>], iteration_bounds = array<i64: 2, 1>, scalar_prefetch = 0 : i64, scratch_operands = 0 : i64, tpu.core_type = #tpu.core_type<tc>, window_params = [{transform_indices = @transform_0, window_bounds = array<i64: 1, 8, 128>}, {transform_indices = @transform_1, window_bounds = array<i64: 1, 8, 128>}, {pipeline_mode = #tpu.pipeline_mode<synchronous>, transform_indices = @transform_2, window_bounds = array<i64: 8, 16>}, {pipeline_mode = #tpu.pipeline_mode<synchronous>, transform_indices = @transform_3, window_bounds = array<i64: 8, 1>}, {transform_indices = @transform_4, window_bounds = array<i64: 1, 8, 128>}, {pipeline_mode = #tpu.pipeline_mode<synchronous>, transform_indices = @transform_5, window_bounds = array<i64: 8, 1>}, {pipeline_mode = #tpu.pipeline_mode<synchronous>, transform_indices = @transform_6, window_bounds = array<i64: 8, 1>}]} {
    %c0_i32 = arith.constant 0 : i32
    %0 = arith.cmpi eq, %arg0, %c0_i32 : i32
    %c0_i32_0 = arith.constant 0 : i32
    %1 = arith.cmpi eq, %arg1, %c0_i32_0 : i32
    %2 = arith.andi %0, %1 : i1
    %3 = arith.extui %2 : i1 to i32
    %c0_i32_1 = arith.constant 0 : i32
    %4 = arith.cmpi ne, %3, %c0_i32_1 : i32
    scf.if %4 {
      %cst_28 = arith.constant 0.000000e+00 : f32
      %53 = vector.broadcast %cst_28 : f32 to vector<8x1xf32>
      %c0_29 = arith.constant 0 : index
      %c0_30 = arith.constant 0 : index
      %54 = vector.load %arg7[%c0_29, %c0_30] : memref<8x1xf32, #tpu.memory_space<vmem>>, vector<8x1xf32>
      tpu.vector_store %arg7[%c0_29, %c0_30], %53 {strides = array<i32>} : memref<8x1xf32, #tpu.memory_space<vmem>>, vector<8x1xf32>,
      %cst_31 = arith.constant 0.000000e+00 : f32
      %55 = vector.broadcast %cst_31 : f32 to vector<8x1xf32>
      %c0_32 = arith.constant 0 : index
      %c0_33 = arith.constant 0 : index
      %56 = vector.load %arg8[%c0_32, %c0_33] : memref<8x1xf32, #tpu.memory_space<vmem>>, vector<8x1xf32>
      tpu.vector_store %arg8[%c0_32, %c0_33], %55 {strides = array<i32>} : memref<8x1xf32, #tpu.memory_space<vmem>>, vector<8x1xf32>,
    } else {
    }
    %c0 = arith.constant 0 : index
    %c0_2 = arith.constant 0 : index
    %c0_3 = arith.constant 0 : index
    %5 = vector.load %arg2[%c0, %c0_2, %c0_3] : memref<1x8x128xf32, #tpu.memory_space<vmem>>, vector<1x8x128xf32>
    %6 = vector.shape_cast %5 : vector<1x8x128xf32> to vector<8x128xf32>
    %cst = arith.constant 0.000000e+00 : f32
    %7 = vector.broadcast %cst : f32 to vector<8x128xf32>
    %8 = arith.cmpf ogt, %6, %7 : vector<8x128xf32>
    %cst_4 = arith.constant 1.000000e+00 : f32
    %cst_5 = arith.constant -1.000000e+00 : f32
    %9 = vector.broadcast %cst_4 : f32 to vector<8x128xf32>
    %10 = vector.broadcast %cst_5 : f32 to vector<8x128xf32>
    %11 = arith.select %8, %9, %10 : vector<8x128xi1>, vector<8x128xf32>
    %12 = math.absf %6 : vector<8x128xf32>
    %13 = math.sqrt %12 : vector<8x128xf32>
    %14 = arith.mulf %11, %13 : vector<8x128xf32>
    %c0_6 = arith.constant 0 : index
    %c0_7 = arith.constant 0 : index
    %c0_8 = arith.constant 0 : index
    %15 = vector.load %arg3[%c0_6, %c0_7, %c0_8] : memref<1x8x128xf32, #tpu.memory_space<vmem>>, vector<1x8x128xf32>
    %16 = vector.shape_cast %15 : vector<1x8x128xf32> to vector<8x128xf32>
    %17 = vector.extract_strided_slice %16 {offsets = [0, 0], sizes = [8, 1], strides = [1, 1]} : vector<8x128xf32> to vector<8x1xf32>
    %cst_9 = arith.constant 0.000000e+00 : f32
    %18 = vector.broadcast %cst_9 : f32 to vector<8x1xf32>
    %19 = arith.cmpf ogt, %17, %18 : vector<8x1xf32>
    %cst_10 = arith.constant 1.000000e+00 : f32
    %cst_11 = arith.constant -1.000000e+00 : f32
    %20 = vector.broadcast %cst_10 : f32 to vector<8x1xf32>
    %21 = vector.broadcast %cst_11 : f32 to vector<8x1xf32>
    %22 = arith.select %19, %20, %21 : vector<8x1xi1>, vector<8x1xf32>
    %23 = math.absf %17 : vector<8x1xf32>
    %24 = math.sqrt %23 : vector<8x1xf32>
    %25 = arith.mulf %22, %24 : vector<8x1xf32>
    %26 = tpu.concatenate %14, %25 in 1 : vector<8x128xf32>, vector<8x1xf32> -> vector<8x129xf32>
    %c0_12 = arith.constant 0 : index
    %c0_13 = arith.constant 0 : index
    %27 = vector.load %arg4[%c0_12, %c0_13] : memref<8x16xf32, #tpu.memory_space<vmem>>, vector<8x16xf32>
    %28 = vector.extract_strided_slice %27 {offsets = [0, 0], sizes = [8, 8], strides = [1, 1]} : vector<8x16xf32> to vector<8x8xf32>
    %cst_14 = arith.constant dense<0.000000e+00> : vector<8x128xf32>
    %29 = tpu.matmul %28, %14, %cst_14 {dimension_numbers = #tpu.dot_dimension_numbers<[1], [0], [0], [1], [0, 0, 1, 1], [], []>} : vector<8x8xf32>, vector<8x128xf32>, vector<8x128xf32> -> vector<8x128xf32>
    %30 = vector.extract_strided_slice %27 {offsets = [0, 8], sizes = [8, 8], strides = [1, 1]} : vector<8x16xf32> to vector<8x8xf32>
    %31 = vector.extract_strided_slice %26 {offsets = [0, 1], sizes = [8, 128], strides = [1, 1]} : vector<8x129xf32> to vector<8x128xf32>
    %cst_15 = arith.constant dense<0.000000e+00> : vector<8x128xf32>
    %32 = tpu.matmul %30, %31, %cst_15 {dimension_numbers = #tpu.dot_dimension_numbers<[1], [0], [0], [1], [0, 0, 1, 1], [], []>} : vector<8x8xf32>, vector<8x128xf32>, vector<8x128xf32> -> vector<8x128xf32>
    %33 = arith.addf %29, %32 : vector<8x128xf32>
    %c0_16 = arith.constant 0 : index
    %c0_17 = arith.constant 0 : index
    %34 = vector.load %arg5[%c0_16, %c0_17] : memref<8x1xf32, #tpu.memory_space<vmem>>, vector<8x1xf32>
    %35 = vector.broadcast %34 : vector<8x1xf32> to vector<8x128xf32>
    %36 = arith.addf %33, %35 : vector<8x128xf32>
    %cst_18 = arith.constant -3.40282347E+38 : f32
    %cst_19 = arith.constant 3.40282347E+38 : f32
    %37 = vector.broadcast %cst_18 : f32 to vector<8x128xf32>
    %38 = arith.maximumf %37, %36 : vector<8x128xf32>
    %39 = vector.broadcast %cst_19 : f32 to vector<8x128xf32>
    %40 = arith.minimumf %39, %38 : vector<8x128xf32>
    %41 = arith.cmpf one, %40, %40 : vector<8x128xf32>
    %cst_20 = arith.constant 0.000000e+00 : f32
    %42 = vector.broadcast %cst_20 : f32 to vector<8x128xf32>
    %43 = arith.select %41, %42, %40 : vector<8x128xi1>, vector<8x128xf32>
    %c0_21 = arith.constant 0 : index
    %c0_22 = arith.constant 0 : index
    %c0_23 = arith.constant 0 : index
    %44 = vector.load %arg6[%c0_21, %c0_22, %c0_23] : memref<1x8x128xf32, #tpu.memory_space<vmem>>, vector<1x8x128xf32>
    %45 = vector.shape_cast %44 : vector<1x8x128xf32> to vector<8x128xf32>
    %46 = vector.shape_cast %43 : vector<8x128xf32> to vector<1x8x128xf32>
    tpu.vector_store %arg6[%c0_21, %c0_22, %c0_23], %46 {strides = array<i32>} : memref<1x8x128xf32, #tpu.memory_space<vmem>>, vector<1x8x128xf32>,
    %c0_i32_24 = arith.constant 0 : i32
    %47 = arith.cmpi slt, %arg1, %c0_i32_24 : i32
    %48 = arith.extui %47 : i1 to i32
    %c0_i32_25 = arith.constant 0 : i32
    %49 = arith.cmpi ne, %48, %c0_i32_25 : i32
    scf.if %49 {
      %c0_28 = arith.constant 0 : index
      %c0_29 = arith.constant 0 : index
      %53 = vector.load %arg7[%c0_28, %c0_29] : memref<8x1xf32, #tpu.memory_space<vmem>>, vector<8x1xf32>
      %cst_30 = arith.constant dense<0.000000e+00> : vector<8xf32>
      %54 = vector.multi_reduction <add>, %43, %cst_30 [1] : vector<8x128xf32> to vector<8xf32>
      %55 = vector.shape_cast %54 : vector<8xf32> to vector<8x1xf32>
      %56 = arith.addf %53, %55 : vector<8x1xf32>
      %c0_31 = arith.constant 0 : index
      %c0_32 = arith.constant 0 : index
      %57 = vector.load %arg7[%c0_31, %c0_32] : memref<8x1xf32, #tpu.memory_space<vmem>>, vector<8x1xf32>
      tpu.vector_store %arg7[%c0_31, %c0_32], %56 {strides = array<i32>} : memref<8x1xf32, #tpu.memory_space<vmem>>, vector<8x1xf32>,
      %c0_33 = arith.constant 0 : index
      %c0_34 = arith.constant 0 : index
      %58 = vector.load %arg8[%c0_33, %c0_34] : memref<8x1xf32, #tpu.memory_space<vmem>>, vector<8x1xf32>
      %59 = arith.mulf %43, %43 : vector<8x128xf32>
      %cst_35 = arith.constant dense<0.000000e+00> : vector<8xf32>
      %60 = vector.multi_reduction <add>, %59, %cst_35 [1] : vector<8x128xf32> to vector<8xf32>
      %61 = vector.shape_cast %60 : vector<8xf32> to vector<8x1xf32>
      %62 = arith.addf %58, %61 : vector<8x1xf32>
      %c0_36 = arith.constant 0 : index
      %c0_37 = arith.constant 0 : index
      %63 = vector.load %arg8[%c0_36, %c0_37] : memref<8x1xf32, #tpu.memory_space<vmem>>, vector<8x1xf32>
      tpu.vector_store %arg8[%c0_36, %c0_37], %62 {strides = array<i32>} : memref<8x1xf32, #tpu.memory_space<vmem>>, vector<8x1xf32>,
    } else {
    }
    %c0_i32_26 = arith.constant 0 : i32
    %50 = arith.cmpi sge, %arg1, %c0_i32_26 : i32
    %51 = arith.extui %50 : i1 to i32
    %c0_i32_27 = arith.constant 0 : i32
    %52 = arith.cmpi ne, %51, %c0_i32_27 : i32
    scf.if %52 {
      %c128_i32 = arith.constant 128 : i32
      %53 = arith.muli %arg1, %c128_i32 : i32
      %54 = tpu.iota {dimensions = array<i32: 1>} : vector<8x128xi32>
      %55 = vector.broadcast %53 : i32 to vector<8x128xi32>
      %56 = arith.addi %55, %54 : vector<8x128xi32>
      %c8_i32 = arith.constant 8 : i32
      %57 = vector.broadcast %c8_i32 : i32 to vector<8x128xi32>
      %58 = arith.cmpi slt, %56, %57 : vector<8x128xi32>
      %cst_28 = arith.constant 0.000000e+00 : f32
      %59 = vector.broadcast %cst_28 : f32 to vector<8x128xf32>
      %60 = arith.select %58, %43, %59 : vector<8x128xi1>, vector<8x128xf32>
      %c0_29 = arith.constant 0 : index
      %c0_30 = arith.constant 0 : index
      %61 = vector.load %arg7[%c0_29, %c0_30] : memref<8x1xf32, #tpu.memory_space<vmem>>, vector<8x1xf32>
      %cst_31 = arith.constant dense<0.000000e+00> : vector<8xf32>
      %62 = vector.multi_reduction <add>, %60, %cst_31 [1] : vector<8x128xf32> to vector<8xf32>
      %63 = vector.shape_cast %62 : vector<8xf32> to vector<8x1xf32>
      %64 = arith.addf %61, %63 : vector<8x1xf32>
      %c0_32 = arith.constant 0 : index
      %c0_33 = arith.constant 0 : index
      %65 = vector.load %arg7[%c0_32, %c0_33] : memref<8x1xf32, #tpu.memory_space<vmem>>, vector<8x1xf32>
      tpu.vector_store %arg7[%c0_32, %c0_33], %64 {strides = array<i32>} : memref<8x1xf32, #tpu.memory_space<vmem>>, vector<8x1xf32>,
      %c0_34 = arith.constant 0 : index
      %c0_35 = arith.constant 0 : index
      %66 = vector.load %arg8[%c0_34, %c0_35] : memref<8x1xf32, #tpu.memory_space<vmem>>, vector<8x1xf32>
      %67 = arith.mulf %60, %60 : vector<8x128xf32>
      %cst_36 = arith.constant dense<0.000000e+00> : vector<8xf32>
      %68 = vector.multi_reduction <add>, %67, %cst_36 [1] : vector<8x128xf32> to vector<8xf32>
      %69 = vector.shape_cast %68 : vector<8xf32> to vector<8x1xf32>
      %70 = arith.addf %66, %69 : vector<8x1xf32>
      %c0_37 = arith.constant 0 : index
      %c0_38 = arith.constant 0 : index
      %71 = vector.load %arg8[%c0_37, %c0_38] : memref<8x1xf32, #tpu.memory_space<vmem>>, vector<8x1xf32>
      tpu.vector_store %arg8[%c0_37, %c0_38], %70 {strides = array<i32>} : memref<8x1xf32, #tpu.memory_space<vmem>>, vector<8x1xf32>,
    } else {
    }
    return
  }
  func.func @transform_0(%arg0: i32, %arg1: i32) -> (i32, i32, i32) {
    %c0_i32 = arith.constant 0 : i32
    %c0_i32_0 = arith.constant 0 : i32
    return %arg0, %c0_i32, %arg1 : i32, i32, i32
  }
  func.func @transform_1(%arg0: i32, %arg1: i32) -> (i32, i32, i32) {
    %c1_i32 = arith.constant 1 : i32
    %0 = arith.addi %arg1, %c1_i32 : i32
    %c1_i32_0 = arith.constant 1 : i32
    %1 = arith.muli %0, %c1_i32_0 : i32
    %c0_i32 = arith.constant 0 : i32
    %c0_i32_1 = arith.constant 0 : i32
    return %arg0, %c0_i32, %1 : i32, i32, i32
  }
  func.func @transform_2(%arg0: i32, %arg1: i32) -> (i32, i32) {
    %c0_i32 = arith.constant 0 : i32
    %c0_i32_0 = arith.constant 0 : i32
    %c0_i32_1 = arith.constant 0 : i32
    return %c0_i32, %c0_i32_0 : i32, i32
  }
  func.func @transform_3(%arg0: i32, %arg1: i32) -> (i32, i32) {
    %c0_i32 = arith.constant 0 : i32
    %c0_i32_0 = arith.constant 0 : i32
    %c0_i32_1 = arith.constant 0 : i32
    return %c0_i32, %c0_i32_0 : i32, i32
  }
  func.func @transform_4(%arg0: i32, %arg1: i32) -> (i32, i32, i32) {
    %c0_i32 = arith.constant 0 : i32
    %c0_i32_0 = arith.constant 0 : i32
    return %arg0, %c0_i32, %arg1 : i32, i32, i32
  }
  func.func @transform_5(%arg0: i32, %arg1: i32) -> (i32, i32) {
    %c0_i32 = arith.constant 0 : i32
    %c0_i32_0 = arith.constant 0 : i32
    %c0_i32_1 = arith.constant 0 : i32
    return %c0_i32, %c0_i32_0 : i32, i32
  }
  func.func @transform_6(%arg0: i32, %arg1: i32) -> (i32, i32) {
    %c0_i32 = arith.constant 0 : i32
    %c0_i32_0 = arith.constant 0 : i32
    %c0_i32_1 = arith.constant 0 : i32
    return %c0_i32, %c0_i32_0 : i32, i32
  }
}

module attributes {stable_mosaic.version = 11 : i64} {
  func.func @conv_pass1_kernel(%arg0: i32, %arg1: i32, %arg2: memref<1x16x128xf32, #tpu.memory_space<vmem>>, %arg3: memref<1x16x128xf32, #tpu.memory_space<vmem>>, %arg4: memref<8x32xf32, #tpu.memory_space<vmem>>, %arg5: memref<8x1xf32, #tpu.memory_space<vmem>>, %arg6: memref<1x8x128xf32, #tpu.memory_space<vmem>>, %arg7: memref<8x1xf32, #tpu.memory_space<vmem>>, %arg8: memref<8x1xf32, #tpu.memory_space<vmem>>) attributes {dimension_semantics = [#tpu.dimension_semantics<arbitrary>, #tpu.dimension_semantics<arbitrary>], iteration_bounds = array<i64: 2, 1>, scalar_prefetch = 0 : i64, scratch_operands = 0 : i64, tpu.core_type = #tpu.core_type<tc>, window_params = [{transform_indices = @transform_0, window_bounds = array<i64: 1, 16, 128>}, {transform_indices = @transform_1, window_bounds = array<i64: 1, 16, 128>}, {pipeline_mode = #tpu.pipeline_mode<synchronous>, transform_indices = @transform_2, window_bounds = array<i64: 8, 32>}, {pipeline_mode = #tpu.pipeline_mode<synchronous>, transform_indices = @transform_3, window_bounds = array<i64: 8, 1>}, {transform_indices = @transform_4, window_bounds = array<i64: 1, 8, 128>}, {pipeline_mode = #tpu.pipeline_mode<synchronous>, transform_indices = @transform_5, window_bounds = array<i64: 8, 1>}, {pipeline_mode = #tpu.pipeline_mode<synchronous>, transform_indices = @transform_6, window_bounds = array<i64: 8, 1>}]} {
    %c0_i32 = arith.constant 0 : i32
    %0 = arith.cmpi eq, %arg0, %c0_i32 : i32
    %c0_i32_0 = arith.constant 0 : i32
    %1 = arith.cmpi eq, %arg1, %c0_i32_0 : i32
    %2 = arith.andi %0, %1 : i1
    %3 = arith.extui %2 : i1 to i32
    %c0_i32_1 = arith.constant 0 : i32
    %4 = arith.cmpi ne, %3, %c0_i32_1 : i32
    scf.if %4 {
      %cst_22 = arith.constant 0.000000e+00 : f32
      %37 = vector.broadcast %cst_22 : f32 to vector<8x1xf32>
      %c0_23 = arith.constant 0 : index
      %c0_24 = arith.constant 0 : index
      %38 = vector.load %arg7[%c0_23, %c0_24] : memref<8x1xf32, #tpu.memory_space<vmem>>, vector<8x1xf32>
      tpu.vector_store %arg7[%c0_23, %c0_24], %37 {strides = array<i32>} : memref<8x1xf32, #tpu.memory_space<vmem>>, vector<8x1xf32>,
      %cst_25 = arith.constant 0.000000e+00 : f32
      %39 = vector.broadcast %cst_25 : f32 to vector<8x1xf32>
      %c0_26 = arith.constant 0 : index
      %c0_27 = arith.constant 0 : index
      %40 = vector.load %arg8[%c0_26, %c0_27] : memref<8x1xf32, #tpu.memory_space<vmem>>, vector<8x1xf32>
      tpu.vector_store %arg8[%c0_26, %c0_27], %39 {strides = array<i32>} : memref<8x1xf32, #tpu.memory_space<vmem>>, vector<8x1xf32>,
    } else {
    }
    %c0 = arith.constant 0 : index
    %c0_2 = arith.constant 0 : index
    %c0_3 = arith.constant 0 : index
    %5 = vector.load %arg2[%c0, %c0_2, %c0_3] : memref<1x16x128xf32, #tpu.memory_space<vmem>>, vector<1x16x128xf32>
    %6 = vector.shape_cast %5 : vector<1x16x128xf32> to vector<16x128xf32>
    %c0_4 = arith.constant 0 : index
    %c0_5 = arith.constant 0 : index
    %c0_6 = arith.constant 0 : index
    %7 = vector.load %arg3[%c0_4, %c0_5, %c0_6] : memref<1x16x128xf32, #tpu.memory_space<vmem>>, vector<1x16x128xf32>
    %8 = vector.shape_cast %7 : vector<1x16x128xf32> to vector<16x128xf32>
    %9 = vector.extract_strided_slice %8 {offsets = [0, 0], sizes = [16, 1], strides = [1, 1]} : vector<16x128xf32> to vector<16x1xf32>
    %10 = tpu.concatenate %6, %9 in 1 : vector<16x128xf32>, vector<16x1xf32> -> vector<16x129xf32>
    %c0_7 = arith.constant 0 : index
    %c0_8 = arith.constant 0 : index
    %11 = vector.load %arg4[%c0_7, %c0_8] : memref<8x32xf32, #tpu.memory_space<vmem>>, vector<8x32xf32>
    %12 = vector.extract_strided_slice %11 {offsets = [0, 0], sizes = [8, 16], strides = [1, 1]} : vector<8x32xf32> to vector<8x16xf32>
    %cst = arith.constant dense<0.000000e+00> : vector<8x128xf32>
    %13 = tpu.matmul %12, %6, %cst {dimension_numbers = #tpu.dot_dimension_numbers<[1], [0], [0], [1], [0, 0, 1, 1], [], []>} : vector<8x16xf32>, vector<16x128xf32>, vector<8x128xf32> -> vector<8x128xf32>
    %14 = vector.extract_strided_slice %11 {offsets = [0, 16], sizes = [8, 16], strides = [1, 1]} : vector<8x32xf32> to vector<8x16xf32>
    %15 = vector.extract_strided_slice %10 {offsets = [0, 1], sizes = [16, 128], strides = [1, 1]} : vector<16x129xf32> to vector<16x128xf32>
    %cst_9 = arith.constant dense<0.000000e+00> : vector<8x128xf32>
    %16 = tpu.matmul %14, %15, %cst_9 {dimension_numbers = #tpu.dot_dimension_numbers<[1], [0], [0], [1], [0, 0, 1, 1], [], []>} : vector<8x16xf32>, vector<16x128xf32>, vector<8x128xf32> -> vector<8x128xf32>
    %17 = arith.addf %13, %16 : vector<8x128xf32>
    %c0_10 = arith.constant 0 : index
    %c0_11 = arith.constant 0 : index
    %18 = vector.load %arg5[%c0_10, %c0_11] : memref<8x1xf32, #tpu.memory_space<vmem>>, vector<8x1xf32>
    %19 = vector.broadcast %18 : vector<8x1xf32> to vector<8x128xf32>
    %20 = arith.addf %17, %19 : vector<8x128xf32>
    %cst_12 = arith.constant -3.40282347E+38 : f32
    %cst_13 = arith.constant 3.40282347E+38 : f32
    %21 = vector.broadcast %cst_12 : f32 to vector<8x128xf32>
    %22 = arith.maximumf %21, %20 : vector<8x128xf32>
    %23 = vector.broadcast %cst_13 : f32 to vector<8x128xf32>
    %24 = arith.minimumf %23, %22 : vector<8x128xf32>
    %25 = arith.cmpf one, %24, %24 : vector<8x128xf32>
    %cst_14 = arith.constant 0.000000e+00 : f32
    %26 = vector.broadcast %cst_14 : f32 to vector<8x128xf32>
    %27 = arith.select %25, %26, %24 : vector<8x128xi1>, vector<8x128xf32>
    %c0_15 = arith.constant 0 : index
    %c0_16 = arith.constant 0 : index
    %c0_17 = arith.constant 0 : index
    %28 = vector.load %arg6[%c0_15, %c0_16, %c0_17] : memref<1x8x128xf32, #tpu.memory_space<vmem>>, vector<1x8x128xf32>
    %29 = vector.shape_cast %28 : vector<1x8x128xf32> to vector<8x128xf32>
    %30 = vector.shape_cast %27 : vector<8x128xf32> to vector<1x8x128xf32>
    tpu.vector_store %arg6[%c0_15, %c0_16, %c0_17], %30 {strides = array<i32>} : memref<1x8x128xf32, #tpu.memory_space<vmem>>, vector<1x8x128xf32>,
    %c0_i32_18 = arith.constant 0 : i32
    %31 = arith.cmpi slt, %arg1, %c0_i32_18 : i32
    %32 = arith.extui %31 : i1 to i32
    %c0_i32_19 = arith.constant 0 : i32
    %33 = arith.cmpi ne, %32, %c0_i32_19 : i32
    scf.if %33 {
      %c0_22 = arith.constant 0 : index
      %c0_23 = arith.constant 0 : index
      %37 = vector.load %arg7[%c0_22, %c0_23] : memref<8x1xf32, #tpu.memory_space<vmem>>, vector<8x1xf32>
      %cst_24 = arith.constant dense<0.000000e+00> : vector<8xf32>
      %38 = vector.multi_reduction <add>, %27, %cst_24 [1] : vector<8x128xf32> to vector<8xf32>
      %39 = vector.shape_cast %38 : vector<8xf32> to vector<8x1xf32>
      %40 = arith.addf %37, %39 : vector<8x1xf32>
      %c0_25 = arith.constant 0 : index
      %c0_26 = arith.constant 0 : index
      %41 = vector.load %arg7[%c0_25, %c0_26] : memref<8x1xf32, #tpu.memory_space<vmem>>, vector<8x1xf32>
      tpu.vector_store %arg7[%c0_25, %c0_26], %40 {strides = array<i32>} : memref<8x1xf32, #tpu.memory_space<vmem>>, vector<8x1xf32>,
      %c0_27 = arith.constant 0 : index
      %c0_28 = arith.constant 0 : index
      %42 = vector.load %arg8[%c0_27, %c0_28] : memref<8x1xf32, #tpu.memory_space<vmem>>, vector<8x1xf32>
      %43 = arith.mulf %27, %27 : vector<8x128xf32>
      %cst_29 = arith.constant dense<0.000000e+00> : vector<8xf32>
      %44 = vector.multi_reduction <add>, %43, %cst_29 [1] : vector<8x128xf32> to vector<8xf32>
      %45 = vector.shape_cast %44 : vector<8xf32> to vector<8x1xf32>
      %46 = arith.addf %42, %45 : vector<8x1xf32>
      %c0_30 = arith.constant 0 : index
      %c0_31 = arith.constant 0 : index
      %47 = vector.load %arg8[%c0_30, %c0_31] : memref<8x1xf32, #tpu.memory_space<vmem>>, vector<8x1xf32>
      tpu.vector_store %arg8[%c0_30, %c0_31], %46 {strides = array<i32>} : memref<8x1xf32, #tpu.memory_space<vmem>>, vector<8x1xf32>,
    } else {
    }
    %c0_i32_20 = arith.constant 0 : i32
    %34 = arith.cmpi sge, %arg1, %c0_i32_20 : i32
    %35 = arith.extui %34 : i1 to i32
    %c0_i32_21 = arith.constant 0 : i32
    %36 = arith.cmpi ne, %35, %c0_i32_21 : i32
    scf.if %36 {
      %c128_i32 = arith.constant 128 : i32
      %37 = arith.muli %arg1, %c128_i32 : i32
      %38 = tpu.iota {dimensions = array<i32: 1>} : vector<8x128xi32>
      %39 = vector.broadcast %37 : i32 to vector<8x128xi32>
      %40 = arith.addi %39, %38 : vector<8x128xi32>
      %c3_i32 = arith.constant 3 : i32
      %41 = vector.broadcast %c3_i32 : i32 to vector<8x128xi32>
      %42 = arith.cmpi slt, %40, %41 : vector<8x128xi32>
      %cst_22 = arith.constant 0.000000e+00 : f32
      %43 = vector.broadcast %cst_22 : f32 to vector<8x128xf32>
      %44 = arith.select %42, %27, %43 : vector<8x128xi1>, vector<8x128xf32>
      %c0_23 = arith.constant 0 : index
      %c0_24 = arith.constant 0 : index
      %45 = vector.load %arg7[%c0_23, %c0_24] : memref<8x1xf32, #tpu.memory_space<vmem>>, vector<8x1xf32>
      %cst_25 = arith.constant dense<0.000000e+00> : vector<8xf32>
      %46 = vector.multi_reduction <add>, %44, %cst_25 [1] : vector<8x128xf32> to vector<8xf32>
      %47 = vector.shape_cast %46 : vector<8xf32> to vector<8x1xf32>
      %48 = arith.addf %45, %47 : vector<8x1xf32>
      %c0_26 = arith.constant 0 : index
      %c0_27 = arith.constant 0 : index
      %49 = vector.load %arg7[%c0_26, %c0_27] : memref<8x1xf32, #tpu.memory_space<vmem>>, vector<8x1xf32>
      tpu.vector_store %arg7[%c0_26, %c0_27], %48 {strides = array<i32>} : memref<8x1xf32, #tpu.memory_space<vmem>>, vector<8x1xf32>,
      %c0_28 = arith.constant 0 : index
      %c0_29 = arith.constant 0 : index
      %50 = vector.load %arg8[%c0_28, %c0_29] : memref<8x1xf32, #tpu.memory_space<vmem>>, vector<8x1xf32>
      %51 = arith.mulf %44, %44 : vector<8x128xf32>
      %cst_30 = arith.constant dense<0.000000e+00> : vector<8xf32>
      %52 = vector.multi_reduction <add>, %51, %cst_30 [1] : vector<8x128xf32> to vector<8xf32>
      %53 = vector.shape_cast %52 : vector<8xf32> to vector<8x1xf32>
      %54 = arith.addf %50, %53 : vector<8x1xf32>
      %c0_31 = arith.constant 0 : index
      %c0_32 = arith.constant 0 : index
      %55 = vector.load %arg8[%c0_31, %c0_32] : memref<8x1xf32, #tpu.memory_space<vmem>>, vector<8x1xf32>
      tpu.vector_store %arg8[%c0_31, %c0_32], %54 {strides = array<i32>} : memref<8x1xf32, #tpu.memory_space<vmem>>, vector<8x1xf32>,
    } else {
    }
    return
  }
  func.func @transform_0(%arg0: i32, %arg1: i32) -> (i32, i32, i32) {
    %c0_i32 = arith.constant 0 : i32
    %c0_i32_0 = arith.constant 0 : i32
    return %arg0, %c0_i32, %arg1 : i32, i32, i32
  }
  func.func @transform_1(%arg0: i32, %arg1: i32) -> (i32, i32, i32) {
    %c1_i32 = arith.constant 1 : i32
    %0 = arith.addi %arg1, %c1_i32 : i32
    %c1_i32_0 = arith.constant 1 : i32
    %1 = arith.muli %0, %c1_i32_0 : i32
    %c0_i32 = arith.constant 0 : i32
    %c0_i32_1 = arith.constant 0 : i32
    return %arg0, %c0_i32, %1 : i32, i32, i32
  }
  func.func @transform_2(%arg0: i32, %arg1: i32) -> (i32, i32) {
    %c0_i32 = arith.constant 0 : i32
    %c0_i32_0 = arith.constant 0 : i32
    %c0_i32_1 = arith.constant 0 : i32
    return %c0_i32, %c0_i32_0 : i32, i32
  }
  func.func @transform_3(%arg0: i32, %arg1: i32) -> (i32, i32) {
    %c0_i32 = arith.constant 0 : i32
    %c0_i32_0 = arith.constant 0 : i32
    %c0_i32_1 = arith.constant 0 : i32
    return %c0_i32, %c0_i32_0 : i32, i32
  }
  func.func @transform_4(%arg0: i32, %arg1: i32) -> (i32, i32, i32) {
    %c0_i32 = arith.constant 0 : i32
    %c0_i32_0 = arith.constant 0 : i32
    return %arg0, %c0_i32, %arg1 : i32, i32, i32
  }
  func.func @transform_5(%arg0: i32, %arg1: i32) -> (i32, i32) {
    %c0_i32 = arith.constant 0 : i32
    %c0_i32_0 = arith.constant 0 : i32
    %c0_i32_1 = arith.constant 0 : i32
    return %c0_i32, %c0_i32_0 : i32, i32
  }
  func.func @transform_6(%arg0: i32, %arg1: i32) -> (i32, i32) {
    %c0_i32 = arith.constant 0 : i32
    %c0_i32_0 = arith.constant 0 : i32
    %c0_i32_1 = arith.constant 0 : i32
    return %c0_i32, %c0_i32_0 : i32, i32
  }
}

module attributes {stable_mosaic.version = 11 : i64} {
  func.func @bn_act_kernel(%arg0: i32, %arg1: i32, %arg2: memref<1x8x128xf32, #tpu.memory_space<vmem>>, %arg3: memref<8x1xf32, #tpu.memory_space<vmem>>, %arg4: memref<8x1xf32, #tpu.memory_space<vmem>>, %arg5: memref<8x1xf32, #tpu.memory_space<vmem>>, %arg6: memref<8x1xf32, #tpu.memory_space<vmem>>, %arg7: memref<1x8x128xf32, #tpu.memory_space<vmem>>) attributes {dimension_semantics = [#tpu.dimension_semantics<parallel>, #tpu.dimension_semantics<parallel>], iteration_bounds = array<i64: 2, 1>, scalar_prefetch = 0 : i64, scratch_operands = 0 : i64, tpu.core_type = #tpu.core_type<tc>, window_params = [{transform_indices = @transform_0, window_bounds = array<i64: 1, 8, 128>}, {pipeline_mode = #tpu.pipeline_mode<synchronous>, transform_indices = @transform_1, window_bounds = array<i64: 8, 1>}, {pipeline_mode = #tpu.pipeline_mode<synchronous>, transform_indices = @transform_2, window_bounds = array<i64: 8, 1>}, {pipeline_mode = #tpu.pipeline_mode<synchronous>, transform_indices = @transform_3, window_bounds = array<i64: 8, 1>}, {pipeline_mode = #tpu.pipeline_mode<synchronous>, transform_indices = @transform_4, window_bounds = array<i64: 8, 1>}, {transform_indices = @transform_5, window_bounds = array<i64: 1, 8, 128>}]} {
    %c0 = arith.constant 0 : index
    %c0_0 = arith.constant 0 : index
    %c0_1 = arith.constant 0 : index
    %0 = vector.load %arg2[%c0, %c0_0, %c0_1] : memref<1x8x128xf32, #tpu.memory_space<vmem>>, vector<1x8x128xf32>
    %1 = vector.shape_cast %0 : vector<1x8x128xf32> to vector<8x128xf32>
    %c0_2 = arith.constant 0 : index
    %c0_3 = arith.constant 0 : index
    %2 = vector.load %arg3[%c0_2, %c0_3] : memref<8x1xf32, #tpu.memory_space<vmem>>, vector<8x1xf32>
    %cst = arith.constant 0.166666672 : f32
    %3 = vector.broadcast %cst : f32 to vector<8x1xf32>
    %4 = arith.mulf %2, %3 : vector<8x1xf32>
    %c0_4 = arith.constant 0 : index
    %c0_5 = arith.constant 0 : index
    %5 = vector.load %arg4[%c0_4, %c0_5] : memref<8x1xf32, #tpu.memory_space<vmem>>, vector<8x1xf32>
    %cst_6 = arith.constant 0.166666672 : f32
    %6 = vector.broadcast %cst_6 : f32 to vector<8x1xf32>
    %7 = arith.mulf %5, %6 : vector<8x1xf32>
    %8 = arith.mulf %4, %4 : vector<8x1xf32>
    %9 = arith.subf %7, %8 : vector<8x1xf32>
    %cst_7 = arith.constant 0.000000e+00 : f32
    %10 = vector.broadcast %cst_7 : f32 to vector<8x1xf32>
    %11 = arith.maximumf %9, %10 : vector<8x1xf32>
    %c0_8 = arith.constant 0 : index
    %c0_9 = arith.constant 0 : index
    %12 = vector.load %arg5[%c0_8, %c0_9] : memref<8x1xf32, #tpu.memory_space<vmem>>, vector<8x1xf32>
    %cst_10 = arith.constant 9.99999974E-6 : f32
    %13 = vector.broadcast %cst_10 : f32 to vector<8x1xf32>
    %14 = arith.addf %11, %13 : vector<8x1xf32>
    %15 = math.rsqrt %14 : vector<8x1xf32>
    %16 = arith.mulf %12, %15 : vector<8x1xf32>
    %17 = vector.broadcast %4 : vector<8x1xf32> to vector<8x128xf32>
    %18 = arith.subf %1, %17 : vector<8x128xf32>
    %19 = vector.broadcast %16 : vector<8x1xf32> to vector<8x128xf32>
    %20 = arith.mulf %18, %19 : vector<8x128xf32>
    %c0_11 = arith.constant 0 : index
    %c0_12 = arith.constant 0 : index
    %21 = vector.load %arg6[%c0_11, %c0_12] : memref<8x1xf32, #tpu.memory_space<vmem>>, vector<8x1xf32>
    %22 = vector.broadcast %21 : vector<8x1xf32> to vector<8x128xf32>
    %23 = arith.addf %20, %22 : vector<8x128xf32>
    %cst_13 = arith.constant -3.40282347E+38 : f32
    %cst_14 = arith.constant 3.40282347E+38 : f32
    %24 = vector.broadcast %cst_13 : f32 to vector<8x128xf32>
    %25 = arith.maximumf %24, %23 : vector<8x128xf32>
    %26 = vector.broadcast %cst_14 : f32 to vector<8x128xf32>
    %27 = arith.minimumf %26, %25 : vector<8x128xf32>
    %28 = arith.cmpf one, %27, %27 : vector<8x128xf32>
    %cst_15 = arith.constant 0.000000e+00 : f32
    %29 = vector.broadcast %cst_15 : f32 to vector<8x128xf32>
    %30 = arith.select %28, %29, %27 : vector<8x128xi1>, vector<8x128xf32>
    %cst_16 = arith.constant 0.000000e+00 : f32
    %31 = vector.broadcast %cst_16 : f32 to vector<8x128xf32>
    %32 = arith.cmpf oge, %30, %31 : vector<8x128xf32>
    %cst_17 = arith.constant 0.00999999977 : f32
    %33 = vector.broadcast %cst_17 : f32 to vector<8x128xf32>
    %34 = arith.mulf %33, %30 : vector<8x128xf32>
    %35 = arith.select %32, %30, %34 : vector<8x128xi1>, vector<8x128xf32>
    %c0_i32 = arith.constant 0 : i32
    %36 = arith.cmpi slt, %arg1, %c0_i32 : i32
    %37 = arith.extui %36 : i1 to i32
    %c0_i32_18 = arith.constant 0 : i32
    %38 = arith.cmpi ne, %37, %c0_i32_18 : i32
    scf.if %38 {
      %c0_21 = arith.constant 0 : index
      %c0_22 = arith.constant 0 : index
      %c0_23 = arith.constant 0 : index
      %42 = vector.load %arg7[%c0_21, %c0_22, %c0_23] : memref<1x8x128xf32, #tpu.memory_space<vmem>>, vector<1x8x128xf32>
      %43 = vector.shape_cast %42 : vector<1x8x128xf32> to vector<8x128xf32>
      %44 = vector.shape_cast %35 : vector<8x128xf32> to vector<1x8x128xf32>
      tpu.vector_store %arg7[%c0_21, %c0_22, %c0_23], %44 {strides = array<i32>} : memref<1x8x128xf32, #tpu.memory_space<vmem>>, vector<1x8x128xf32>,
    } else {
    }
    %c0_i32_19 = arith.constant 0 : i32
    %39 = arith.cmpi sge, %arg1, %c0_i32_19 : i32
    %40 = arith.extui %39 : i1 to i32
    %c0_i32_20 = arith.constant 0 : i32
    %41 = arith.cmpi ne, %40, %c0_i32_20 : i32
    scf.if %41 {
      %c128_i32 = arith.constant 128 : i32
      %42 = arith.muli %arg1, %c128_i32 : i32
      %43 = tpu.iota {dimensions = array<i32: 1>} : vector<8x128xi32>
      %44 = vector.broadcast %42 : i32 to vector<8x128xi32>
      %45 = arith.addi %44, %43 : vector<8x128xi32>
      %c3_i32 = arith.constant 3 : i32
      %46 = vector.broadcast %c3_i32 : i32 to vector<8x128xi32>
      %47 = arith.cmpi slt, %45, %46 : vector<8x128xi32>
      %cst_21 = arith.constant 0.000000e+00 : f32
      %48 = vector.broadcast %cst_21 : f32 to vector<8x128xf32>
      %49 = arith.select %47, %35, %48 : vector<8x128xi1>, vector<8x128xf32>
      %c0_22 = arith.constant 0 : index
      %c0_23 = arith.constant 0 : index
      %c0_24 = arith.constant 0 : index
      %50 = vector.load %arg7[%c0_22, %c0_23, %c0_24] : memref<1x8x128xf32, #tpu.memory_space<vmem>>, vector<1x8x128xf32>
      %51 = vector.shape_cast %50 : vector<1x8x128xf32> to vector<8x128xf32>
      %52 = vector.shape_cast %49 : vector<8x128xf32> to vector<1x8x128xf32>
      tpu.vector_store %arg7[%c0_22, %c0_23, %c0_24], %52 {strides = array<i32>} : memref<1x8x128xf32, #tpu.memory_space<vmem>>, vector<1x8x128xf32>,
    } else {
    }
    return
  }
  func.func @transform_0(%arg0: i32, %arg1: i32) -> (i32, i32, i32) {
    %c0_i32 = arith.constant 0 : i32
    %c0_i32_0 = arith.constant 0 : i32
    return %arg0, %c0_i32, %arg1 : i32, i32, i32
  }
  func.func @transform_1(%arg0: i32, %arg1: i32) -> (i32, i32) {
    %c0_i32 = arith.constant 0 : i32
    %c0_i32_0 = arith.constant 0 : i32
    %c0_i32_1 = arith.constant 0 : i32
    return %c0_i32, %c0_i32_0 : i32, i32
  }
  func.func @transform_2(%arg0: i32, %arg1: i32) -> (i32, i32) {
    %c0_i32 = arith.constant 0 : i32
    %c0_i32_0 = arith.constant 0 : i32
    %c0_i32_1 = arith.constant 0 : i32
    return %c0_i32, %c0_i32_0 : i32, i32
  }
  func.func @transform_3(%arg0: i32, %arg1: i32) -> (i32, i32) {
    %c0_i32 = arith.constant 0 : i32
    %c0_i32_0 = arith.constant 0 : i32
    %c0_i32_1 = arith.constant 0 : i32
    return %c0_i32, %c0_i32_0 : i32, i32
  }
  func.func @transform_4(%arg0: i32, %arg1: i32) -> (i32, i32) {
    %c0_i32 = arith.constant 0 : i32
    %c0_i32_0 = arith.constant 0 : i32
    %c0_i32_1 = arith.constant 0 : i32
    return %c0_i32, %c0_i32_0 : i32, i32
  }
  func.func @transform_5(%arg0: i32, %arg1: i32) -> (i32, i32, i32) {
    %c0_i32 = arith.constant 0 : i32
    %c0_i32_0 = arith.constant 0 : i32
    return %arg0, %c0_i32, %arg1 : i32, i32, i32
  }
}

module attributes {stable_mosaic.version = 11 : i64} {
  func.func @conv_pass1_kernel(%arg0: i32, %arg1: i32, %arg2: memref<1x8x128xf32, #tpu.memory_space<vmem>>, %arg3: memref<8x8xf32, #tpu.memory_space<vmem>>, %arg4: memref<8x1xf32, #tpu.memory_space<vmem>>, %arg5: memref<1x8x128xf32, #tpu.memory_space<vmem>>, %arg6: memref<8x1xf32, #tpu.memory_space<vmem>>, %arg7: memref<8x1xf32, #tpu.memory_space<vmem>>) attributes {dimension_semantics = [#tpu.dimension_semantics<arbitrary>, #tpu.dimension_semantics<arbitrary>], iteration_bounds = array<i64: 2, 1>, scalar_prefetch = 0 : i64, scratch_operands = 0 : i64, tpu.core_type = #tpu.core_type<tc>, window_params = [{transform_indices = @transform_0, window_bounds = array<i64: 1, 8, 128>}, {pipeline_mode = #tpu.pipeline_mode<synchronous>, transform_indices = @transform_1, window_bounds = array<i64: 8, 8>}, {pipeline_mode = #tpu.pipeline_mode<synchronous>, transform_indices = @transform_2, window_bounds = array<i64: 8, 1>}, {transform_indices = @transform_3, window_bounds = array<i64: 1, 8, 128>}, {pipeline_mode = #tpu.pipeline_mode<synchronous>, transform_indices = @transform_4, window_bounds = array<i64: 8, 1>}, {pipeline_mode = #tpu.pipeline_mode<synchronous>, transform_indices = @transform_5, window_bounds = array<i64: 8, 1>}]} {
    %c0_i32 = arith.constant 0 : i32
    %0 = arith.cmpi eq, %arg0, %c0_i32 : i32
    %c0_i32_0 = arith.constant 0 : i32
    %1 = arith.cmpi eq, %arg1, %c0_i32_0 : i32
    %2 = arith.andi %0, %1 : i1
    %3 = arith.extui %2 : i1 to i32
    %c0_i32_1 = arith.constant 0 : i32
    %4 = arith.cmpi ne, %3, %c0_i32_1 : i32
    scf.if %4 {
      %cst_18 = arith.constant 0.000000e+00 : f32
      %28 = vector.broadcast %cst_18 : f32 to vector<8x1xf32>
      %c0_19 = arith.constant 0 : index
      %c0_20 = arith.constant 0 : index
      %29 = vector.load %arg6[%c0_19, %c0_20] : memref<8x1xf32, #tpu.memory_space<vmem>>, vector<8x1xf32>
      tpu.vector_store %arg6[%c0_19, %c0_20], %28 {strides = array<i32>} : memref<8x1xf32, #tpu.memory_space<vmem>>, vector<8x1xf32>,
      %cst_21 = arith.constant 0.000000e+00 : f32
      %30 = vector.broadcast %cst_21 : f32 to vector<8x1xf32>
      %c0_22 = arith.constant 0 : index
      %c0_23 = arith.constant 0 : index
      %31 = vector.load %arg7[%c0_22, %c0_23] : memref<8x1xf32, #tpu.memory_space<vmem>>, vector<8x1xf32>
      tpu.vector_store %arg7[%c0_22, %c0_23], %30 {strides = array<i32>} : memref<8x1xf32, #tpu.memory_space<vmem>>, vector<8x1xf32>,
    } else {
    }
    %c0 = arith.constant 0 : index
    %c0_2 = arith.constant 0 : index
    %c0_3 = arith.constant 0 : index
    %5 = vector.load %arg2[%c0, %c0_2, %c0_3] : memref<1x8x128xf32, #tpu.memory_space<vmem>>, vector<1x8x128xf32>
    %6 = vector.shape_cast %5 : vector<1x8x128xf32> to vector<8x128xf32>
    %c0_4 = arith.constant 0 : index
    %c0_5 = arith.constant 0 : index
    %7 = vector.load %arg3[%c0_4, %c0_5] : memref<8x8xf32, #tpu.memory_space<vmem>>, vector<8x8xf32>
    %cst = arith.constant dense<0.000000e+00> : vector<8x128xf32>
    %8 = tpu.matmul %7, %6, %cst {dimension_numbers = #tpu.dot_dimension_numbers<[1], [0], [0], [1], [0, 0, 1, 1], [], []>} : vector<8x8xf32>, vector<8x128xf32>, vector<8x128xf32> -> vector<8x128xf32>
    %c0_6 = arith.constant 0 : index
    %c0_7 = arith.constant 0 : index
    %9 = vector.load %arg4[%c0_6, %c0_7] : memref<8x1xf32, #tpu.memory_space<vmem>>, vector<8x1xf32>
    %10 = vector.broadcast %9 : vector<8x1xf32> to vector<8x128xf32>
    %11 = arith.addf %8, %10 : vector<8x128xf32>
    %cst_8 = arith.constant -3.40282347E+38 : f32
    %cst_9 = arith.constant 3.40282347E+38 : f32
    %12 = vector.broadcast %cst_8 : f32 to vector<8x128xf32>
    %13 = arith.maximumf %12, %11 : vector<8x128xf32>
    %14 = vector.broadcast %cst_9 : f32 to vector<8x128xf32>
    %15 = arith.minimumf %14, %13 : vector<8x128xf32>
    %16 = arith.cmpf one, %15, %15 : vector<8x128xf32>
    %cst_10 = arith.constant 0.000000e+00 : f32
    %17 = vector.broadcast %cst_10 : f32 to vector<8x128xf32>
    %18 = arith.select %16, %17, %15 : vector<8x128xi1>, vector<8x128xf32>
    %c0_11 = arith.constant 0 : index
    %c0_12 = arith.constant 0 : index
    %c0_13 = arith.constant 0 : index
    %19 = vector.load %arg5[%c0_11, %c0_12, %c0_13] : memref<1x8x128xf32, #tpu.memory_space<vmem>>, vector<1x8x128xf32>
    %20 = vector.shape_cast %19 : vector<1x8x128xf32> to vector<8x128xf32>
    %21 = vector.shape_cast %18 : vector<8x128xf32> to vector<1x8x128xf32>
    tpu.vector_store %arg5[%c0_11, %c0_12, %c0_13], %21 {strides = array<i32>} : memref<1x8x128xf32, #tpu.memory_space<vmem>>, vector<1x8x128xf32>,
    %c0_i32_14 = arith.constant 0 : i32
    %22 = arith.cmpi slt, %arg1, %c0_i32_14 : i32
    %23 = arith.extui %22 : i1 to i32
    %c0_i32_15 = arith.constant 0 : i32
    %24 = arith.cmpi ne, %23, %c0_i32_15 : i32
    scf.if %24 {
      %c0_18 = arith.constant 0 : index
      %c0_19 = arith.constant 0 : index
      %28 = vector.load %arg6[%c0_18, %c0_19] : memref<8x1xf32, #tpu.memory_space<vmem>>, vector<8x1xf32>
      %cst_20 = arith.constant dense<0.000000e+00> : vector<8xf32>
      %29 = vector.multi_reduction <add>, %18, %cst_20 [1] : vector<8x128xf32> to vector<8xf32>
      %30 = vector.shape_cast %29 : vector<8xf32> to vector<8x1xf32>
      %31 = arith.addf %28, %30 : vector<8x1xf32>
      %c0_21 = arith.constant 0 : index
      %c0_22 = arith.constant 0 : index
      %32 = vector.load %arg6[%c0_21, %c0_22] : memref<8x1xf32, #tpu.memory_space<vmem>>, vector<8x1xf32>
      tpu.vector_store %arg6[%c0_21, %c0_22], %31 {strides = array<i32>} : memref<8x1xf32, #tpu.memory_space<vmem>>, vector<8x1xf32>,
      %c0_23 = arith.constant 0 : index
      %c0_24 = arith.constant 0 : index
      %33 = vector.load %arg7[%c0_23, %c0_24] : memref<8x1xf32, #tpu.memory_space<vmem>>, vector<8x1xf32>
      %34 = arith.mulf %18, %18 : vector<8x128xf32>
      %cst_25 = arith.constant dense<0.000000e+00> : vector<8xf32>
      %35 = vector.multi_reduction <add>, %34, %cst_25 [1] : vector<8x128xf32> to vector<8xf32>
      %36 = vector.shape_cast %35 : vector<8xf32> to vector<8x1xf32>
      %37 = arith.addf %33, %36 : vector<8x1xf32>
      %c0_26 = arith.constant 0 : index
      %c0_27 = arith.constant 0 : index
      %38 = vector.load %arg7[%c0_26, %c0_27] : memref<8x1xf32, #tpu.memory_space<vmem>>, vector<8x1xf32>
      tpu.vector_store %arg7[%c0_26, %c0_27], %37 {strides = array<i32>} : memref<8x1xf32, #tpu.memory_space<vmem>>, vector<8x1xf32>,
    } else {
    }
    %c0_i32_16 = arith.constant 0 : i32
    %25 = arith.cmpi sge, %arg1, %c0_i32_16 : i32
    %26 = arith.extui %25 : i1 to i32
    %c0_i32_17 = arith.constant 0 : i32
    %27 = arith.cmpi ne, %26, %c0_i32_17 : i32
    scf.if %27 {
      %c128_i32 = arith.constant 128 : i32
      %28 = arith.muli %arg1, %c128_i32 : i32
      %29 = tpu.iota {dimensions = array<i32: 1>} : vector<8x128xi32>
      %30 = vector.broadcast %28 : i32 to vector<8x128xi32>
      %31 = arith.addi %30, %29 : vector<8x128xi32>
      %c3_i32 = arith.constant 3 : i32
      %32 = vector.broadcast %c3_i32 : i32 to vector<8x128xi32>
      %33 = arith.cmpi slt, %31, %32 : vector<8x128xi32>
      %cst_18 = arith.constant 0.000000e+00 : f32
      %34 = vector.broadcast %cst_18 : f32 to vector<8x128xf32>
      %35 = arith.select %33, %18, %34 : vector<8x128xi1>, vector<8x128xf32>
      %c0_19 = arith.constant 0 : index
      %c0_20 = arith.constant 0 : index
      %36 = vector.load %arg6[%c0_19, %c0_20] : memref<8x1xf32, #tpu.memory_space<vmem>>, vector<8x1xf32>
      %cst_21 = arith.constant dense<0.000000e+00> : vector<8xf32>
      %37 = vector.multi_reduction <add>, %35, %cst_21 [1] : vector<8x128xf32> to vector<8xf32>
      %38 = vector.shape_cast %37 : vector<8xf32> to vector<8x1xf32>
      %39 = arith.addf %36, %38 : vector<8x1xf32>
      %c0_22 = arith.constant 0 : index
      %c0_23 = arith.constant 0 : index
      %40 = vector.load %arg6[%c0_22, %c0_23] : memref<8x1xf32, #tpu.memory_space<vmem>>, vector<8x1xf32>
      tpu.vector_store %arg6[%c0_22, %c0_23], %39 {strides = array<i32>} : memref<8x1xf32, #tpu.memory_space<vmem>>, vector<8x1xf32>,
      %c0_24 = arith.constant 0 : index
      %c0_25 = arith.constant 0 : index
      %41 = vector.load %arg7[%c0_24, %c0_25] : memref<8x1xf32, #tpu.memory_space<vmem>>, vector<8x1xf32>
      %42 = arith.mulf %35, %35 : vector<8x128xf32>
      %cst_26 = arith.constant dense<0.000000e+00> : vector<8xf32>
      %43 = vector.multi_reduction <add>, %42, %cst_26 [1] : vector<8x128xf32> to vector<8xf32>
      %44 = vector.shape_cast %43 : vector<8xf32> to vector<8x1xf32>
      %45 = arith.addf %41, %44 : vector<8x1xf32>
      %c0_27 = arith.constant 0 : index
      %c0_28 = arith.constant 0 : index
      %46 = vector.load %arg7[%c0_27, %c0_28] : memref<8x1xf32, #tpu.memory_space<vmem>>, vector<8x1xf32>
      tpu.vector_store %arg7[%c0_27, %c0_28], %45 {strides = array<i32>} : memref<8x1xf32, #tpu.memory_space<vmem>>, vector<8x1xf32>,
    } else {
    }
    return
  }
  func.func @transform_0(%arg0: i32, %arg1: i32) -> (i32, i32, i32) {
    %c0_i32 = arith.constant 0 : i32
    %c0_i32_0 = arith.constant 0 : i32
    return %arg0, %c0_i32, %arg1 : i32, i32, i32
  }
  func.func @transform_1(%arg0: i32, %arg1: i32) -> (i32, i32) {
    %c0_i32 = arith.constant 0 : i32
    %c0_i32_0 = arith.constant 0 : i32
    %c0_i32_1 = arith.constant 0 : i32
    return %c0_i32, %c0_i32_0 : i32, i32
  }
  func.func @transform_2(%arg0: i32, %arg1: i32) -> (i32, i32) {
    %c0_i32 = arith.constant 0 : i32
    %c0_i32_0 = arith.constant 0 : i32
    %c0_i32_1 = arith.constant 0 : i32
    return %c0_i32, %c0_i32_0 : i32, i32
  }
  func.func @transform_3(%arg0: i32, %arg1: i32) -> (i32, i32, i32) {
    %c0_i32 = arith.constant 0 : i32
    %c0_i32_0 = arith.constant 0 : i32
    return %arg0, %c0_i32, %arg1 : i32, i32, i32
  }
  func.func @transform_4(%arg0: i32, %arg1: i32) -> (i32, i32) {
    %c0_i32 = arith.constant 0 : i32
    %c0_i32_0 = arith.constant 0 : i32
    %c0_i32_1 = arith.constant 0 : i32
    return %c0_i32, %c0_i32_0 : i32, i32
  }
  func.func @transform_5(%arg0: i32, %arg1: i32) -> (i32, i32) {
    %c0_i32 = arith.constant 0 : i32
    %c0_i32_0 = arith.constant 0 : i32
    %c0_i32_1 = arith.constant 0 : i32
    return %c0_i32, %c0_i32_0 : i32, i32
  }
}

module attributes {stable_mosaic.version = 11 : i64} {
  func.func @convt_pass1_kernel(%arg0: i32, %arg1: i32, %arg2: memref<1x8x128xf32, #tpu.memory_space<vmem>>, %arg3: memref<1x8x128xf32, #tpu.memory_space<vmem>>, %arg4: memref<32x8xf32, #tpu.memory_space<vmem>>, %arg5: memref<8x1xf32, #tpu.memory_space<vmem>>, %arg6: memref<1x16x128xf32, #tpu.memory_space<vmem>>, %arg7: memref<16x1xf32, #tpu.memory_space<vmem>>, %arg8: memref<16x1xf32, #tpu.memory_space<vmem>>) attributes {dimension_semantics = [#tpu.dimension_semantics<arbitrary>, #tpu.dimension_semantics<arbitrary>], iteration_bounds = array<i64: 2, 1>, scalar_prefetch = 0 : i64, scratch_operands = 0 : i64, tpu.core_type = #tpu.core_type<tc>, window_params = [{transform_indices = @transform_0, window_bounds = array<i64: 1, 8, 128>}, {transform_indices = @transform_1, window_bounds = array<i64: 1, 8, 128>}, {pipeline_mode = #tpu.pipeline_mode<synchronous>, transform_indices = @transform_2, window_bounds = array<i64: 32, 8>}, {pipeline_mode = #tpu.pipeline_mode<synchronous>, transform_indices = @transform_3, window_bounds = array<i64: 8, 1>}, {transform_indices = @transform_4, window_bounds = array<i64: 1, 16, 128>}, {pipeline_mode = #tpu.pipeline_mode<synchronous>, transform_indices = @transform_5, window_bounds = array<i64: 16, 1>}, {pipeline_mode = #tpu.pipeline_mode<synchronous>, transform_indices = @transform_6, window_bounds = array<i64: 16, 1>}]} {
    %c0_i32 = arith.constant 0 : i32
    %0 = arith.cmpi eq, %arg0, %c0_i32 : i32
    %c0_i32_0 = arith.constant 0 : i32
    %1 = arith.cmpi eq, %arg1, %c0_i32_0 : i32
    %2 = arith.andi %0, %1 : i1
    %3 = arith.extui %2 : i1 to i32
    %c0_i32_1 = arith.constant 0 : i32
    %4 = arith.cmpi ne, %3, %c0_i32_1 : i32
    scf.if %4 {
      %cst_32 = arith.constant 0.000000e+00 : f32
      %59 = vector.broadcast %cst_32 : f32 to vector<16x1xf32>
      %c0_33 = arith.constant 0 : index
      %c0_34 = arith.constant 0 : index
      %60 = vector.load %arg7[%c0_33, %c0_34] : memref<16x1xf32, #tpu.memory_space<vmem>>, vector<16x1xf32>
      tpu.vector_store %arg7[%c0_33, %c0_34], %59 {strides = array<i32>} : memref<16x1xf32, #tpu.memory_space<vmem>>, vector<16x1xf32>,
      %cst_35 = arith.constant 0.000000e+00 : f32
      %61 = vector.broadcast %cst_35 : f32 to vector<16x1xf32>
      %c0_36 = arith.constant 0 : index
      %c0_37 = arith.constant 0 : index
      %62 = vector.load %arg8[%c0_36, %c0_37] : memref<16x1xf32, #tpu.memory_space<vmem>>, vector<16x1xf32>
      tpu.vector_store %arg8[%c0_36, %c0_37], %61 {strides = array<i32>} : memref<16x1xf32, #tpu.memory_space<vmem>>, vector<16x1xf32>,
    } else {
    }
    %c0 = arith.constant 0 : index
    %c0_2 = arith.constant 0 : index
    %5 = vector.load %arg4[%c0, %c0_2] : memref<32x8xf32, #tpu.memory_space<vmem>>, vector<32x8xf32>
    %c0_3 = arith.constant 0 : index
    %c0_4 = arith.constant 0 : index
    %c0_5 = arith.constant 0 : index
    %6 = vector.load %arg2[%c0_3, %c0_4, %c0_5] : memref<1x8x128xf32, #tpu.memory_space<vmem>>, vector<1x8x128xf32>
    %7 = vector.shape_cast %6 : vector<1x8x128xf32> to vector<8x128xf32>
    %c0_6 = arith.constant 0 : index
    %c0_7 = arith.constant 0 : index
    %c0_8 = arith.constant 0 : index
    %8 = vector.load %arg3[%c0_6, %c0_7, %c0_8] : memref<1x8x128xf32, #tpu.memory_space<vmem>>, vector<1x8x128xf32>
    %9 = vector.shape_cast %8 : vector<1x8x128xf32> to vector<8x128xf32>
    %10 = vector.extract_strided_slice %9 {offsets = [0, 127], sizes = [8, 1], strides = [1, 1]} : vector<8x128xf32> to vector<8x1xf32>
    %c0_i32_9 = arith.constant 0 : i32
    %11 = arith.cmpi sgt, %arg1, %c0_i32_9 : i32
    %cst = arith.constant 0.000000e+00 : f32
    %12 = vector.broadcast %cst : f32 to vector<8x1xf32>
    %13 = arith.select %11, %10, %12 : vector<8x1xf32>
    %14 = tpu.concatenate %13, %7 in 1 : vector<8x1xf32>, vector<8x128xf32> -> vector<8x129xf32>
    %cst_10 = arith.constant dense<0.000000e+00> : vector<32x129xf32>
    %15 = tpu.matmul %5, %14, %cst_10 {dimension_numbers = #tpu.dot_dimension_numbers<[1], [0], [0], [1], [0, 0, 1, 1], [], []>} : vector<32x8xf32>, vector<8x129xf32>, vector<32x129xf32> -> vector<32x129xf32>
    %c0_11 = arith.constant 0 : index
    %c0_12 = arith.constant 0 : index
    %16 = vector.load %arg5[%c0_11, %c0_12] : memref<8x1xf32, #tpu.memory_space<vmem>>, vector<8x1xf32>
    %17 = vector.extract_strided_slice %15 {offsets = [0, 1], sizes = [8, 128], strides = [1, 1]} : vector<32x129xf32> to vector<8x128xf32>
    %18 = vector.extract_strided_slice %15 {offsets = [16, 0], sizes = [8, 128], strides = [1, 1]} : vector<32x129xf32> to vector<8x128xf32>
    %19 = arith.addf %17, %18 : vector<8x128xf32>
    %20 = vector.broadcast %16 : vector<8x1xf32> to vector<8x128xf32>
    %21 = arith.addf %19, %20 : vector<8x128xf32>
    %cst_13 = arith.constant -3.40282347E+38 : f32
    %cst_14 = arith.constant 3.40282347E+38 : f32
    %22 = vector.broadcast %cst_13 : f32 to vector<8x128xf32>
    %23 = arith.maximumf %22, %21 : vector<8x128xf32>
    %24 = vector.broadcast %cst_14 : f32 to vector<8x128xf32>
    %25 = arith.minimumf %24, %23 : vector<8x128xf32>
    %26 = arith.cmpf one, %25, %25 : vector<8x128xf32>
    %cst_15 = arith.constant 0.000000e+00 : f32
    %27 = vector.broadcast %cst_15 : f32 to vector<8x128xf32>
    %28 = arith.select %26, %27, %25 : vector<8x128xi1>, vector<8x128xf32>
    %c0_16 = arith.constant 0 : index
    %c0_17 = arith.constant 0 : index
    %c0_18 = arith.constant 0 : index
    %29 = vector.load %arg6[%c0_16, %c0_17, %c0_18] : memref<1x16x128xf32, #tpu.memory_space<vmem>>, vector<1x8x128xf32>
    %30 = vector.shape_cast %29 : vector<1x8x128xf32> to vector<8x128xf32>
    %31 = vector.shape_cast %28 : vector<8x128xf32> to vector<1x8x128xf32>
    tpu.vector_store %arg6[%c0_16, %c0_17, %c0_18], %31 {strides = array<i32>} : memref<1x16x128xf32, #tpu.memory_space<vmem>>, vector<1x8x128xf32>,
    %c0_i32_19 = arith.constant 0 : i32
    %32 = arith.cmpi slt, %arg1, %c0_i32_19 : i32
    %33 = arith.extui %32 : i1 to i32
    %c0_i32_20 = arith.constant 0 : i32
    %34 = arith.cmpi ne, %33, %c0_i32_20 : i32
    scf.if %34 {
      %c0_32 = arith.constant 0 : index
      %c0_33 = arith.constant 0 : index
      %59 = vector.load %arg7[%c0_32, %c0_33] : memref<16x1xf32, #tpu.memory_space<vmem>>, vector<8x1xf32>
      %cst_34 = arith.constant dense<0.000000e+00> : vector<8xf32>
      %60 = vector.multi_reduction <add>, %28, %cst_34 [1] : vector<8x128xf32> to vector<8xf32>
      %61 = vector.shape_cast %60 : vector<8xf32> to vector<8x1xf32>
      %62 = arith.addf %59, %61 : vector<8x1xf32>
      %c0_35 = arith.constant 0 : index
      %c0_36 = arith.constant 0 : index
      %63 = vector.load %arg7[%c0_35, %c0_36] : memref<16x1xf32, #tpu.memory_space<vmem>>, vector<8x1xf32>
      tpu.vector_store %arg7[%c0_35, %c0_36], %62 {strides = array<i32>} : memref<16x1xf32, #tpu.memory_space<vmem>>, vector<8x1xf32>,
      %c0_37 = arith.constant 0 : index
      %c0_38 = arith.constant 0 : index
      %64 = vector.load %arg8[%c0_37, %c0_38] : memref<16x1xf32, #tpu.memory_space<vmem>>, vector<8x1xf32>
      %65 = arith.mulf %28, %28 : vector<8x128xf32>
      %cst_39 = arith.constant dense<0.000000e+00> : vector<8xf32>
      %66 = vector.multi_reduction <add>, %65, %cst_39 [1] : vector<8x128xf32> to vector<8xf32>
      %67 = vector.shape_cast %66 : vector<8xf32> to vector<8x1xf32>
      %68 = arith.addf %64, %67 : vector<8x1xf32>
      %c0_40 = arith.constant 0 : index
      %c0_41 = arith.constant 0 : index
      %69 = vector.load %arg8[%c0_40, %c0_41] : memref<16x1xf32, #tpu.memory_space<vmem>>, vector<8x1xf32>
      tpu.vector_store %arg8[%c0_40, %c0_41], %68 {strides = array<i32>} : memref<16x1xf32, #tpu.memory_space<vmem>>, vector<8x1xf32>,
    } else {
    }
    %c0_i32_21 = arith.constant 0 : i32
    %35 = arith.cmpi sge, %arg1, %c0_i32_21 : i32
    %36 = arith.extui %35 : i1 to i32
    %c0_i32_22 = arith.constant 0 : i32
    %37 = arith.cmpi ne, %36, %c0_i32_22 : i32
    scf.if %37 {
      %c128_i32 = arith.constant 128 : i32
      %59 = arith.muli %arg1, %c128_i32 : i32
      %60 = tpu.iota {dimensions = array<i32: 1>} : vector<8x128xi32>
      %61 = vector.broadcast %59 : i32 to vector<8x128xi32>
      %62 = arith.addi %61, %60 : vector<8x128xi32>
      %c4_i32 = arith.constant 4 : i32
      %63 = vector.broadcast %c4_i32 : i32 to vector<8x128xi32>
      %64 = arith.cmpi slt, %62, %63 : vector<8x128xi32>
      %cst_32 = arith.constant 0.000000e+00 : f32
      %65 = vector.broadcast %cst_32 : f32 to vector<8x128xf32>
      %66 = arith.select %64, %28, %65 : vector<8x128xi1>, vector<8x128xf32>
      %c0_33 = arith.constant 0 : index
      %c0_34 = arith.constant 0 : index
      %67 = vector.load %arg7[%c0_33, %c0_34] : memref<16x1xf32, #tpu.memory_space<vmem>>, vector<8x1xf32>
      %cst_35 = arith.constant dense<0.000000e+00> : vector<8xf32>
      %68 = vector.multi_reduction <add>, %66, %cst_35 [1] : vector<8x128xf32> to vector<8xf32>
      %69 = vector.shape_cast %68 : vector<8xf32> to vector<8x1xf32>
      %70 = arith.addf %67, %69 : vector<8x1xf32>
      %c0_36 = arith.constant 0 : index
      %c0_37 = arith.constant 0 : index
      %71 = vector.load %arg7[%c0_36, %c0_37] : memref<16x1xf32, #tpu.memory_space<vmem>>, vector<8x1xf32>
      tpu.vector_store %arg7[%c0_36, %c0_37], %70 {strides = array<i32>} : memref<16x1xf32, #tpu.memory_space<vmem>>, vector<8x1xf32>,
      %c0_38 = arith.constant 0 : index
      %c0_39 = arith.constant 0 : index
      %72 = vector.load %arg8[%c0_38, %c0_39] : memref<16x1xf32, #tpu.memory_space<vmem>>, vector<8x1xf32>
      %73 = arith.mulf %66, %66 : vector<8x128xf32>
      %cst_40 = arith.constant dense<0.000000e+00> : vector<8xf32>
      %74 = vector.multi_reduction <add>, %73, %cst_40 [1] : vector<8x128xf32> to vector<8xf32>
      %75 = vector.shape_cast %74 : vector<8xf32> to vector<8x1xf32>
      %76 = arith.addf %72, %75 : vector<8x1xf32>
      %c0_41 = arith.constant 0 : index
      %c0_42 = arith.constant 0 : index
      %77 = vector.load %arg8[%c0_41, %c0_42] : memref<16x1xf32, #tpu.memory_space<vmem>>, vector<8x1xf32>
      tpu.vector_store %arg8[%c0_41, %c0_42], %76 {strides = array<i32>} : memref<16x1xf32, #tpu.memory_space<vmem>>, vector<8x1xf32>,
    } else {
    }
    %38 = vector.extract_strided_slice %15 {offsets = [8, 1], sizes = [8, 128], strides = [1, 1]} : vector<32x129xf32> to vector<8x128xf32>
    %39 = vector.extract_strided_slice %15 {offsets = [24, 0], sizes = [8, 128], strides = [1, 1]} : vector<32x129xf32> to vector<8x128xf32>
    %40 = arith.addf %38, %39 : vector<8x128xf32>
    %41 = vector.broadcast %16 : vector<8x1xf32> to vector<8x128xf32>
    %42 = arith.addf %40, %41 : vector<8x128xf32>
    %cst_23 = arith.constant -3.40282347E+38 : f32
    %cst_24 = arith.constant 3.40282347E+38 : f32
    %43 = vector.broadcast %cst_23 : f32 to vector<8x128xf32>
    %44 = arith.maximumf %43, %42 : vector<8x128xf32>
    %45 = vector.broadcast %cst_24 : f32 to vector<8x128xf32>
    %46 = arith.minimumf %45, %44 : vector<8x128xf32>
    %47 = arith.cmpf one, %46, %46 : vector<8x128xf32>
    %cst_25 = arith.constant 0.000000e+00 : f32
    %48 = vector.broadcast %cst_25 : f32 to vector<8x128xf32>
    %49 = arith.select %47, %48, %46 : vector<8x128xi1>, vector<8x128xf32>
    %c0_26 = arith.constant 0 : index
    %c8 = arith.constant 8 : index
    %c0_27 = arith.constant 0 : index
    %50 = vector.load %arg6[%c0_26, %c8, %c0_27] : memref<1x16x128xf32, #tpu.memory_space<vmem>>, vector<1x8x128xf32>
    %51 = vector.shape_cast %50 : vector<1x8x128xf32> to vector<8x128xf32>
    %52 = vector.shape_cast %49 : vector<8x128xf32> to vector<1x8x128xf32>
    tpu.vector_store %arg6[%c0_26, %c8, %c0_27], %52 {strides = array<i32>} : memref<1x16x128xf32, #tpu.memory_space<vmem>>, vector<1x8x128xf32>,
    %c0_i32_28 = arith.constant 0 : i32
    %53 = arith.cmpi slt, %arg1, %c0_i32_28 : i32
    %54 = arith.extui %53 : i1 to i32
    %c0_i32_29 = arith.constant 0 : i32
    %55 = arith.cmpi ne, %54, %c0_i32_29 : i32
    scf.if %55 {
      %c8_32 = arith.constant 8 : index
      %c0_33 = arith.constant 0 : index
      %59 = vector.load %arg7[%c8_32, %c0_33] : memref<16x1xf32, #tpu.memory_space<vmem>>, vector<8x1xf32>
      %cst_34 = arith.constant dense<0.000000e+00> : vector<8xf32>
      %60 = vector.multi_reduction <add>, %49, %cst_34 [1] : vector<8x128xf32> to vector<8xf32>
      %61 = vector.shape_cast %60 : vector<8xf32> to vector<8x1xf32>
      %62 = arith.addf %59, %61 : vector<8x1xf32>
      %c8_35 = arith.constant 8 : index
      %c0_36 = arith.constant 0 : index
      %63 = vector.load %arg7[%c8_35, %c0_36] : memref<16x1xf32, #tpu.memory_space<vmem>>, vector<8x1xf32>
      tpu.vector_store %arg7[%c8_35, %c0_36], %62 {strides = array<i32>} : memref<16x1xf32, #tpu.memory_space<vmem>>, vector<8x1xf32>,
      %c8_37 = arith.constant 8 : index
      %c0_38 = arith.constant 0 : index
      %64 = vector.load %arg8[%c8_37, %c0_38] : memref<16x1xf32, #tpu.memory_space<vmem>>, vector<8x1xf32>
      %65 = arith.mulf %49, %49 : vector<8x128xf32>
      %cst_39 = arith.constant dense<0.000000e+00> : vector<8xf32>
      %66 = vector.multi_reduction <add>, %65, %cst_39 [1] : vector<8x128xf32> to vector<8xf32>
      %67 = vector.shape_cast %66 : vector<8xf32> to vector<8x1xf32>
      %68 = arith.addf %64, %67 : vector<8x1xf32>
      %c8_40 = arith.constant 8 : index
      %c0_41 = arith.constant 0 : index
      %69 = vector.load %arg8[%c8_40, %c0_41] : memref<16x1xf32, #tpu.memory_space<vmem>>, vector<8x1xf32>
      tpu.vector_store %arg8[%c8_40, %c0_41], %68 {strides = array<i32>} : memref<16x1xf32, #tpu.memory_space<vmem>>, vector<8x1xf32>,
    } else {
    }
    %c0_i32_30 = arith.constant 0 : i32
    %56 = arith.cmpi sge, %arg1, %c0_i32_30 : i32
    %57 = arith.extui %56 : i1 to i32
    %c0_i32_31 = arith.constant 0 : i32
    %58 = arith.cmpi ne, %57, %c0_i32_31 : i32
    scf.if %58 {
      %c128_i32 = arith.constant 128 : i32
      %59 = arith.muli %arg1, %c128_i32 : i32
      %60 = tpu.iota {dimensions = array<i32: 1>} : vector<8x128xi32>
      %61 = vector.broadcast %59 : i32 to vector<8x128xi32>
      %62 = arith.addi %61, %60 : vector<8x128xi32>
      %c4_i32 = arith.constant 4 : i32
      %63 = vector.broadcast %c4_i32 : i32 to vector<8x128xi32>
      %64 = arith.cmpi slt, %62, %63 : vector<8x128xi32>
      %cst_32 = arith.constant 0.000000e+00 : f32
      %65 = vector.broadcast %cst_32 : f32 to vector<8x128xf32>
      %66 = arith.select %64, %49, %65 : vector<8x128xi1>, vector<8x128xf32>
      %c8_33 = arith.constant 8 : index
      %c0_34 = arith.constant 0 : index
      %67 = vector.load %arg7[%c8_33, %c0_34] : memref<16x1xf32, #tpu.memory_space<vmem>>, vector<8x1xf32>
      %cst_35 = arith.constant dense<0.000000e+00> : vector<8xf32>
      %68 = vector.multi_reduction <add>, %66, %cst_35 [1] : vector<8x128xf32> to vector<8xf32>
      %69 = vector.shape_cast %68 : vector<8xf32> to vector<8x1xf32>
      %70 = arith.addf %67, %69 : vector<8x1xf32>
      %c8_36 = arith.constant 8 : index
      %c0_37 = arith.constant 0 : index
      %71 = vector.load %arg7[%c8_36, %c0_37] : memref<16x1xf32, #tpu.memory_space<vmem>>, vector<8x1xf32>
      tpu.vector_store %arg7[%c8_36, %c0_37], %70 {strides = array<i32>} : memref<16x1xf32, #tpu.memory_space<vmem>>, vector<8x1xf32>,
      %c8_38 = arith.constant 8 : index
      %c0_39 = arith.constant 0 : index
      %72 = vector.load %arg8[%c8_38, %c0_39] : memref<16x1xf32, #tpu.memory_space<vmem>>, vector<8x1xf32>
      %73 = arith.mulf %66, %66 : vector<8x128xf32>
      %cst_40 = arith.constant dense<0.000000e+00> : vector<8xf32>
      %74 = vector.multi_reduction <add>, %73, %cst_40 [1] : vector<8x128xf32> to vector<8xf32>
      %75 = vector.shape_cast %74 : vector<8xf32> to vector<8x1xf32>
      %76 = arith.addf %72, %75 : vector<8x1xf32>
      %c8_41 = arith.constant 8 : index
      %c0_42 = arith.constant 0 : index
      %77 = vector.load %arg8[%c8_41, %c0_42] : memref<16x1xf32, #tpu.memory_space<vmem>>, vector<8x1xf32>
      tpu.vector_store %arg8[%c8_41, %c0_42], %76 {strides = array<i32>} : memref<16x1xf32, #tpu.memory_space<vmem>>, vector<8x1xf32>,
    } else {
    }
    return
  }
  func.func @transform_0(%arg0: i32, %arg1: i32) -> (i32, i32, i32) {
    %c0_i32 = arith.constant 0 : i32
    %c0_i32_0 = arith.constant 0 : i32
    return %arg0, %c0_i32, %arg1 : i32, i32, i32
  }
  func.func @transform_1(%arg0: i32, %arg1: i32) -> (i32, i32, i32) {
    %c1_i32 = arith.constant 1 : i32
    %0 = arith.muli %arg1, %c1_i32 : i32
    %c1_i32_0 = arith.constant 1 : i32
    %1 = arith.subi %0, %c1_i32_0 : i32
    %c0_i32 = arith.constant 0 : i32
    %2 = arith.maxsi %1, %c0_i32 : i32
    %c0_i32_1 = arith.constant 0 : i32
    %c0_i32_2 = arith.constant 0 : i32
    return %arg0, %c0_i32_1, %2 : i32, i32, i32
  }
  func.func @transform_2(%arg0: i32, %arg1: i32) -> (i32, i32) {
    %c0_i32 = arith.constant 0 : i32
    %c0_i32_0 = arith.constant 0 : i32
    %c0_i32_1 = arith.constant 0 : i32
    return %c0_i32, %c0_i32_0 : i32, i32
  }
  func.func @transform_3(%arg0: i32, %arg1: i32) -> (i32, i32) {
    %c0_i32 = arith.constant 0 : i32
    %c0_i32_0 = arith.constant 0 : i32
    %c0_i32_1 = arith.constant 0 : i32
    return %c0_i32, %c0_i32_0 : i32, i32
  }
  func.func @transform_4(%arg0: i32, %arg1: i32) -> (i32, i32, i32) {
    %c0_i32 = arith.constant 0 : i32
    %c0_i32_0 = arith.constant 0 : i32
    return %arg0, %c0_i32, %arg1 : i32, i32, i32
  }
  func.func @transform_5(%arg0: i32, %arg1: i32) -> (i32, i32) {
    %c0_i32 = arith.constant 0 : i32
    %c0_i32_0 = arith.constant 0 : i32
    %c0_i32_1 = arith.constant 0 : i32
    return %c0_i32, %c0_i32_0 : i32, i32
  }
  func.func @transform_6(%arg0: i32, %arg1: i32) -> (i32, i32) {
    %c0_i32 = arith.constant 0 : i32
    %c0_i32_0 = arith.constant 0 : i32
    %c0_i32_1 = arith.constant 0 : i32
    return %c0_i32, %c0_i32_0 : i32, i32
  }
}

module attributes {stable_mosaic.version = 11 : i64} {
  func.func @bn_act_kernel(%arg0: i32, %arg1: i32, %arg2: memref<1x8x256xf32, #tpu.memory_space<vmem>>, %arg3: memref<8x1xf32, #tpu.memory_space<vmem>>, %arg4: memref<8x1xf32, #tpu.memory_space<vmem>>, %arg5: memref<8x1xf32, #tpu.memory_space<vmem>>, %arg6: memref<8x1xf32, #tpu.memory_space<vmem>>, %arg7: memref<1x8x256xf32, #tpu.memory_space<vmem>>) attributes {dimension_semantics = [#tpu.dimension_semantics<parallel>, #tpu.dimension_semantics<parallel>], iteration_bounds = array<i64: 2, 1>, scalar_prefetch = 0 : i64, scratch_operands = 0 : i64, tpu.core_type = #tpu.core_type<tc>, window_params = [{transform_indices = @transform_0, window_bounds = array<i64: 1, 8, 256>}, {pipeline_mode = #tpu.pipeline_mode<synchronous>, transform_indices = @transform_1, window_bounds = array<i64: 8, 1>}, {pipeline_mode = #tpu.pipeline_mode<synchronous>, transform_indices = @transform_2, window_bounds = array<i64: 8, 1>}, {pipeline_mode = #tpu.pipeline_mode<synchronous>, transform_indices = @transform_3, window_bounds = array<i64: 8, 1>}, {pipeline_mode = #tpu.pipeline_mode<synchronous>, transform_indices = @transform_4, window_bounds = array<i64: 8, 1>}, {transform_indices = @transform_5, window_bounds = array<i64: 1, 8, 256>}]} {
    %c0 = arith.constant 0 : index
    %c0_0 = arith.constant 0 : index
    %c0_1 = arith.constant 0 : index
    %0 = vector.load %arg2[%c0, %c0_0, %c0_1] : memref<1x8x256xf32, #tpu.memory_space<vmem>>, vector<1x8x256xf32>
    %1 = vector.shape_cast %0 : vector<1x8x256xf32> to vector<8x256xf32>
    %c0_2 = arith.constant 0 : index
    %c0_3 = arith.constant 0 : index
    %2 = vector.load %arg3[%c0_2, %c0_3] : memref<8x1xf32, #tpu.memory_space<vmem>>, vector<8x1xf32>
    %cst = arith.constant 6.250000e-02 : f32
    %3 = vector.broadcast %cst : f32 to vector<8x1xf32>
    %4 = arith.mulf %2, %3 : vector<8x1xf32>
    %c0_4 = arith.constant 0 : index
    %c0_5 = arith.constant 0 : index
    %5 = vector.load %arg4[%c0_4, %c0_5] : memref<8x1xf32, #tpu.memory_space<vmem>>, vector<8x1xf32>
    %cst_6 = arith.constant 6.250000e-02 : f32
    %6 = vector.broadcast %cst_6 : f32 to vector<8x1xf32>
    %7 = arith.mulf %5, %6 : vector<8x1xf32>
    %8 = arith.mulf %4, %4 : vector<8x1xf32>
    %9 = arith.subf %7, %8 : vector<8x1xf32>
    %cst_7 = arith.constant 0.000000e+00 : f32
    %10 = vector.broadcast %cst_7 : f32 to vector<8x1xf32>
    %11 = arith.maximumf %9, %10 : vector<8x1xf32>
    %c0_8 = arith.constant 0 : index
    %c0_9 = arith.constant 0 : index
    %12 = vector.load %arg5[%c0_8, %c0_9] : memref<8x1xf32, #tpu.memory_space<vmem>>, vector<8x1xf32>
    %cst_10 = arith.constant 9.99999974E-6 : f32
    %13 = vector.broadcast %cst_10 : f32 to vector<8x1xf32>
    %14 = arith.addf %11, %13 : vector<8x1xf32>
    %15 = math.rsqrt %14 : vector<8x1xf32>
    %16 = arith.mulf %12, %15 : vector<8x1xf32>
    %17 = vector.broadcast %4 : vector<8x1xf32> to vector<8x256xf32>
    %18 = arith.subf %1, %17 : vector<8x256xf32>
    %19 = vector.broadcast %16 : vector<8x1xf32> to vector<8x256xf32>
    %20 = arith.mulf %18, %19 : vector<8x256xf32>
    %c0_11 = arith.constant 0 : index
    %c0_12 = arith.constant 0 : index
    %21 = vector.load %arg6[%c0_11, %c0_12] : memref<8x1xf32, #tpu.memory_space<vmem>>, vector<8x1xf32>
    %22 = vector.broadcast %21 : vector<8x1xf32> to vector<8x256xf32>
    %23 = arith.addf %20, %22 : vector<8x256xf32>
    %cst_13 = arith.constant -3.40282347E+38 : f32
    %cst_14 = arith.constant 3.40282347E+38 : f32
    %24 = vector.broadcast %cst_13 : f32 to vector<8x256xf32>
    %25 = arith.maximumf %24, %23 : vector<8x256xf32>
    %26 = vector.broadcast %cst_14 : f32 to vector<8x256xf32>
    %27 = arith.minimumf %26, %25 : vector<8x256xf32>
    %28 = arith.cmpf one, %27, %27 : vector<8x256xf32>
    %cst_15 = arith.constant 0.000000e+00 : f32
    %29 = vector.broadcast %cst_15 : f32 to vector<8x256xf32>
    %30 = arith.select %28, %29, %27 : vector<8x256xi1>, vector<8x256xf32>
    %cst_16 = arith.constant 0.000000e+00 : f32
    %31 = vector.broadcast %cst_16 : f32 to vector<8x256xf32>
    %32 = arith.cmpf oge, %30, %31 : vector<8x256xf32>
    %cst_17 = arith.constant 0.00999999977 : f32
    %33 = vector.broadcast %cst_17 : f32 to vector<8x256xf32>
    %34 = arith.mulf %33, %30 : vector<8x256xf32>
    %35 = arith.select %32, %30, %34 : vector<8x256xi1>, vector<8x256xf32>
    %c0_i32 = arith.constant 0 : i32
    %36 = arith.cmpi slt, %arg1, %c0_i32 : i32
    %37 = arith.extui %36 : i1 to i32
    %c0_i32_18 = arith.constant 0 : i32
    %38 = arith.cmpi ne, %37, %c0_i32_18 : i32
    scf.if %38 {
      %c0_21 = arith.constant 0 : index
      %c0_22 = arith.constant 0 : index
      %c0_23 = arith.constant 0 : index
      %42 = vector.load %arg7[%c0_21, %c0_22, %c0_23] : memref<1x8x256xf32, #tpu.memory_space<vmem>>, vector<1x8x256xf32>
      %43 = vector.shape_cast %42 : vector<1x8x256xf32> to vector<8x256xf32>
      %44 = vector.shape_cast %35 : vector<8x256xf32> to vector<1x8x256xf32>
      tpu.vector_store %arg7[%c0_21, %c0_22, %c0_23], %44 {strides = array<i32>} : memref<1x8x256xf32, #tpu.memory_space<vmem>>, vector<1x8x256xf32>,
    } else {
    }
    %c0_i32_19 = arith.constant 0 : i32
    %39 = arith.cmpi sge, %arg1, %c0_i32_19 : i32
    %40 = arith.extui %39 : i1 to i32
    %c0_i32_20 = arith.constant 0 : i32
    %41 = arith.cmpi ne, %40, %c0_i32_20 : i32
    scf.if %41 {
      %c256_i32 = arith.constant 256 : i32
      %42 = arith.muli %arg1, %c256_i32 : i32
      %43 = tpu.iota {dimensions = array<i32: 1>} : vector<8x256xi32>
      %44 = vector.broadcast %42 : i32 to vector<8x256xi32>
      %45 = arith.addi %44, %43 : vector<8x256xi32>
      %c8_i32 = arith.constant 8 : i32
      %46 = vector.broadcast %c8_i32 : i32 to vector<8x256xi32>
      %47 = arith.cmpi slt, %45, %46 : vector<8x256xi32>
      %cst_21 = arith.constant 0.000000e+00 : f32
      %48 = vector.broadcast %cst_21 : f32 to vector<8x256xf32>
      %49 = arith.select %47, %35, %48 : vector<8x256xi1>, vector<8x256xf32>
      %c0_22 = arith.constant 0 : index
      %c0_23 = arith.constant 0 : index
      %c0_24 = arith.constant 0 : index
      %50 = vector.load %arg7[%c0_22, %c0_23, %c0_24] : memref<1x8x256xf32, #tpu.memory_space<vmem>>, vector<1x8x256xf32>
      %51 = vector.shape_cast %50 : vector<1x8x256xf32> to vector<8x256xf32>
      %52 = vector.shape_cast %49 : vector<8x256xf32> to vector<1x8x256xf32>
      tpu.vector_store %arg7[%c0_22, %c0_23, %c0_24], %52 {strides = array<i32>} : memref<1x8x256xf32, #tpu.memory_space<vmem>>, vector<1x8x256xf32>,
    } else {
    }
    return
  }
  func.func @transform_0(%arg0: i32, %arg1: i32) -> (i32, i32, i32) {
    %c0_i32 = arith.constant 0 : i32
    %c0_i32_0 = arith.constant 0 : i32
    return %arg0, %c0_i32, %arg1 : i32, i32, i32
  }
  func.func @transform_1(%arg0: i32, %arg1: i32) -> (i32, i32) {
    %c0_i32 = arith.constant 0 : i32
    %c0_i32_0 = arith.constant 0 : i32
    %c0_i32_1 = arith.constant 0 : i32
    return %c0_i32, %c0_i32_0 : i32, i32
  }
  func.func @transform_2(%arg0: i32, %arg1: i32) -> (i32, i32) {
    %c0_i32 = arith.constant 0 : i32
    %c0_i32_0 = arith.constant 0 : i32
    %c0_i32_1 = arith.constant 0 : i32
    return %c0_i32, %c0_i32_0 : i32, i32
  }
  func.func @transform_3(%arg0: i32, %arg1: i32) -> (i32, i32) {
    %c0_i32 = arith.constant 0 : i32
    %c0_i32_0 = arith.constant 0 : i32
    %c0_i32_1 = arith.constant 0 : i32
    return %c0_i32, %c0_i32_0 : i32, i32
  }
  func.func @transform_4(%arg0: i32, %arg1: i32) -> (i32, i32) {
    %c0_i32 = arith.constant 0 : i32
    %c0_i32_0 = arith.constant 0 : i32
    %c0_i32_1 = arith.constant 0 : i32
    return %c0_i32, %c0_i32_0 : i32, i32
  }
  func.func @transform_5(%arg0: i32, %arg1: i32) -> (i32, i32, i32) {
    %c0_i32 = arith.constant 0 : i32
    %c0_i32_0 = arith.constant 0 : i32
    return %arg0, %c0_i32, %arg1 : i32, i32, i32
  }
}

module attributes {stable_mosaic.version = 11 : i64} {
  func.func @conv_pass1_kernel(%arg0: i32, %arg1: i32, %arg2: memref<1x8x128xf32, #tpu.memory_space<vmem>>, %arg3: memref<8x8xf32, #tpu.memory_space<vmem>>, %arg4: memref<8x1xf32, #tpu.memory_space<vmem>>, %arg5: memref<1x8x128xf32, #tpu.memory_space<vmem>>, %arg6: memref<8x1xf32, #tpu.memory_space<vmem>>, %arg7: memref<8x1xf32, #tpu.memory_space<vmem>>) attributes {dimension_semantics = [#tpu.dimension_semantics<arbitrary>, #tpu.dimension_semantics<arbitrary>], iteration_bounds = array<i64: 2, 1>, scalar_prefetch = 0 : i64, scratch_operands = 0 : i64, tpu.core_type = #tpu.core_type<tc>, window_params = [{transform_indices = @transform_0, window_bounds = array<i64: 1, 8, 128>}, {pipeline_mode = #tpu.pipeline_mode<synchronous>, transform_indices = @transform_1, window_bounds = array<i64: 8, 8>}, {pipeline_mode = #tpu.pipeline_mode<synchronous>, transform_indices = @transform_2, window_bounds = array<i64: 8, 1>}, {transform_indices = @transform_3, window_bounds = array<i64: 1, 8, 128>}, {pipeline_mode = #tpu.pipeline_mode<synchronous>, transform_indices = @transform_4, window_bounds = array<i64: 8, 1>}, {pipeline_mode = #tpu.pipeline_mode<synchronous>, transform_indices = @transform_5, window_bounds = array<i64: 8, 1>}]} {
    %c0_i32 = arith.constant 0 : i32
    %0 = arith.cmpi eq, %arg0, %c0_i32 : i32
    %c0_i32_0 = arith.constant 0 : i32
    %1 = arith.cmpi eq, %arg1, %c0_i32_0 : i32
    %2 = arith.andi %0, %1 : i1
    %3 = arith.extui %2 : i1 to i32
    %c0_i32_1 = arith.constant 0 : i32
    %4 = arith.cmpi ne, %3, %c0_i32_1 : i32
    scf.if %4 {
      %cst_18 = arith.constant 0.000000e+00 : f32
      %28 = vector.broadcast %cst_18 : f32 to vector<8x1xf32>
      %c0_19 = arith.constant 0 : index
      %c0_20 = arith.constant 0 : index
      %29 = vector.load %arg6[%c0_19, %c0_20] : memref<8x1xf32, #tpu.memory_space<vmem>>, vector<8x1xf32>
      tpu.vector_store %arg6[%c0_19, %c0_20], %28 {strides = array<i32>} : memref<8x1xf32, #tpu.memory_space<vmem>>, vector<8x1xf32>,
      %cst_21 = arith.constant 0.000000e+00 : f32
      %30 = vector.broadcast %cst_21 : f32 to vector<8x1xf32>
      %c0_22 = arith.constant 0 : index
      %c0_23 = arith.constant 0 : index
      %31 = vector.load %arg7[%c0_22, %c0_23] : memref<8x1xf32, #tpu.memory_space<vmem>>, vector<8x1xf32>
      tpu.vector_store %arg7[%c0_22, %c0_23], %30 {strides = array<i32>} : memref<8x1xf32, #tpu.memory_space<vmem>>, vector<8x1xf32>,
    } else {
    }
    %c0 = arith.constant 0 : index
    %c0_2 = arith.constant 0 : index
    %c0_3 = arith.constant 0 : index
    %5 = vector.load %arg2[%c0, %c0_2, %c0_3] : memref<1x8x128xf32, #tpu.memory_space<vmem>>, vector<1x8x128xf32>
    %6 = vector.shape_cast %5 : vector<1x8x128xf32> to vector<8x128xf32>
    %c0_4 = arith.constant 0 : index
    %c0_5 = arith.constant 0 : index
    %7 = vector.load %arg3[%c0_4, %c0_5] : memref<8x8xf32, #tpu.memory_space<vmem>>, vector<8x8xf32>
    %cst = arith.constant dense<0.000000e+00> : vector<8x128xf32>
    %8 = tpu.matmul %7, %6, %cst {dimension_numbers = #tpu.dot_dimension_numbers<[1], [0], [0], [1], [0, 0, 1, 1], [], []>} : vector<8x8xf32>, vector<8x128xf32>, vector<8x128xf32> -> vector<8x128xf32>
    %c0_6 = arith.constant 0 : index
    %c0_7 = arith.constant 0 : index
    %9 = vector.load %arg4[%c0_6, %c0_7] : memref<8x1xf32, #tpu.memory_space<vmem>>, vector<8x1xf32>
    %10 = vector.broadcast %9 : vector<8x1xf32> to vector<8x128xf32>
    %11 = arith.addf %8, %10 : vector<8x128xf32>
    %cst_8 = arith.constant -3.40282347E+38 : f32
    %cst_9 = arith.constant 3.40282347E+38 : f32
    %12 = vector.broadcast %cst_8 : f32 to vector<8x128xf32>
    %13 = arith.maximumf %12, %11 : vector<8x128xf32>
    %14 = vector.broadcast %cst_9 : f32 to vector<8x128xf32>
    %15 = arith.minimumf %14, %13 : vector<8x128xf32>
    %16 = arith.cmpf one, %15, %15 : vector<8x128xf32>
    %cst_10 = arith.constant 0.000000e+00 : f32
    %17 = vector.broadcast %cst_10 : f32 to vector<8x128xf32>
    %18 = arith.select %16, %17, %15 : vector<8x128xi1>, vector<8x128xf32>
    %c0_11 = arith.constant 0 : index
    %c0_12 = arith.constant 0 : index
    %c0_13 = arith.constant 0 : index
    %19 = vector.load %arg5[%c0_11, %c0_12, %c0_13] : memref<1x8x128xf32, #tpu.memory_space<vmem>>, vector<1x8x128xf32>
    %20 = vector.shape_cast %19 : vector<1x8x128xf32> to vector<8x128xf32>
    %21 = vector.shape_cast %18 : vector<8x128xf32> to vector<1x8x128xf32>
    tpu.vector_store %arg5[%c0_11, %c0_12, %c0_13], %21 {strides = array<i32>} : memref<1x8x128xf32, #tpu.memory_space<vmem>>, vector<1x8x128xf32>,
    %c0_i32_14 = arith.constant 0 : i32
    %22 = arith.cmpi slt, %arg1, %c0_i32_14 : i32
    %23 = arith.extui %22 : i1 to i32
    %c0_i32_15 = arith.constant 0 : i32
    %24 = arith.cmpi ne, %23, %c0_i32_15 : i32
    scf.if %24 {
      %c0_18 = arith.constant 0 : index
      %c0_19 = arith.constant 0 : index
      %28 = vector.load %arg6[%c0_18, %c0_19] : memref<8x1xf32, #tpu.memory_space<vmem>>, vector<8x1xf32>
      %cst_20 = arith.constant dense<0.000000e+00> : vector<8xf32>
      %29 = vector.multi_reduction <add>, %18, %cst_20 [1] : vector<8x128xf32> to vector<8xf32>
      %30 = vector.shape_cast %29 : vector<8xf32> to vector<8x1xf32>
      %31 = arith.addf %28, %30 : vector<8x1xf32>
      %c0_21 = arith.constant 0 : index
      %c0_22 = arith.constant 0 : index
      %32 = vector.load %arg6[%c0_21, %c0_22] : memref<8x1xf32, #tpu.memory_space<vmem>>, vector<8x1xf32>
      tpu.vector_store %arg6[%c0_21, %c0_22], %31 {strides = array<i32>} : memref<8x1xf32, #tpu.memory_space<vmem>>, vector<8x1xf32>,
      %c0_23 = arith.constant 0 : index
      %c0_24 = arith.constant 0 : index
      %33 = vector.load %arg7[%c0_23, %c0_24] : memref<8x1xf32, #tpu.memory_space<vmem>>, vector<8x1xf32>
      %34 = arith.mulf %18, %18 : vector<8x128xf32>
      %cst_25 = arith.constant dense<0.000000e+00> : vector<8xf32>
      %35 = vector.multi_reduction <add>, %34, %cst_25 [1] : vector<8x128xf32> to vector<8xf32>
      %36 = vector.shape_cast %35 : vector<8xf32> to vector<8x1xf32>
      %37 = arith.addf %33, %36 : vector<8x1xf32>
      %c0_26 = arith.constant 0 : index
      %c0_27 = arith.constant 0 : index
      %38 = vector.load %arg7[%c0_26, %c0_27] : memref<8x1xf32, #tpu.memory_space<vmem>>, vector<8x1xf32>
      tpu.vector_store %arg7[%c0_26, %c0_27], %37 {strides = array<i32>} : memref<8x1xf32, #tpu.memory_space<vmem>>, vector<8x1xf32>,
    } else {
    }
    %c0_i32_16 = arith.constant 0 : i32
    %25 = arith.cmpi sge, %arg1, %c0_i32_16 : i32
    %26 = arith.extui %25 : i1 to i32
    %c0_i32_17 = arith.constant 0 : i32
    %27 = arith.cmpi ne, %26, %c0_i32_17 : i32
    scf.if %27 {
      %c128_i32 = arith.constant 128 : i32
      %28 = arith.muli %arg1, %c128_i32 : i32
      %29 = tpu.iota {dimensions = array<i32: 1>} : vector<8x128xi32>
      %30 = vector.broadcast %28 : i32 to vector<8x128xi32>
      %31 = arith.addi %30, %29 : vector<8x128xi32>
      %c8_i32 = arith.constant 8 : i32
      %32 = vector.broadcast %c8_i32 : i32 to vector<8x128xi32>
      %33 = arith.cmpi slt, %31, %32 : vector<8x128xi32>
      %cst_18 = arith.constant 0.000000e+00 : f32
      %34 = vector.broadcast %cst_18 : f32 to vector<8x128xf32>
      %35 = arith.select %33, %18, %34 : vector<8x128xi1>, vector<8x128xf32>
      %c0_19 = arith.constant 0 : index
      %c0_20 = arith.constant 0 : index
      %36 = vector.load %arg6[%c0_19, %c0_20] : memref<8x1xf32, #tpu.memory_space<vmem>>, vector<8x1xf32>
      %cst_21 = arith.constant dense<0.000000e+00> : vector<8xf32>
      %37 = vector.multi_reduction <add>, %35, %cst_21 [1] : vector<8x128xf32> to vector<8xf32>
      %38 = vector.shape_cast %37 : vector<8xf32> to vector<8x1xf32>
      %39 = arith.addf %36, %38 : vector<8x1xf32>
      %c0_22 = arith.constant 0 : index
      %c0_23 = arith.constant 0 : index
      %40 = vector.load %arg6[%c0_22, %c0_23] : memref<8x1xf32, #tpu.memory_space<vmem>>, vector<8x1xf32>
      tpu.vector_store %arg6[%c0_22, %c0_23], %39 {strides = array<i32>} : memref<8x1xf32, #tpu.memory_space<vmem>>, vector<8x1xf32>,
      %c0_24 = arith.constant 0 : index
      %c0_25 = arith.constant 0 : index
      %41 = vector.load %arg7[%c0_24, %c0_25] : memref<8x1xf32, #tpu.memory_space<vmem>>, vector<8x1xf32>
      %42 = arith.mulf %35, %35 : vector<8x128xf32>
      %cst_26 = arith.constant dense<0.000000e+00> : vector<8xf32>
      %43 = vector.multi_reduction <add>, %42, %cst_26 [1] : vector<8x128xf32> to vector<8xf32>
      %44 = vector.shape_cast %43 : vector<8xf32> to vector<8x1xf32>
      %45 = arith.addf %41, %44 : vector<8x1xf32>
      %c0_27 = arith.constant 0 : index
      %c0_28 = arith.constant 0 : index
      %46 = vector.load %arg7[%c0_27, %c0_28] : memref<8x1xf32, #tpu.memory_space<vmem>>, vector<8x1xf32>
      tpu.vector_store %arg7[%c0_27, %c0_28], %45 {strides = array<i32>} : memref<8x1xf32, #tpu.memory_space<vmem>>, vector<8x1xf32>,
    } else {
    }
    return
  }
  func.func @transform_0(%arg0: i32, %arg1: i32) -> (i32, i32, i32) {
    %c0_i32 = arith.constant 0 : i32
    %c0_i32_0 = arith.constant 0 : i32
    return %arg0, %c0_i32, %arg1 : i32, i32, i32
  }
  func.func @transform_1(%arg0: i32, %arg1: i32) -> (i32, i32) {
    %c0_i32 = arith.constant 0 : i32
    %c0_i32_0 = arith.constant 0 : i32
    %c0_i32_1 = arith.constant 0 : i32
    return %c0_i32, %c0_i32_0 : i32, i32
  }
  func.func @transform_2(%arg0: i32, %arg1: i32) -> (i32, i32) {
    %c0_i32 = arith.constant 0 : i32
    %c0_i32_0 = arith.constant 0 : i32
    %c0_i32_1 = arith.constant 0 : i32
    return %c0_i32, %c0_i32_0 : i32, i32
  }
  func.func @transform_3(%arg0: i32, %arg1: i32) -> (i32, i32, i32) {
    %c0_i32 = arith.constant 0 : i32
    %c0_i32_0 = arith.constant 0 : i32
    return %arg0, %c0_i32, %arg1 : i32, i32, i32
  }
  func.func @transform_4(%arg0: i32, %arg1: i32) -> (i32, i32) {
    %c0_i32 = arith.constant 0 : i32
    %c0_i32_0 = arith.constant 0 : i32
    %c0_i32_1 = arith.constant 0 : i32
    return %c0_i32, %c0_i32_0 : i32, i32
  }
  func.func @transform_5(%arg0: i32, %arg1: i32) -> (i32, i32) {
    %c0_i32 = arith.constant 0 : i32
    %c0_i32_0 = arith.constant 0 : i32
    %c0_i32_1 = arith.constant 0 : i32
    return %c0_i32, %c0_i32_0 : i32, i32
  }
}

module attributes {stable_mosaic.version = 11 : i64} {
  func.func @bn_tanh_gate_kernel(%arg0: i32, %arg1: i32, %arg2: memref<1x8x128xf32, #tpu.memory_space<vmem>>, %arg3: memref<1x8x128xf32, #tpu.memory_space<vmem>>, %arg4: memref<8x1xf32, #tpu.memory_space<vmem>>, %arg5: memref<8x1xf32, #tpu.memory_space<vmem>>, %arg6: memref<8x1xf32, #tpu.memory_space<vmem>>, %arg7: memref<8x1xf32, #tpu.memory_space<vmem>>, %arg8: memref<1x8x128xf32, #tpu.memory_space<vmem>>) attributes {dimension_semantics = [#tpu.dimension_semantics<parallel>, #tpu.dimension_semantics<parallel>], iteration_bounds = array<i64: 2, 1>, scalar_prefetch = 0 : i64, scratch_operands = 0 : i64, tpu.core_type = #tpu.core_type<tc>, window_params = [{transform_indices = @transform_0, window_bounds = array<i64: 1, 8, 128>}, {transform_indices = @transform_1, window_bounds = array<i64: 1, 8, 128>}, {pipeline_mode = #tpu.pipeline_mode<synchronous>, transform_indices = @transform_2, window_bounds = array<i64: 8, 1>}, {pipeline_mode = #tpu.pipeline_mode<synchronous>, transform_indices = @transform_3, window_bounds = array<i64: 8, 1>}, {pipeline_mode = #tpu.pipeline_mode<synchronous>, transform_indices = @transform_4, window_bounds = array<i64: 8, 1>}, {pipeline_mode = #tpu.pipeline_mode<synchronous>, transform_indices = @transform_5, window_bounds = array<i64: 8, 1>}, {transform_indices = @transform_6, window_bounds = array<i64: 1, 8, 128>}]} {
    %c0 = arith.constant 0 : index
    %c0_0 = arith.constant 0 : index
    %c0_1 = arith.constant 0 : index
    %0 = vector.load %arg2[%c0, %c0_0, %c0_1] : memref<1x8x128xf32, #tpu.memory_space<vmem>>, vector<1x8x128xf32>
    %1 = vector.shape_cast %0 : vector<1x8x128xf32> to vector<8x128xf32>
    %c0_2 = arith.constant 0 : index
    %c0_3 = arith.constant 0 : index
    %2 = vector.load %arg4[%c0_2, %c0_3] : memref<8x1xf32, #tpu.memory_space<vmem>>, vector<8x1xf32>
    %cst = arith.constant 6.250000e-02 : f32
    %3 = vector.broadcast %cst : f32 to vector<8x1xf32>
    %4 = arith.mulf %2, %3 : vector<8x1xf32>
    %c0_4 = arith.constant 0 : index
    %c0_5 = arith.constant 0 : index
    %5 = vector.load %arg5[%c0_4, %c0_5] : memref<8x1xf32, #tpu.memory_space<vmem>>, vector<8x1xf32>
    %cst_6 = arith.constant 6.250000e-02 : f32
    %6 = vector.broadcast %cst_6 : f32 to vector<8x1xf32>
    %7 = arith.mulf %5, %6 : vector<8x1xf32>
    %8 = arith.mulf %4, %4 : vector<8x1xf32>
    %9 = arith.subf %7, %8 : vector<8x1xf32>
    %cst_7 = arith.constant 0.000000e+00 : f32
    %10 = vector.broadcast %cst_7 : f32 to vector<8x1xf32>
    %11 = arith.maximumf %9, %10 : vector<8x1xf32>
    %c0_8 = arith.constant 0 : index
    %c0_9 = arith.constant 0 : index
    %12 = vector.load %arg6[%c0_8, %c0_9] : memref<8x1xf32, #tpu.memory_space<vmem>>, vector<8x1xf32>
    %cst_10 = arith.constant 9.99999974E-6 : f32
    %13 = vector.broadcast %cst_10 : f32 to vector<8x1xf32>
    %14 = arith.addf %11, %13 : vector<8x1xf32>
    %15 = math.rsqrt %14 : vector<8x1xf32>
    %16 = arith.mulf %12, %15 : vector<8x1xf32>
    %17 = vector.broadcast %4 : vector<8x1xf32> to vector<8x128xf32>
    %18 = arith.subf %1, %17 : vector<8x128xf32>
    %19 = vector.broadcast %16 : vector<8x1xf32> to vector<8x128xf32>
    %20 = arith.mulf %18, %19 : vector<8x128xf32>
    %c0_11 = arith.constant 0 : index
    %c0_12 = arith.constant 0 : index
    %21 = vector.load %arg7[%c0_11, %c0_12] : memref<8x1xf32, #tpu.memory_space<vmem>>, vector<8x1xf32>
    %22 = vector.broadcast %21 : vector<8x1xf32> to vector<8x128xf32>
    %23 = arith.addf %20, %22 : vector<8x128xf32>
    %cst_13 = arith.constant -3.40282347E+38 : f32
    %cst_14 = arith.constant 3.40282347E+38 : f32
    %24 = vector.broadcast %cst_13 : f32 to vector<8x128xf32>
    %25 = arith.maximumf %24, %23 : vector<8x128xf32>
    %26 = vector.broadcast %cst_14 : f32 to vector<8x128xf32>
    %27 = arith.minimumf %26, %25 : vector<8x128xf32>
    %28 = arith.cmpf one, %27, %27 : vector<8x128xf32>
    %cst_15 = arith.constant 0.000000e+00 : f32
    %29 = vector.broadcast %cst_15 : f32 to vector<8x128xf32>
    %30 = arith.select %28, %29, %27 : vector<8x128xi1>, vector<8x128xf32>
    %31 = math.tanh %30 : vector<8x128xf32>
    %c0_16 = arith.constant 0 : index
    %c0_17 = arith.constant 0 : index
    %c0_18 = arith.constant 0 : index
    %32 = vector.load %arg3[%c0_16, %c0_17, %c0_18] : memref<1x8x128xf32, #tpu.memory_space<vmem>>, vector<1x8x128xf32>
    %33 = vector.shape_cast %32 : vector<1x8x128xf32> to vector<8x128xf32>
    %34 = arith.mulf %33, %31 : vector<8x128xf32>
    %c0_19 = arith.constant 0 : index
    %c0_20 = arith.constant 0 : index
    %c0_21 = arith.constant 0 : index
    %35 = vector.load %arg8[%c0_19, %c0_20, %c0_21] : memref<1x8x128xf32, #tpu.memory_space<vmem>>, vector<1x8x128xf32>
    %36 = vector.shape_cast %35 : vector<1x8x128xf32> to vector<8x128xf32>
    %37 = vector.shape_cast %34 : vector<8x128xf32> to vector<1x8x128xf32>
    tpu.vector_store %arg8[%c0_19, %c0_20, %c0_21], %37 {strides = array<i32>} : memref<1x8x128xf32, #tpu.memory_space<vmem>>, vector<1x8x128xf32>,
    return
  }
  func.func @transform_0(%arg0: i32, %arg1: i32) -> (i32, i32, i32) {
    %c0_i32 = arith.constant 0 : i32
    %c0_i32_0 = arith.constant 0 : i32
    return %arg0, %c0_i32, %arg1 : i32, i32, i32
  }
  func.func @transform_1(%arg0: i32, %arg1: i32) -> (i32, i32, i32) {
    %c0_i32 = arith.constant 0 : i32
    %c0_i32_0 = arith.constant 0 : i32
    return %arg0, %c0_i32, %arg1 : i32, i32, i32
  }
  func.func @transform_2(%arg0: i32, %arg1: i32) -> (i32, i32) {
    %c0_i32 = arith.constant 0 : i32
    %c0_i32_0 = arith.constant 0 : i32
    %c0_i32_1 = arith.constant 0 : i32
    return %c0_i32, %c0_i32_0 : i32, i32
  }
  func.func @transform_3(%arg0: i32, %arg1: i32) -> (i32, i32) {
    %c0_i32 = arith.constant 0 : i32
    %c0_i32_0 = arith.constant 0 : i32
    %c0_i32_1 = arith.constant 0 : i32
    return %c0_i32, %c0_i32_0 : i32, i32
  }
  func.func @transform_4(%arg0: i32, %arg1: i32) -> (i32, i32) {
    %c0_i32 = arith.constant 0 : i32
    %c0_i32_0 = arith.constant 0 : i32
    %c0_i32_1 = arith.constant 0 : i32
    return %c0_i32, %c0_i32_0 : i32, i32
  }
  func.func @transform_5(%arg0: i32, %arg1: i32) -> (i32, i32) {
    %c0_i32 = arith.constant 0 : i32
    %c0_i32_0 = arith.constant 0 : i32
    %c0_i32_1 = arith.constant 0 : i32
    return %c0_i32, %c0_i32_0 : i32, i32
  }
  func.func @transform_6(%arg0: i32, %arg1: i32) -> (i32, i32, i32) {
    %c0_i32 = arith.constant 0 : i32
    %c0_i32_0 = arith.constant 0 : i32
    return %arg0, %c0_i32, %arg1 : i32, i32, i32
  }
}

module attributes {stable_mosaic.version = 11 : i64} {
  func.func @convt_pass1_kernel(%arg0: i32, %arg1: i32, %arg2: memref<1x8x128xf32, #tpu.memory_space<vmem>>, %arg3: memref<1x8x128xf32, #tpu.memory_space<vmem>>, %arg4: memref<1x8x128xf32, #tpu.memory_space<vmem>>, %arg5: memref<1x8x128xf32, #tpu.memory_space<vmem>>, %arg6: memref<16x16xf32, #tpu.memory_space<vmem>>, %arg7: memref<4x1xf32, #tpu.memory_space<vmem>>, %arg8: memref<1x8x128xf32, #tpu.memory_space<vmem>>, %arg9: memref<8x1xf32, #tpu.memory_space<vmem>>, %arg10: memref<8x1xf32, #tpu.memory_space<vmem>>) attributes {dimension_semantics = [#tpu.dimension_semantics<arbitrary>, #tpu.dimension_semantics<arbitrary>], iteration_bounds = array<i64: 2, 1>, scalar_prefetch = 0 : i64, scratch_operands = 0 : i64, tpu.core_type = #tpu.core_type<tc>, window_params = [{transform_indices = @transform_0, window_bounds = array<i64: 1, 8, 128>}, {transform_indices = @transform_1, window_bounds = array<i64: 1, 8, 128>}, {transform_indices = @transform_2, window_bounds = array<i64: 1, 8, 128>}, {transform_indices = @transform_3, window_bounds = array<i64: 1, 8, 128>}, {pipeline_mode = #tpu.pipeline_mode<synchronous>, transform_indices = @transform_4, window_bounds = array<i64: 16, 16>}, {pipeline_mode = #tpu.pipeline_mode<synchronous>, transform_indices = @transform_5, window_bounds = array<i64: 4, 1>}, {transform_indices = @transform_6, window_bounds = array<i64: 1, 8, 128>}, {pipeline_mode = #tpu.pipeline_mode<synchronous>, transform_indices = @transform_7, window_bounds = array<i64: 8, 1>}, {pipeline_mode = #tpu.pipeline_mode<synchronous>, transform_indices = @transform_8, window_bounds = array<i64: 8, 1>}]} {
    %c0_i32 = arith.constant 0 : i32
    %0 = arith.cmpi eq, %arg0, %c0_i32 : i32
    %c0_i32_0 = arith.constant 0 : i32
    %1 = arith.cmpi eq, %arg1, %c0_i32_0 : i32
    %2 = arith.andi %0, %1 : i1
    %3 = arith.extui %2 : i1 to i32
    %c0_i32_1 = arith.constant 0 : i32
    %4 = arith.cmpi ne, %3, %c0_i32_1 : i32
    scf.if %4 {
      %cst_41 = arith.constant 0.000000e+00 : f32
      %72 = vector.broadcast %cst_41 : f32 to vector<8x1xf32>
      %c0_42 = arith.constant 0 : index
      %c0_43 = arith.constant 0 : index
      %73 = vector.load %arg9[%c0_42, %c0_43] : memref<8x1xf32, #tpu.memory_space<vmem>>, vector<8x1xf32>
      tpu.vector_store %arg9[%c0_42, %c0_43], %72 {strides = array<i32>} : memref<8x1xf32, #tpu.memory_space<vmem>>, vector<8x1xf32>,
      %cst_44 = arith.constant 0.000000e+00 : f32
      %74 = vector.broadcast %cst_44 : f32 to vector<8x1xf32>
      %c0_45 = arith.constant 0 : index
      %c0_46 = arith.constant 0 : index
      %75 = vector.load %arg10[%c0_45, %c0_46] : memref<8x1xf32, #tpu.memory_space<vmem>>, vector<8x1xf32>
      tpu.vector_store %arg10[%c0_45, %c0_46], %74 {strides = array<i32>} : memref<8x1xf32, #tpu.memory_space<vmem>>, vector<8x1xf32>,
    } else {
    }
    %c0 = arith.constant 0 : index
    %c0_2 = arith.constant 0 : index
    %5 = vector.load %arg6[%c0, %c0_2] : memref<16x16xf32, #tpu.memory_space<vmem>>, vector<16x16xf32>
    %c0_3 = arith.constant 0 : index
    %c0_4 = arith.constant 0 : index
    %c0_5 = arith.constant 0 : index
    %6 = vector.load %arg2[%c0_3, %c0_4, %c0_5] : memref<1x8x128xf32, #tpu.memory_space<vmem>>, vector<1x8x128xf32>
    %7 = vector.shape_cast %6 : vector<1x8x128xf32> to vector<8x128xf32>
    %c0_6 = arith.constant 0 : index
    %c0_7 = arith.constant 0 : index
    %c0_8 = arith.constant 0 : index
    %8 = vector.load %arg3[%c0_6, %c0_7, %c0_8] : memref<1x8x128xf32, #tpu.memory_space<vmem>>, vector<1x8x128xf32>
    %9 = vector.shape_cast %8 : vector<1x8x128xf32> to vector<8x128xf32>
    %10 = vector.extract_strided_slice %9 {offsets = [0, 127], sizes = [8, 1], strides = [1, 1]} : vector<8x128xf32> to vector<8x1xf32>
    %c0_i32_9 = arith.constant 0 : i32
    %11 = arith.cmpi sgt, %arg1, %c0_i32_9 : i32
    %cst = arith.constant 0.000000e+00 : f32
    %12 = vector.broadcast %cst : f32 to vector<8x1xf32>
    %13 = arith.select %11, %10, %12 : vector<8x1xf32>
    %14 = tpu.concatenate %13, %7 in 1 : vector<8x1xf32>, vector<8x128xf32> -> vector<8x129xf32>
    %15 = vector.extract_strided_slice %5 {offsets = [0, 0], sizes = [16, 8], strides = [1, 1]} : vector<16x16xf32> to vector<16x8xf32>
    %cst_10 = arith.constant dense<0.000000e+00> : vector<16x129xf32>
    %16 = tpu.matmul %15, %14, %cst_10 {dimension_numbers = #tpu.dot_dimension_numbers<[1], [0], [0], [1], [0, 0, 1, 1], [], []>} : vector<16x8xf32>, vector<8x129xf32>, vector<16x129xf32> -> vector<16x129xf32>
    %17 = vector.extract_strided_slice %5 {offsets = [0, 8], sizes = [16, 8], strides = [1, 1]} : vector<16x16xf32> to vector<16x8xf32>
    %c0_11 = arith.constant 0 : index
    %c0_12 = arith.constant 0 : index
    %c0_13 = arith.constant 0 : index
    %18 = vector.load %arg4[%c0_11, %c0_12, %c0_13] : memref<1x8x128xf32, #tpu.memory_space<vmem>>, vector<1x8x128xf32>
    %19 = vector.shape_cast %18 : vector<1x8x128xf32> to vector<8x128xf32>
    %c0_14 = arith.constant 0 : index
    %c0_15 = arith.constant 0 : index
    %c0_16 = arith.constant 0 : index
    %20 = vector.load %arg5[%c0_14, %c0_15, %c0_16] : memref<1x8x128xf32, #tpu.memory_space<vmem>>, vector<1x8x128xf32>
    %21 = vector.shape_cast %20 : vector<1x8x128xf32> to vector<8x128xf32>
    %22 = vector.extract_strided_slice %21 {offsets = [0, 127], sizes = [8, 1], strides = [1, 1]} : vector<8x128xf32> to vector<8x1xf32>
    %c0_i32_17 = arith.constant 0 : i32
    %23 = arith.cmpi sgt, %arg1, %c0_i32_17 : i32
    %cst_18 = arith.constant 0.000000e+00 : f32
    %24 = vector.broadcast %cst_18 : f32 to vector<8x1xf32>
    %25 = arith.select %23, %22, %24 : vector<8x1xf32>
    %26 = tpu.concatenate %25, %19 in 1 : vector<8x1xf32>, vector<8x128xf32> -> vector<8x129xf32>
    %cst_19 = arith.constant dense<0.000000e+00> : vector<16x129xf32>
    %27 = tpu.matmul %17, %26, %cst_19 {dimension_numbers = #tpu.dot_dimension_numbers<[1], [0], [0], [1], [0, 0, 1, 1], [], []>} : vector<16x8xf32>, vector<8x129xf32>, vector<16x129xf32> -> vector<16x129xf32>
    %28 = arith.addf %16, %27 : vector<16x129xf32>
    %c0_20 = arith.constant 0 : index
    %c0_21 = arith.constant 0 : index
    %29 = vector.load %arg7[%c0_20, %c0_21] : memref<4x1xf32, #tpu.memory_space<vmem>>, vector<4x1xf32>
    %30 = vector.extract_strided_slice %28 {offsets = [0, 1], sizes = [4, 128], strides = [1, 1]} : vector<16x129xf32> to vector<4x128xf32>
    %31 = vector.extract_strided_slice %28 {offsets = [8, 0], sizes = [4, 128], strides = [1, 1]} : vector<16x129xf32> to vector<4x128xf32>
    %32 = arith.addf %30, %31 : vector<4x128xf32>
    %33 = vector.broadcast %29 : vector<4x1xf32> to vector<4x128xf32>
    %34 = arith.addf %32, %33 : vector<4x128xf32>
    %cst_22 = arith.constant -3.40282347E+38 : f32
    %cst_23 = arith.constant 3.40282347E+38 : f32
    %35 = vector.broadcast %cst_22 : f32 to vector<4x128xf32>
    %36 = arith.maximumf %35, %34 : vector<4x128xf32>
    %37 = vector.broadcast %cst_23 : f32 to vector<4x128xf32>
    %38 = arith.minimumf %37, %36 : vector<4x128xf32>
    %39 = arith.cmpf one, %38, %38 : vector<4x128xf32>
    %cst_24 = arith.constant 0.000000e+00 : f32
    %40 = vector.broadcast %cst_24 : f32 to vector<4x128xf32>
    %41 = arith.select %39, %40, %38 : vector<4x128xi1>, vector<4x128xf32>
    %c0_25 = arith.constant 0 : index
    %c0_26 = arith.constant 0 : index
    %c0_27 = arith.constant 0 : index
    %42 = vector.load %arg8[%c0_25, %c0_26, %c0_27] : memref<1x8x128xf32, #tpu.memory_space<vmem>>, vector<1x4x128xf32>
    %43 = vector.shape_cast %42 : vector<1x4x128xf32> to vector<4x128xf32>
    %44 = vector.shape_cast %41 : vector<4x128xf32> to vector<1x4x128xf32>
    tpu.vector_store %arg8[%c0_25, %c0_26, %c0_27], %44 {strides = array<i32>} : memref<1x8x128xf32, #tpu.memory_space<vmem>>, vector<1x4x128xf32>,
    %c0_i32_28 = arith.constant 0 : i32
    %45 = arith.cmpi slt, %arg1, %c0_i32_28 : i32
    %46 = arith.extui %45 : i1 to i32
    %c0_i32_29 = arith.constant 0 : i32
    %47 = arith.cmpi ne, %46, %c0_i32_29 : i32
    scf.if %47 {
      %c0_41 = arith.constant 0 : index
      %c0_42 = arith.constant 0 : index
      %72 = vector.load %arg9[%c0_41, %c0_42] : memref<8x1xf32, #tpu.memory_space<vmem>>, vector<4x1xf32>
      %cst_43 = arith.constant dense<0.000000e+00> : vector<4xf32>
      %73 = vector.multi_reduction <add>, %41, %cst_43 [1] : vector<4x128xf32> to vector<4xf32>
      %74 = vector.shape_cast %73 : vector<4xf32> to vector<4x1xf32>
      %75 = arith.addf %72, %74 : vector<4x1xf32>
      %c0_44 = arith.constant 0 : index
      %c0_45 = arith.constant 0 : index
      %76 = vector.load %arg9[%c0_44, %c0_45] : memref<8x1xf32, #tpu.memory_space<vmem>>, vector<4x1xf32>
      tpu.vector_store %arg9[%c0_44, %c0_45], %75 {strides = array<i32>} : memref<8x1xf32, #tpu.memory_space<vmem>>, vector<4x1xf32>,
      %c0_46 = arith.constant 0 : index
      %c0_47 = arith.constant 0 : index
      %77 = vector.load %arg10[%c0_46, %c0_47] : memref<8x1xf32, #tpu.memory_space<vmem>>, vector<4x1xf32>
      %78 = arith.mulf %41, %41 : vector<4x128xf32>
      %cst_48 = arith.constant dense<0.000000e+00> : vector<4xf32>
      %79 = vector.multi_reduction <add>, %78, %cst_48 [1] : vector<4x128xf32> to vector<4xf32>
      %80 = vector.shape_cast %79 : vector<4xf32> to vector<4x1xf32>
      %81 = arith.addf %77, %80 : vector<4x1xf32>
      %c0_49 = arith.constant 0 : index
      %c0_50 = arith.constant 0 : index
      %82 = vector.load %arg10[%c0_49, %c0_50] : memref<8x1xf32, #tpu.memory_space<vmem>>, vector<4x1xf32>
      tpu.vector_store %arg10[%c0_49, %c0_50], %81 {strides = array<i32>} : memref<8x1xf32, #tpu.memory_space<vmem>>, vector<4x1xf32>,
    } else {
    }
    %c0_i32_30 = arith.constant 0 : i32
    %48 = arith.cmpi sge, %arg1, %c0_i32_30 : i32
    %49 = arith.extui %48 : i1 to i32
    %c0_i32_31 = arith.constant 0 : i32
    %50 = arith.cmpi ne, %49, %c0_i32_31 : i32
    scf.if %50 {
      %c128_i32 = arith.constant 128 : i32
      %72 = arith.muli %arg1, %c128_i32 : i32
      %73 = tpu.iota {dimensions = array<i32: 1>} : vector<4x128xi32>
      %74 = vector.broadcast %72 : i32 to vector<4x128xi32>
      %75 = arith.addi %74, %73 : vector<4x128xi32>
      %c9_i32 = arith.constant 9 : i32
      %76 = vector.broadcast %c9_i32 : i32 to vector<4x128xi32>
      %77 = arith.cmpi slt, %75, %76 : vector<4x128xi32>
      %cst_41 = arith.constant 0.000000e+00 : f32
      %78 = vector.broadcast %cst_41 : f32 to vector<4x128xf32>
      %79 = arith.select %77, %41, %78 : vector<4x128xi1>, vector<4x128xf32>
      %c0_42 = arith.constant 0 : index
      %c0_43 = arith.constant 0 : index
      %80 = vector.load %arg9[%c0_42, %c0_43] : memref<8x1xf32, #tpu.memory_space<vmem>>, vector<4x1xf32>
      %cst_44 = arith.constant dense<0.000000e+00> : vector<4xf32>
      %81 = vector.multi_reduction <add>, %79, %cst_44 [1] : vector<4x128xf32> to vector<4xf32>
      %82 = vector.shape_cast %81 : vector<4xf32> to vector<4x1xf32>
      %83 = arith.addf %80, %82 : vector<4x1xf32>
      %c0_45 = arith.constant 0 : index
      %c0_46 = arith.constant 0 : index
      %84 = vector.load %arg9[%c0_45, %c0_46] : memref<8x1xf32, #tpu.memory_space<vmem>>, vector<4x1xf32>
      tpu.vector_store %arg9[%c0_45, %c0_46], %83 {strides = array<i32>} : memref<8x1xf32, #tpu.memory_space<vmem>>, vector<4x1xf32>,
      %c0_47 = arith.constant 0 : index
      %c0_48 = arith.constant 0 : index
      %85 = vector.load %arg10[%c0_47, %c0_48] : memref<8x1xf32, #tpu.memory_space<vmem>>, vector<4x1xf32>
      %86 = arith.mulf %79, %79 : vector<4x128xf32>
      %cst_49 = arith.constant dense<0.000000e+00> : vector<4xf32>
      %87 = vector.multi_reduction <add>, %86, %cst_49 [1] : vector<4x128xf32> to vector<4xf32>
      %88 = vector.shape_cast %87 : vector<4xf32> to vector<4x1xf32>
      %89 = arith.addf %85, %88 : vector<4x1xf32>
      %c0_50 = arith.constant 0 : index
      %c0_51 = arith.constant 0 : index
      %90 = vector.load %arg10[%c0_50, %c0_51] : memref<8x1xf32, #tpu.memory_space<vmem>>, vector<4x1xf32>
      tpu.vector_store %arg10[%c0_50, %c0_51], %89 {strides = array<i32>} : memref<8x1xf32, #tpu.memory_space<vmem>>, vector<4x1xf32>,
    } else {
    }
    %51 = vector.extract_strided_slice %28 {offsets = [4, 1], sizes = [4, 128], strides = [1, 1]} : vector<16x129xf32> to vector<4x128xf32>
    %52 = vector.extract_strided_slice %28 {offsets = [12, 0], sizes = [4, 128], strides = [1, 1]} : vector<16x129xf32> to vector<4x128xf32>
    %53 = arith.addf %51, %52 : vector<4x128xf32>
    %54 = vector.broadcast %29 : vector<4x1xf32> to vector<4x128xf32>
    %55 = arith.addf %53, %54 : vector<4x128xf32>
    %cst_32 = arith.constant -3.40282347E+38 : f32
    %cst_33 = arith.constant 3.40282347E+38 : f32
    %56 = vector.broadcast %cst_32 : f32 to vector<4x128xf32>
    %57 = arith.maximumf %56, %55 : vector<4x128xf32>
    %58 = vector.broadcast %cst_33 : f32 to vector<4x128xf32>
    %59 = arith.minimumf %58, %57 : vector<4x128xf32>
    %60 = arith.cmpf one, %59, %59 : vector<4x128xf32>
    %cst_34 = arith.constant 0.000000e+00 : f32
    %61 = vector.broadcast %cst_34 : f32 to vector<4x128xf32>
    %62 = arith.select %60, %61, %59 : vector<4x128xi1>, vector<4x128xf32>
    %c0_35 = arith.constant 0 : index
    %c4 = arith.constant 4 : index
    %c0_36 = arith.constant 0 : index
    %63 = vector.load %arg8[%c0_35, %c4, %c0_36] : memref<1x8x128xf32, #tpu.memory_space<vmem>>, vector<1x4x128xf32>
    %64 = vector.shape_cast %63 : vector<1x4x128xf32> to vector<4x128xf32>
    %65 = vector.shape_cast %62 : vector<4x128xf32> to vector<1x4x128xf32>
    tpu.vector_store %arg8[%c0_35, %c4, %c0_36], %65 {strides = array<i32>} : memref<1x8x128xf32, #tpu.memory_space<vmem>>, vector<1x4x128xf32>,
    %c0_i32_37 = arith.constant 0 : i32
    %66 = arith.cmpi slt, %arg1, %c0_i32_37 : i32
    %67 = arith.extui %66 : i1 to i32
    %c0_i32_38 = arith.constant 0 : i32
    %68 = arith.cmpi ne, %67, %c0_i32_38 : i32
    scf.if %68 {
      %c4_41 = arith.constant 4 : index
      %c0_42 = arith.constant 0 : index
      %72 = vector.load %arg9[%c4_41, %c0_42] : memref<8x1xf32, #tpu.memory_space<vmem>>, vector<4x1xf32>
      %cst_43 = arith.constant dense<0.000000e+00> : vector<4xf32>
      %73 = vector.multi_reduction <add>, %62, %cst_43 [1] : vector<4x128xf32> to vector<4xf32>
      %74 = vector.shape_cast %73 : vector<4xf32> to vector<4x1xf32>
      %75 = arith.addf %72, %74 : vector<4x1xf32>
      %c4_44 = arith.constant 4 : index
      %c0_45 = arith.constant 0 : index
      %76 = vector.load %arg9[%c4_44, %c0_45] : memref<8x1xf32, #tpu.memory_space<vmem>>, vector<4x1xf32>
      tpu.vector_store %arg9[%c4_44, %c0_45], %75 {strides = array<i32>} : memref<8x1xf32, #tpu.memory_space<vmem>>, vector<4x1xf32>,
      %c4_46 = arith.constant 4 : index
      %c0_47 = arith.constant 0 : index
      %77 = vector.load %arg10[%c4_46, %c0_47] : memref<8x1xf32, #tpu.memory_space<vmem>>, vector<4x1xf32>
      %78 = arith.mulf %62, %62 : vector<4x128xf32>
      %cst_48 = arith.constant dense<0.000000e+00> : vector<4xf32>
      %79 = vector.multi_reduction <add>, %78, %cst_48 [1] : vector<4x128xf32> to vector<4xf32>
      %80 = vector.shape_cast %79 : vector<4xf32> to vector<4x1xf32>
      %81 = arith.addf %77, %80 : vector<4x1xf32>
      %c4_49 = arith.constant 4 : index
      %c0_50 = arith.constant 0 : index
      %82 = vector.load %arg10[%c4_49, %c0_50] : memref<8x1xf32, #tpu.memory_space<vmem>>, vector<4x1xf32>
      tpu.vector_store %arg10[%c4_49, %c0_50], %81 {strides = array<i32>} : memref<8x1xf32, #tpu.memory_space<vmem>>, vector<4x1xf32>,
    } else {
    }
    %c0_i32_39 = arith.constant 0 : i32
    %69 = arith.cmpi sge, %arg1, %c0_i32_39 : i32
    %70 = arith.extui %69 : i1 to i32
    %c0_i32_40 = arith.constant 0 : i32
    %71 = arith.cmpi ne, %70, %c0_i32_40 : i32
    scf.if %71 {
      %c128_i32 = arith.constant 128 : i32
      %72 = arith.muli %arg1, %c128_i32 : i32
      %73 = tpu.iota {dimensions = array<i32: 1>} : vector<4x128xi32>
      %74 = vector.broadcast %72 : i32 to vector<4x128xi32>
      %75 = arith.addi %74, %73 : vector<4x128xi32>
      %c9_i32 = arith.constant 9 : i32
      %76 = vector.broadcast %c9_i32 : i32 to vector<4x128xi32>
      %77 = arith.cmpi slt, %75, %76 : vector<4x128xi32>
      %cst_41 = arith.constant 0.000000e+00 : f32
      %78 = vector.broadcast %cst_41 : f32 to vector<4x128xf32>
      %79 = arith.select %77, %62, %78 : vector<4x128xi1>, vector<4x128xf32>
      %c4_42 = arith.constant 4 : index
      %c0_43 = arith.constant 0 : index
      %80 = vector.load %arg9[%c4_42, %c0_43] : memref<8x1xf32, #tpu.memory_space<vmem>>, vector<4x1xf32>
      %cst_44 = arith.constant dense<0.000000e+00> : vector<4xf32>
      %81 = vector.multi_reduction <add>, %79, %cst_44 [1] : vector<4x128xf32> to vector<4xf32>
      %82 = vector.shape_cast %81 : vector<4xf32> to vector<4x1xf32>
      %83 = arith.addf %80, %82 : vector<4x1xf32>
      %c4_45 = arith.constant 4 : index
      %c0_46 = arith.constant 0 : index
      %84 = vector.load %arg9[%c4_45, %c0_46] : memref<8x1xf32, #tpu.memory_space<vmem>>, vector<4x1xf32>
      tpu.vector_store %arg9[%c4_45, %c0_46], %83 {strides = array<i32>} : memref<8x1xf32, #tpu.memory_space<vmem>>, vector<4x1xf32>,
      %c4_47 = arith.constant 4 : index
      %c0_48 = arith.constant 0 : index
      %85 = vector.load %arg10[%c4_47, %c0_48] : memref<8x1xf32, #tpu.memory_space<vmem>>, vector<4x1xf32>
      %86 = arith.mulf %79, %79 : vector<4x128xf32>
      %cst_49 = arith.constant dense<0.000000e+00> : vector<4xf32>
      %87 = vector.multi_reduction <add>, %86, %cst_49 [1] : vector<4x128xf32> to vector<4xf32>
      %88 = vector.shape_cast %87 : vector<4xf32> to vector<4x1xf32>
      %89 = arith.addf %85, %88 : vector<4x1xf32>
      %c4_50 = arith.constant 4 : index
      %c0_51 = arith.constant 0 : index
      %90 = vector.load %arg10[%c4_50, %c0_51] : memref<8x1xf32, #tpu.memory_space<vmem>>, vector<4x1xf32>
      tpu.vector_store %arg10[%c4_50, %c0_51], %89 {strides = array<i32>} : memref<8x1xf32, #tpu.memory_space<vmem>>, vector<4x1xf32>,
    } else {
    }
    return
  }
  func.func @transform_0(%arg0: i32, %arg1: i32) -> (i32, i32, i32) {
    %c0_i32 = arith.constant 0 : i32
    %c0_i32_0 = arith.constant 0 : i32
    return %arg0, %c0_i32, %arg1 : i32, i32, i32
  }
  func.func @transform_1(%arg0: i32, %arg1: i32) -> (i32, i32, i32) {
    %c1_i32 = arith.constant 1 : i32
    %0 = arith.muli %arg1, %c1_i32 : i32
    %c1_i32_0 = arith.constant 1 : i32
    %1 = arith.subi %0, %c1_i32_0 : i32
    %c0_i32 = arith.constant 0 : i32
    %2 = arith.maxsi %1, %c0_i32 : i32
    %c0_i32_1 = arith.constant 0 : i32
    %c0_i32_2 = arith.constant 0 : i32
    return %arg0, %c0_i32_1, %2 : i32, i32, i32
  }
  func.func @transform_2(%arg0: i32, %arg1: i32) -> (i32, i32, i32) {
    %c0_i32 = arith.constant 0 : i32
    %c0_i32_0 = arith.constant 0 : i32
    return %arg0, %c0_i32, %arg1 : i32, i32, i32
  }
  func.func @transform_3(%arg0: i32, %arg1: i32) -> (i32, i32, i32) {
    %c1_i32 = arith.constant 1 : i32
    %0 = arith.muli %arg1, %c1_i32 : i32
    %c1_i32_0 = arith.constant 1 : i32
    %1 = arith.subi %0, %c1_i32_0 : i32
    %c0_i32 = arith.constant 0 : i32
    %2 = arith.maxsi %1, %c0_i32 : i32
    %c0_i32_1 = arith.constant 0 : i32
    %c0_i32_2 = arith.constant 0 : i32
    return %arg0, %c0_i32_1, %2 : i32, i32, i32
  }
  func.func @transform_4(%arg0: i32, %arg1: i32) -> (i32, i32) {
    %c0_i32 = arith.constant 0 : i32
    %c0_i32_0 = arith.constant 0 : i32
    %c0_i32_1 = arith.constant 0 : i32
    return %c0_i32, %c0_i32_0 : i32, i32
  }
  func.func @transform_5(%arg0: i32, %arg1: i32) -> (i32, i32) {
    %c0_i32 = arith.constant 0 : i32
    %c0_i32_0 = arith.constant 0 : i32
    %c0_i32_1 = arith.constant 0 : i32
    return %c0_i32, %c0_i32_0 : i32, i32
  }
  func.func @transform_6(%arg0: i32, %arg1: i32) -> (i32, i32, i32) {
    %c0_i32 = arith.constant 0 : i32
    %c0_i32_0 = arith.constant 0 : i32
    return %arg0, %c0_i32, %arg1 : i32, i32, i32
  }
  func.func @transform_7(%arg0: i32, %arg1: i32) -> (i32, i32) {
    %c0_i32 = arith.constant 0 : i32
    %c0_i32_0 = arith.constant 0 : i32
    %c0_i32_1 = arith.constant 0 : i32
    return %c0_i32, %c0_i32_0 : i32, i32
  }
  func.func @transform_8(%arg0: i32, %arg1: i32) -> (i32, i32) {
    %c0_i32 = arith.constant 0 : i32
    %c0_i32_0 = arith.constant 0 : i32
    %c0_i32_1 = arith.constant 0 : i32
    return %c0_i32, %c0_i32_0 : i32, i32
  }
}

module attributes {stable_mosaic.version = 11 : i64} {
  func.func @conv_pass1_kernel(%arg0: i32, %arg1: i32, %arg2: memref<1x4x128xf32, #tpu.memory_space<vmem>>, %arg3: memref<4x4xf32, #tpu.memory_space<vmem>>, %arg4: memref<4x1xf32, #tpu.memory_space<vmem>>, %arg5: memref<1x4x128xf32, #tpu.memory_space<vmem>>, %arg6: memref<4x1xf32, #tpu.memory_space<vmem>>, %arg7: memref<4x1xf32, #tpu.memory_space<vmem>>) attributes {dimension_semantics = [#tpu.dimension_semantics<arbitrary>, #tpu.dimension_semantics<arbitrary>], iteration_bounds = array<i64: 2, 1>, scalar_prefetch = 0 : i64, scratch_operands = 0 : i64, tpu.core_type = #tpu.core_type<tc>, window_params = [{transform_indices = @transform_0, window_bounds = array<i64: 1, 4, 128>}, {pipeline_mode = #tpu.pipeline_mode<synchronous>, transform_indices = @transform_1, window_bounds = array<i64: 4, 4>}, {pipeline_mode = #tpu.pipeline_mode<synchronous>, transform_indices = @transform_2, window_bounds = array<i64: 4, 1>}, {transform_indices = @transform_3, window_bounds = array<i64: 1, 4, 128>}, {pipeline_mode = #tpu.pipeline_mode<synchronous>, transform_indices = @transform_4, window_bounds = array<i64: 4, 1>}, {pipeline_mode = #tpu.pipeline_mode<synchronous>, transform_indices = @transform_5, window_bounds = array<i64: 4, 1>}]} {
    %c0_i32 = arith.constant 0 : i32
    %0 = arith.cmpi eq, %arg0, %c0_i32 : i32
    %c0_i32_0 = arith.constant 0 : i32
    %1 = arith.cmpi eq, %arg1, %c0_i32_0 : i32
    %2 = arith.andi %0, %1 : i1
    %3 = arith.extui %2 : i1 to i32
    %c0_i32_1 = arith.constant 0 : i32
    %4 = arith.cmpi ne, %3, %c0_i32_1 : i32
    scf.if %4 {
      %cst_18 = arith.constant 0.000000e+00 : f32
      %28 = vector.broadcast %cst_18 : f32 to vector<4x1xf32>
      %c0_19 = arith.constant 0 : index
      %c0_20 = arith.constant 0 : index
      %29 = vector.load %arg6[%c0_19, %c0_20] : memref<4x1xf32, #tpu.memory_space<vmem>>, vector<4x1xf32>
      tpu.vector_store %arg6[%c0_19, %c0_20], %28 {strides = array<i32>} : memref<4x1xf32, #tpu.memory_space<vmem>>, vector<4x1xf32>,
      %cst_21 = arith.constant 0.000000e+00 : f32
      %30 = vector.broadcast %cst_21 : f32 to vector<4x1xf32>
      %c0_22 = arith.constant 0 : index
      %c0_23 = arith.constant 0 : index
      %31 = vector.load %arg7[%c0_22, %c0_23] : memref<4x1xf32, #tpu.memory_space<vmem>>, vector<4x1xf32>
      tpu.vector_store %arg7[%c0_22, %c0_23], %30 {strides = array<i32>} : memref<4x1xf32, #tpu.memory_space<vmem>>, vector<4x1xf32>,
    } else {
    }
    %c0 = arith.constant 0 : index
    %c0_2 = arith.constant 0 : index
    %c0_3 = arith.constant 0 : index
    %5 = vector.load %arg2[%c0, %c0_2, %c0_3] : memref<1x4x128xf32, #tpu.memory_space<vmem>>, vector<1x4x128xf32>
    %6 = vector.shape_cast %5 : vector<1x4x128xf32> to vector<4x128xf32>
    %c0_4 = arith.constant 0 : index
    %c0_5 = arith.constant 0 : index
    %7 = vector.load %arg3[%c0_4, %c0_5] : memref<4x4xf32, #tpu.memory_space<vmem>>, vector<4x4xf32>
    %cst = arith.constant dense<0.000000e+00> : vector<4x128xf32>
    %8 = tpu.matmul %7, %6, %cst {dimension_numbers = #tpu.dot_dimension_numbers<[1], [0], [0], [1], [0, 0, 1, 1], [], []>} : vector<4x4xf32>, vector<4x128xf32>, vector<4x128xf32> -> vector<4x128xf32>
    %c0_6 = arith.constant 0 : index
    %c0_7 = arith.constant 0 : index
    %9 = vector.load %arg4[%c0_6, %c0_7] : memref<4x1xf32, #tpu.memory_space<vmem>>, vector<4x1xf32>
    %10 = vector.broadcast %9 : vector<4x1xf32> to vector<4x128xf32>
    %11 = arith.addf %8, %10 : vector<4x128xf32>
    %cst_8 = arith.constant -3.40282347E+38 : f32
    %cst_9 = arith.constant 3.40282347E+38 : f32
    %12 = vector.broadcast %cst_8 : f32 to vector<4x128xf32>
    %13 = arith.maximumf %12, %11 : vector<4x128xf32>
    %14 = vector.broadcast %cst_9 : f32 to vector<4x128xf32>
    %15 = arith.minimumf %14, %13 : vector<4x128xf32>
    %16 = arith.cmpf one, %15, %15 : vector<4x128xf32>
    %cst_10 = arith.constant 0.000000e+00 : f32
    %17 = vector.broadcast %cst_10 : f32 to vector<4x128xf32>
    %18 = arith.select %16, %17, %15 : vector<4x128xi1>, vector<4x128xf32>
    %c0_11 = arith.constant 0 : index
    %c0_12 = arith.constant 0 : index
    %c0_13 = arith.constant 0 : index
    %19 = vector.load %arg5[%c0_11, %c0_12, %c0_13] : memref<1x4x128xf32, #tpu.memory_space<vmem>>, vector<1x4x128xf32>
    %20 = vector.shape_cast %19 : vector<1x4x128xf32> to vector<4x128xf32>
    %21 = vector.shape_cast %18 : vector<4x128xf32> to vector<1x4x128xf32>
    tpu.vector_store %arg5[%c0_11, %c0_12, %c0_13], %21 {strides = array<i32>} : memref<1x4x128xf32, #tpu.memory_space<vmem>>, vector<1x4x128xf32>,
    %c0_i32_14 = arith.constant 0 : i32
    %22 = arith.cmpi slt, %arg1, %c0_i32_14 : i32
    %23 = arith.extui %22 : i1 to i32
    %c0_i32_15 = arith.constant 0 : i32
    %24 = arith.cmpi ne, %23, %c0_i32_15 : i32
    scf.if %24 {
      %c0_18 = arith.constant 0 : index
      %c0_19 = arith.constant 0 : index
      %28 = vector.load %arg6[%c0_18, %c0_19] : memref<4x1xf32, #tpu.memory_space<vmem>>, vector<4x1xf32>
      %cst_20 = arith.constant dense<0.000000e+00> : vector<4xf32>
      %29 = vector.multi_reduction <add>, %18, %cst_20 [1] : vector<4x128xf32> to vector<4xf32>
      %30 = vector.shape_cast %29 : vector<4xf32> to vector<4x1xf32>
      %31 = arith.addf %28, %30 : vector<4x1xf32>
      %c0_21 = arith.constant 0 : index
      %c0_22 = arith.constant 0 : index
      %32 = vector.load %arg6[%c0_21, %c0_22] : memref<4x1xf32, #tpu.memory_space<vmem>>, vector<4x1xf32>
      tpu.vector_store %arg6[%c0_21, %c0_22], %31 {strides = array<i32>} : memref<4x1xf32, #tpu.memory_space<vmem>>, vector<4x1xf32>,
      %c0_23 = arith.constant 0 : index
      %c0_24 = arith.constant 0 : index
      %33 = vector.load %arg7[%c0_23, %c0_24] : memref<4x1xf32, #tpu.memory_space<vmem>>, vector<4x1xf32>
      %34 = arith.mulf %18, %18 : vector<4x128xf32>
      %cst_25 = arith.constant dense<0.000000e+00> : vector<4xf32>
      %35 = vector.multi_reduction <add>, %34, %cst_25 [1] : vector<4x128xf32> to vector<4xf32>
      %36 = vector.shape_cast %35 : vector<4xf32> to vector<4x1xf32>
      %37 = arith.addf %33, %36 : vector<4x1xf32>
      %c0_26 = arith.constant 0 : index
      %c0_27 = arith.constant 0 : index
      %38 = vector.load %arg7[%c0_26, %c0_27] : memref<4x1xf32, #tpu.memory_space<vmem>>, vector<4x1xf32>
      tpu.vector_store %arg7[%c0_26, %c0_27], %37 {strides = array<i32>} : memref<4x1xf32, #tpu.memory_space<vmem>>, vector<4x1xf32>,
    } else {
    }
    %c0_i32_16 = arith.constant 0 : i32
    %25 = arith.cmpi sge, %arg1, %c0_i32_16 : i32
    %26 = arith.extui %25 : i1 to i32
    %c0_i32_17 = arith.constant 0 : i32
    %27 = arith.cmpi ne, %26, %c0_i32_17 : i32
    scf.if %27 {
      %c128_i32 = arith.constant 128 : i32
      %28 = arith.muli %arg1, %c128_i32 : i32
      %29 = tpu.iota {dimensions = array<i32: 1>} : vector<4x128xi32>
      %30 = vector.broadcast %28 : i32 to vector<4x128xi32>
      %31 = arith.addi %30, %29 : vector<4x128xi32>
      %c18_i32 = arith.constant 18 : i32
      %32 = vector.broadcast %c18_i32 : i32 to vector<4x128xi32>
      %33 = arith.cmpi slt, %31, %32 : vector<4x128xi32>
      %cst_18 = arith.constant 0.000000e+00 : f32
      %34 = vector.broadcast %cst_18 : f32 to vector<4x128xf32>
      %35 = arith.select %33, %18, %34 : vector<4x128xi1>, vector<4x128xf32>
      %c0_19 = arith.constant 0 : index
      %c0_20 = arith.constant 0 : index
      %36 = vector.load %arg6[%c0_19, %c0_20] : memref<4x1xf32, #tpu.memory_space<vmem>>, vector<4x1xf32>
      %cst_21 = arith.constant dense<0.000000e+00> : vector<4xf32>
      %37 = vector.multi_reduction <add>, %35, %cst_21 [1] : vector<4x128xf32> to vector<4xf32>
      %38 = vector.shape_cast %37 : vector<4xf32> to vector<4x1xf32>
      %39 = arith.addf %36, %38 : vector<4x1xf32>
      %c0_22 = arith.constant 0 : index
      %c0_23 = arith.constant 0 : index
      %40 = vector.load %arg6[%c0_22, %c0_23] : memref<4x1xf32, #tpu.memory_space<vmem>>, vector<4x1xf32>
      tpu.vector_store %arg6[%c0_22, %c0_23], %39 {strides = array<i32>} : memref<4x1xf32, #tpu.memory_space<vmem>>, vector<4x1xf32>,
      %c0_24 = arith.constant 0 : index
      %c0_25 = arith.constant 0 : index
      %41 = vector.load %arg7[%c0_24, %c0_25] : memref<4x1xf32, #tpu.memory_space<vmem>>, vector<4x1xf32>
      %42 = arith.mulf %35, %35 : vector<4x128xf32>
      %cst_26 = arith.constant dense<0.000000e+00> : vector<4xf32>
      %43 = vector.multi_reduction <add>, %42, %cst_26 [1] : vector<4x128xf32> to vector<4xf32>
      %44 = vector.shape_cast %43 : vector<4xf32> to vector<4x1xf32>
      %45 = arith.addf %41, %44 : vector<4x1xf32>
      %c0_27 = arith.constant 0 : index
      %c0_28 = arith.constant 0 : index
      %46 = vector.load %arg7[%c0_27, %c0_28] : memref<4x1xf32, #tpu.memory_space<vmem>>, vector<4x1xf32>
      tpu.vector_store %arg7[%c0_27, %c0_28], %45 {strides = array<i32>} : memref<4x1xf32, #tpu.memory_space<vmem>>, vector<4x1xf32>,
    } else {
    }
    return
  }
  func.func @transform_0(%arg0: i32, %arg1: i32) -> (i32, i32, i32) {
    %c0_i32 = arith.constant 0 : i32
    %c0_i32_0 = arith.constant 0 : i32
    return %arg0, %c0_i32, %arg1 : i32, i32, i32
  }
  func.func @transform_1(%arg0: i32, %arg1: i32) -> (i32, i32) {
    %c0_i32 = arith.constant 0 : i32
    %c0_i32_0 = arith.constant 0 : i32
    %c0_i32_1 = arith.constant 0 : i32
    return %c0_i32, %c0_i32_0 : i32, i32
  }
  func.func @transform_2(%arg0: i32, %arg1: i32) -> (i32, i32) {
    %c0_i32 = arith.constant 0 : i32
    %c0_i32_0 = arith.constant 0 : i32
    %c0_i32_1 = arith.constant 0 : i32
    return %c0_i32, %c0_i32_0 : i32, i32
  }
  func.func @transform_3(%arg0: i32, %arg1: i32) -> (i32, i32, i32) {
    %c0_i32 = arith.constant 0 : i32
    %c0_i32_0 = arith.constant 0 : i32
    return %arg0, %c0_i32, %arg1 : i32, i32, i32
  }
  func.func @transform_4(%arg0: i32, %arg1: i32) -> (i32, i32) {
    %c0_i32 = arith.constant 0 : i32
    %c0_i32_0 = arith.constant 0 : i32
    %c0_i32_1 = arith.constant 0 : i32
    return %c0_i32, %c0_i32_0 : i32, i32
  }
  func.func @transform_5(%arg0: i32, %arg1: i32) -> (i32, i32) {
    %c0_i32 = arith.constant 0 : i32
    %c0_i32_0 = arith.constant 0 : i32
    %c0_i32_1 = arith.constant 0 : i32
    return %c0_i32, %c0_i32_0 : i32, i32
  }
}

module attributes {stable_mosaic.version = 11 : i64} {
  func.func @bn_act_kernel(%arg0: i32, %arg1: i32, %arg2: memref<1x4x256xf32, #tpu.memory_space<vmem>>, %arg3: memref<4x1xf32, #tpu.memory_space<vmem>>, %arg4: memref<4x1xf32, #tpu.memory_space<vmem>>, %arg5: memref<4x1xf32, #tpu.memory_space<vmem>>, %arg6: memref<4x1xf32, #tpu.memory_space<vmem>>, %arg7: memref<1x4x256xf32, #tpu.memory_space<vmem>>) attributes {dimension_semantics = [#tpu.dimension_semantics<parallel>, #tpu.dimension_semantics<parallel>], iteration_bounds = array<i64: 2, 1>, scalar_prefetch = 0 : i64, scratch_operands = 0 : i64, tpu.core_type = #tpu.core_type<tc>, window_params = [{transform_indices = @transform_0, window_bounds = array<i64: 1, 4, 256>}, {pipeline_mode = #tpu.pipeline_mode<synchronous>, transform_indices = @transform_1, window_bounds = array<i64: 4, 1>}, {pipeline_mode = #tpu.pipeline_mode<synchronous>, transform_indices = @transform_2, window_bounds = array<i64: 4, 1>}, {pipeline_mode = #tpu.pipeline_mode<synchronous>, transform_indices = @transform_3, window_bounds = array<i64: 4, 1>}, {pipeline_mode = #tpu.pipeline_mode<synchronous>, transform_indices = @transform_4, window_bounds = array<i64: 4, 1>}, {transform_indices = @transform_5, window_bounds = array<i64: 1, 4, 256>}]} {
    %c0 = arith.constant 0 : index
    %c0_0 = arith.constant 0 : index
    %c0_1 = arith.constant 0 : index
    %0 = vector.load %arg2[%c0, %c0_0, %c0_1] : memref<1x4x256xf32, #tpu.memory_space<vmem>>, vector<1x4x256xf32>
    %1 = vector.shape_cast %0 : vector<1x4x256xf32> to vector<4x256xf32>
    %c0_2 = arith.constant 0 : index
    %c0_3 = arith.constant 0 : index
    %2 = vector.load %arg3[%c0_2, %c0_3] : memref<4x1xf32, #tpu.memory_space<vmem>>, vector<4x1xf32>
    %cst = arith.constant 0.027777778 : f32
    %3 = vector.broadcast %cst : f32 to vector<4x1xf32>
    %4 = arith.mulf %2, %3 : vector<4x1xf32>
    %c0_4 = arith.constant 0 : index
    %c0_5 = arith.constant 0 : index
    %5 = vector.load %arg4[%c0_4, %c0_5] : memref<4x1xf32, #tpu.memory_space<vmem>>, vector<4x1xf32>
    %cst_6 = arith.constant 0.027777778 : f32
    %6 = vector.broadcast %cst_6 : f32 to vector<4x1xf32>
    %7 = arith.mulf %5, %6 : vector<4x1xf32>
    %8 = arith.mulf %4, %4 : vector<4x1xf32>
    %9 = arith.subf %7, %8 : vector<4x1xf32>
    %cst_7 = arith.constant 0.000000e+00 : f32
    %10 = vector.broadcast %cst_7 : f32 to vector<4x1xf32>
    %11 = arith.maximumf %9, %10 : vector<4x1xf32>
    %c0_8 = arith.constant 0 : index
    %c0_9 = arith.constant 0 : index
    %12 = vector.load %arg5[%c0_8, %c0_9] : memref<4x1xf32, #tpu.memory_space<vmem>>, vector<4x1xf32>
    %cst_10 = arith.constant 9.99999974E-6 : f32
    %13 = vector.broadcast %cst_10 : f32 to vector<4x1xf32>
    %14 = arith.addf %11, %13 : vector<4x1xf32>
    %15 = math.rsqrt %14 : vector<4x1xf32>
    %16 = arith.mulf %12, %15 : vector<4x1xf32>
    %17 = vector.broadcast %4 : vector<4x1xf32> to vector<4x256xf32>
    %18 = arith.subf %1, %17 : vector<4x256xf32>
    %19 = vector.broadcast %16 : vector<4x1xf32> to vector<4x256xf32>
    %20 = arith.mulf %18, %19 : vector<4x256xf32>
    %c0_11 = arith.constant 0 : index
    %c0_12 = arith.constant 0 : index
    %21 = vector.load %arg6[%c0_11, %c0_12] : memref<4x1xf32, #tpu.memory_space<vmem>>, vector<4x1xf32>
    %22 = vector.broadcast %21 : vector<4x1xf32> to vector<4x256xf32>
    %23 = arith.addf %20, %22 : vector<4x256xf32>
    %cst_13 = arith.constant -3.40282347E+38 : f32
    %cst_14 = arith.constant 3.40282347E+38 : f32
    %24 = vector.broadcast %cst_13 : f32 to vector<4x256xf32>
    %25 = arith.maximumf %24, %23 : vector<4x256xf32>
    %26 = vector.broadcast %cst_14 : f32 to vector<4x256xf32>
    %27 = arith.minimumf %26, %25 : vector<4x256xf32>
    %28 = arith.cmpf one, %27, %27 : vector<4x256xf32>
    %cst_15 = arith.constant 0.000000e+00 : f32
    %29 = vector.broadcast %cst_15 : f32 to vector<4x256xf32>
    %30 = arith.select %28, %29, %27 : vector<4x256xi1>, vector<4x256xf32>
    %cst_16 = arith.constant 0.000000e+00 : f32
    %31 = vector.broadcast %cst_16 : f32 to vector<4x256xf32>
    %32 = arith.cmpf oge, %30, %31 : vector<4x256xf32>
    %cst_17 = arith.constant 0.00999999977 : f32
    %33 = vector.broadcast %cst_17 : f32 to vector<4x256xf32>
    %34 = arith.mulf %33, %30 : vector<4x256xf32>
    %35 = arith.select %32, %30, %34 : vector<4x256xi1>, vector<4x256xf32>
    %c0_i32 = arith.constant 0 : i32
    %36 = arith.cmpi slt, %arg1, %c0_i32 : i32
    %37 = arith.extui %36 : i1 to i32
    %c0_i32_18 = arith.constant 0 : i32
    %38 = arith.cmpi ne, %37, %c0_i32_18 : i32
    scf.if %38 {
      %c0_21 = arith.constant 0 : index
      %c0_22 = arith.constant 0 : index
      %c0_23 = arith.constant 0 : index
      %42 = vector.load %arg7[%c0_21, %c0_22, %c0_23] : memref<1x4x256xf32, #tpu.memory_space<vmem>>, vector<1x4x256xf32>
      %43 = vector.shape_cast %42 : vector<1x4x256xf32> to vector<4x256xf32>
      %44 = vector.shape_cast %35 : vector<4x256xf32> to vector<1x4x256xf32>
      tpu.vector_store %arg7[%c0_21, %c0_22, %c0_23], %44 {strides = array<i32>} : memref<1x4x256xf32, #tpu.memory_space<vmem>>, vector<1x4x256xf32>,
    } else {
    }
    %c0_i32_19 = arith.constant 0 : i32
    %39 = arith.cmpi sge, %arg1, %c0_i32_19 : i32
    %40 = arith.extui %39 : i1 to i32
    %c0_i32_20 = arith.constant 0 : i32
    %41 = arith.cmpi ne, %40, %c0_i32_20 : i32
    scf.if %41 {
      %c256_i32 = arith.constant 256 : i32
      %42 = arith.muli %arg1, %c256_i32 : i32
      %43 = tpu.iota {dimensions = array<i32: 1>} : vector<4x256xi32>
      %44 = vector.broadcast %42 : i32 to vector<4x256xi32>
      %45 = arith.addi %44, %43 : vector<4x256xi32>
      %c18_i32 = arith.constant 18 : i32
      %46 = vector.broadcast %c18_i32 : i32 to vector<4x256xi32>
      %47 = arith.cmpi slt, %45, %46 : vector<4x256xi32>
      %cst_21 = arith.constant 0.000000e+00 : f32
      %48 = vector.broadcast %cst_21 : f32 to vector<4x256xf32>
      %49 = arith.select %47, %35, %48 : vector<4x256xi1>, vector<4x256xf32>
      %c0_22 = arith.constant 0 : index
      %c0_23 = arith.constant 0 : index
      %c0_24 = arith.constant 0 : index
      %50 = vector.load %arg7[%c0_22, %c0_23, %c0_24] : memref<1x4x256xf32, #tpu.memory_space<vmem>>, vector<1x4x256xf32>
      %51 = vector.shape_cast %50 : vector<1x4x256xf32> to vector<4x256xf32>
      %52 = vector.shape_cast %49 : vector<4x256xf32> to vector<1x4x256xf32>
      tpu.vector_store %arg7[%c0_22, %c0_23, %c0_24], %52 {strides = array<i32>} : memref<1x4x256xf32, #tpu.memory_space<vmem>>, vector<1x4x256xf32>,
    } else {
    }
    return
  }
  func.func @transform_0(%arg0: i32, %arg1: i32) -> (i32, i32, i32) {
    %c0_i32 = arith.constant 0 : i32
    %c0_i32_0 = arith.constant 0 : i32
    return %arg0, %c0_i32, %arg1 : i32, i32, i32
  }
  func.func @transform_1(%arg0: i32, %arg1: i32) -> (i32, i32) {
    %c0_i32 = arith.constant 0 : i32
    %c0_i32_0 = arith.constant 0 : i32
    %c0_i32_1 = arith.constant 0 : i32
    return %c0_i32, %c0_i32_0 : i32, i32
  }
  func.func @transform_2(%arg0: i32, %arg1: i32) -> (i32, i32) {
    %c0_i32 = arith.constant 0 : i32
    %c0_i32_0 = arith.constant 0 : i32
    %c0_i32_1 = arith.constant 0 : i32
    return %c0_i32, %c0_i32_0 : i32, i32
  }
  func.func @transform_3(%arg0: i32, %arg1: i32) -> (i32, i32) {
    %c0_i32 = arith.constant 0 : i32
    %c0_i32_0 = arith.constant 0 : i32
    %c0_i32_1 = arith.constant 0 : i32
    return %c0_i32, %c0_i32_0 : i32, i32
  }
  func.func @transform_4(%arg0: i32, %arg1: i32) -> (i32, i32) {
    %c0_i32 = arith.constant 0 : i32
    %c0_i32_0 = arith.constant 0 : i32
    %c0_i32_1 = arith.constant 0 : i32
    return %c0_i32, %c0_i32_0 : i32, i32
  }
  func.func @transform_5(%arg0: i32, %arg1: i32) -> (i32, i32, i32) {
    %c0_i32 = arith.constant 0 : i32
    %c0_i32_0 = arith.constant 0 : i32
    return %arg0, %c0_i32, %arg1 : i32, i32, i32
  }
}

module attributes {stable_mosaic.version = 11 : i64} {
  func.func @bn_act_kernel(%arg0: i32, %arg1: i32, %arg2: memref<1x4x128xf32, #tpu.memory_space<vmem>>, %arg3: memref<4x1xf32, #tpu.memory_space<vmem>>, %arg4: memref<4x1xf32, #tpu.memory_space<vmem>>, %arg5: memref<4x1xf32, #tpu.memory_space<vmem>>, %arg6: memref<4x1xf32, #tpu.memory_space<vmem>>, %arg7: memref<1x4x128xf32, #tpu.memory_space<vmem>>) attributes {dimension_semantics = [#tpu.dimension_semantics<parallel>, #tpu.dimension_semantics<parallel>], iteration_bounds = array<i64: 2, 1>, scalar_prefetch = 0 : i64, scratch_operands = 0 : i64, tpu.core_type = #tpu.core_type<tc>, window_params = [{transform_indices = @transform_0, window_bounds = array<i64: 1, 4, 128>}, {pipeline_mode = #tpu.pipeline_mode<synchronous>, transform_indices = @transform_1, window_bounds = array<i64: 4, 1>}, {pipeline_mode = #tpu.pipeline_mode<synchronous>, transform_indices = @transform_2, window_bounds = array<i64: 4, 1>}, {pipeline_mode = #tpu.pipeline_mode<synchronous>, transform_indices = @transform_3, window_bounds = array<i64: 4, 1>}, {pipeline_mode = #tpu.pipeline_mode<synchronous>, transform_indices = @transform_4, window_bounds = array<i64: 4, 1>}, {transform_indices = @transform_5, window_bounds = array<i64: 1, 4, 128>}]} {
    %c0 = arith.constant 0 : index
    %c0_0 = arith.constant 0 : index
    %c0_1 = arith.constant 0 : index
    %0 = vector.load %arg2[%c0, %c0_0, %c0_1] : memref<1x4x128xf32, #tpu.memory_space<vmem>>, vector<1x4x128xf32>
    %1 = vector.shape_cast %0 : vector<1x4x128xf32> to vector<4x128xf32>
    %c0_2 = arith.constant 0 : index
    %c0_3 = arith.constant 0 : index
    %2 = vector.load %arg3[%c0_2, %c0_3] : memref<4x1xf32, #tpu.memory_space<vmem>>, vector<4x1xf32>
    %cst = arith.constant 0.027777778 : f32
    %3 = vector.broadcast %cst : f32 to vector<4x1xf32>
    %4 = arith.mulf %2, %3 : vector<4x1xf32>
    %c0_4 = arith.constant 0 : index
    %c0_5 = arith.constant 0 : index
    %5 = vector.load %arg4[%c0_4, %c0_5] : memref<4x1xf32, #tpu.memory_space<vmem>>, vector<4x1xf32>
    %cst_6 = arith.constant 0.027777778 : f32
    %6 = vector.broadcast %cst_6 : f32 to vector<4x1xf32>
    %7 = arith.mulf %5, %6 : vector<4x1xf32>
    %8 = arith.mulf %4, %4 : vector<4x1xf32>
    %9 = arith.subf %7, %8 : vector<4x1xf32>
    %cst_7 = arith.constant 0.000000e+00 : f32
    %10 = vector.broadcast %cst_7 : f32 to vector<4x1xf32>
    %11 = arith.maximumf %9, %10 : vector<4x1xf32>
    %c0_8 = arith.constant 0 : index
    %c0_9 = arith.constant 0 : index
    %12 = vector.load %arg5[%c0_8, %c0_9] : memref<4x1xf32, #tpu.memory_space<vmem>>, vector<4x1xf32>
    %cst_10 = arith.constant 9.99999974E-6 : f32
    %13 = vector.broadcast %cst_10 : f32 to vector<4x1xf32>
    %14 = arith.addf %11, %13 : vector<4x1xf32>
    %15 = math.rsqrt %14 : vector<4x1xf32>
    %16 = arith.mulf %12, %15 : vector<4x1xf32>
    %17 = vector.broadcast %4 : vector<4x1xf32> to vector<4x128xf32>
    %18 = arith.subf %1, %17 : vector<4x128xf32>
    %19 = vector.broadcast %16 : vector<4x1xf32> to vector<4x128xf32>
    %20 = arith.mulf %18, %19 : vector<4x128xf32>
    %c0_11 = arith.constant 0 : index
    %c0_12 = arith.constant 0 : index
    %21 = vector.load %arg6[%c0_11, %c0_12] : memref<4x1xf32, #tpu.memory_space<vmem>>, vector<4x1xf32>
    %22 = vector.broadcast %21 : vector<4x1xf32> to vector<4x128xf32>
    %23 = arith.addf %20, %22 : vector<4x128xf32>
    %cst_13 = arith.constant -3.40282347E+38 : f32
    %cst_14 = arith.constant 3.40282347E+38 : f32
    %24 = vector.broadcast %cst_13 : f32 to vector<4x128xf32>
    %25 = arith.maximumf %24, %23 : vector<4x128xf32>
    %26 = vector.broadcast %cst_14 : f32 to vector<4x128xf32>
    %27 = arith.minimumf %26, %25 : vector<4x128xf32>
    %28 = arith.cmpf one, %27, %27 : vector<4x128xf32>
    %cst_15 = arith.constant 0.000000e+00 : f32
    %29 = vector.broadcast %cst_15 : f32 to vector<4x128xf32>
    %30 = arith.select %28, %29, %27 : vector<4x128xi1>, vector<4x128xf32>
    %31 = math.tanh %30 : vector<4x128xf32>
    %c0_i32 = arith.constant 0 : i32
    %32 = arith.cmpi slt, %arg1, %c0_i32 : i32
    %33 = arith.extui %32 : i1 to i32
    %c0_i32_16 = arith.constant 0 : i32
    %34 = arith.cmpi ne, %33, %c0_i32_16 : i32
    scf.if %34 {
      %c0_19 = arith.constant 0 : index
      %c0_20 = arith.constant 0 : index
      %c0_21 = arith.constant 0 : index
      %38 = vector.load %arg7[%c0_19, %c0_20, %c0_21] : memref<1x4x128xf32, #tpu.memory_space<vmem>>, vector<1x4x128xf32>
      %39 = vector.shape_cast %38 : vector<1x4x128xf32> to vector<4x128xf32>
      %40 = vector.shape_cast %31 : vector<4x128xf32> to vector<1x4x128xf32>
      tpu.vector_store %arg7[%c0_19, %c0_20, %c0_21], %40 {strides = array<i32>} : memref<1x4x128xf32, #tpu.memory_space<vmem>>, vector<1x4x128xf32>,
    } else {
    }
    %c0_i32_17 = arith.constant 0 : i32
    %35 = arith.cmpi sge, %arg1, %c0_i32_17 : i32
    %36 = arith.extui %35 : i1 to i32
    %c0_i32_18 = arith.constant 0 : i32
    %37 = arith.cmpi ne, %36, %c0_i32_18 : i32
    scf.if %37 {
      %c128_i32 = arith.constant 128 : i32
      %38 = arith.muli %arg1, %c128_i32 : i32
      %39 = tpu.iota {dimensions = array<i32: 1>} : vector<4x128xi32>
      %40 = vector.broadcast %38 : i32 to vector<4x128xi32>
      %41 = arith.addi %40, %39 : vector<4x128xi32>
      %c18_i32 = arith.constant 18 : i32
      %42 = vector.broadcast %c18_i32 : i32 to vector<4x128xi32>
      %43 = arith.cmpi slt, %41, %42 : vector<4x128xi32>
      %cst_19 = arith.constant 0.000000e+00 : f32
      %44 = vector.broadcast %cst_19 : f32 to vector<4x128xf32>
      %45 = arith.select %43, %31, %44 : vector<4x128xi1>, vector<4x128xf32>
      %c0_20 = arith.constant 0 : index
      %c0_21 = arith.constant 0 : index
      %c0_22 = arith.constant 0 : index
      %46 = vector.load %arg7[%c0_20, %c0_21, %c0_22] : memref<1x4x128xf32, #tpu.memory_space<vmem>>, vector<1x4x128xf32>
      %47 = vector.shape_cast %46 : vector<1x4x128xf32> to vector<4x128xf32>
      %48 = vector.shape_cast %45 : vector<4x128xf32> to vector<1x4x128xf32>
      tpu.vector_store %arg7[%c0_20, %c0_21, %c0_22], %48 {strides = array<i32>} : memref<1x4x128xf32, #tpu.memory_space<vmem>>, vector<1x4x128xf32>,
    } else {
    }
    return
  }
  func.func @transform_0(%arg0: i32, %arg1: i32) -> (i32, i32, i32) {
    %c0_i32 = arith.constant 0 : i32
    %c0_i32_0 = arith.constant 0 : i32
    return %arg0, %c0_i32, %arg1 : i32, i32, i32
  }
  func.func @transform_1(%arg0: i32, %arg1: i32) -> (i32, i32) {
    %c0_i32 = arith.constant 0 : i32
    %c0_i32_0 = arith.constant 0 : i32
    %c0_i32_1 = arith.constant 0 : i32
    return %c0_i32, %c0_i32_0 : i32, i32
  }
  func.func @transform_2(%arg0: i32, %arg1: i32) -> (i32, i32) {
    %c0_i32 = arith.constant 0 : i32
    %c0_i32_0 = arith.constant 0 : i32
    %c0_i32_1 = arith.constant 0 : i32
    return %c0_i32, %c0_i32_0 : i32, i32
  }
  func.func @transform_3(%arg0: i32, %arg1: i32) -> (i32, i32) {
    %c0_i32 = arith.constant 0 : i32
    %c0_i32_0 = arith.constant 0 : i32
    %c0_i32_1 = arith.constant 0 : i32
    return %c0_i32, %c0_i32_0 : i32, i32
  }
  func.func @transform_4(%arg0: i32, %arg1: i32) -> (i32, i32) {
    %c0_i32 = arith.constant 0 : i32
    %c0_i32_0 = arith.constant 0 : i32
    %c0_i32_1 = arith.constant 0 : i32
    return %c0_i32, %c0_i32_0 : i32, i32
  }
  func.func @transform_5(%arg0: i32, %arg1: i32) -> (i32, i32, i32) {
    %c0_i32 = arith.constant 0 : i32
    %c0_i32_0 = arith.constant 0 : i32
    return %arg0, %c0_i32, %arg1 : i32, i32, i32
  }
}

</mosaic_0001>

<bundles_post_ra>
// kernel: basic_unet_forward.15
= control target key start
LH: loop header
LB: loop body
LE: loop exit
PB: predicated region body
PF: predicated region fallthrough
CT: control target
= control target key end

     0   :  { %s474_s18 = smov 0   ;;  %s476_s19 = smov 0   ;;  %s523_s0 = inlined_call_operand.vmem [shape: f32[2,8,128], index: 0, kind: input, shape index: {}]   ;;  %s524_s1 = inlined_call_operand.vmem [shape: f32[8,1], index: 1, kind: input, shape index: {}]   ;;  %s525_s2 = inlined_call_operand.vmem [shape: f32[8,1], index: 2, kind: input, shape index: {}]   ;;  %s526_s3 = inlined_call_operand.vmem [shape: f32[8,1], index: 3, kind: input, shape index: {}]   ;;  %s527_s4 = inlined_call_operand.vmem [shape: f32[8,1], index: 4, kind: input, shape index: {}]   ;;  %s528_s5 = inlined_call_operand.vmem [shape: f32[2,8,128], index: 5, kind: output, shape index: {}]  }
   0x1   :  { %s478_s20 = smov 0  }
   0x2 LB: > { %s27_s21 = sadd.s32 1, %s437_s19  ;;  %p384_p0 = scmp.ge.s32.totalorder %s441_s20, 1  ;;  %s441_s20 = sphi %s478_s20, %s15_s20   ;;  %s437_s19 = sphi %s476_s19, %s530_s19   ;;  %s433_s18 = sphi %s474_s18, %s529_s18  }
   0x3   : > { %p29_p1 = scmp.ge.s32.totalorder %s27_s21, 2  ;;  %p205_p2 = scmp.lt.s32.totalorder %s441_s20, 3 }
   0x5   : > { %s532_s21 = smov (%p29_p1, %s27_s21), 0  ;;  %p206_p3 = pnand %p384_p0, %p205_p2 }
   0x6   : > { %v252_v0 = vld [vmem:[%s524_s1] sm:$0xff] (!%p206_p3)  ;;  %v443_v2 = vmov (!%p206_p3), 0   ;;  %p237_p4 = scmp.lt.s32.totalorder (!%p206_p3), %s433_s18, 1  ;;  %v299_v19 = vlaneseq (!%p206_p3) }
   0x7   : > { %209 = sbr.rel (%p206_p3) target bundleno = 171 (0xab), region = 40  ;;  %v254_v1 = vld [vmem:[%s525_s2] sm:$0xff] (!%p206_p3)  ;;  %415 = vset.pattern.permute.xlu0 (!%p206_p3), %v443_v2  ;;  %v253_v3 = vmul.f32 (!%p206_p3), 0.0625, %v252_v0  ;;  %416 = vset.pattern.permute.xlu1 (!%p206_p3), %v443_v2 }
   0x8   : > { %v255_v4 = vmul.f32 (!%p206_p3), 0.0625, %v254_v1  ;;  %v275_v5 = vld [vmem:[%s527_s4] sm:$0xff] (!%p206_p3)  ;;  %v300_v21 = vand.u32 (!%p206_p3), 127, %v299_v19 }
   0x9   : > { %278 = vperm.xlu1 (!%p206_p3), %416, %v275_v5   ;;  %265 = vperm.xlu0 (!%p206_p3), %415, %v253_v3   ;;  %v256_v6 = vmul.f32 (!%p206_p3), %v253_v3, %v253_v3  ;;  %v259_v10 = vld [vmem:[%s526_s3] sm:$0xff] (!%p206_p3) }
   0xa   : > { %vm303_vm1 = vcmp.lt.s32.totalorder (!%p206_p3), %v300_v21, 8 }
   0xb   : > { %v257_v7 = vsub.f32 (!%p206_p3), %v255_v4, %v256_v6 }
   0xd   : > { %v258_v8 = vmax.f32 (!%p206_p3), %v257_v7, 0.0 }
   0xe   : > { %s534_s18 = smov (!%p237_p4, %s433_s18), 1 }
   0xf   : > { %v260_v9 = vadd.f32 1e-05, %v258_v8  ;;  %s385_s30 = sshll.u32 %s534_s18, 3 }
  0x10   : > { %s243_s8 = scalar_lea.vmem %s523_s0, %s385_s30  ;;  %s250_s11 = scalar_lea.vmem %s528_s5, %s385_s30 }
  0x11   : > { %417 = vrsqrt.f32 %v260_v9  ;;  %v251_v14 = vld [vmem:[%s243_s8] sm:$0xff] }
  0x1b   : > { %v418_v11 = vpop.eup %417 }
  0x1c   : > { %v262_v12 = vmul.f32 %v418_v11, %v259_v10 }
  0x1e   : > { %271 = vperm.xlu0 %415, %v262_v12  }
  0x88   : > { %v266_v13 = vpop.permute.xlu0 %265  ;;  %v279_v17 = vpop.permute.xlu1 %278 }
  0x89   : > { %v268_v15 = vsub.f32 %v251_v14, %v266_v13 }
  0x9d   : > { %v272_v16 = vpop.permute.xlu0 %271 }
  0x9e   : > { %v274_v18 = vmul.f32 %v272_v16, %v268_v15 }
  0xa0   : > { %v281_v20 = vadd.f32 %v279_v17, %v274_v18 }
  0xa2   : > { %v387_v22 = vclamps-f32 %v281_v20, 3.4028235e+38 }
  0xa4   : > { %vm284_vm0 = vcmp.ne.f32.partialorder %v387_v22, %v387_v22 }
  0xa5   : > { %v285_v23 = vsel %vm284_vm0, 0.0, %v387_v22 }
  0xa6   : > { %vm286_vm2 = vcmp.ge.f32.partialorder %v285_v23, 0.0  ;;  %v287_v24 = vmul.f32 0.01, %v285_v23 }
  0xa8   : > { %v288_v25 = vsel %vm286_vm2, %v285_v23, %v287_v24 }
  0xa9   : > { %v304_v26 = vsel %vm303_vm1, %v288_v25, 0.0 }
  0xaa   : > { %305 = vst [vmem:[%s250_s11] sm:$0xff] %v304_v26 }
  0xab PF: > { %s15_s20 = sadd.s32 1, %s441_s20   ;;  %s529_s18 = smov %s437_s19 }
  0xac   : > { %p12_p5 = scmp.ge.s32.totalorder %s15_s20, 4   ;;  %s530_s19 = smov %s532_s21 }
  0xae   :  { %14 = sbr.rel (!%p12_p5) target bundleno = 2 (0x2), region = 78 }

// kernel: basic_unet_forward.14
= control target key start
LH: loop header
LB: loop body
LE: loop exit
PB: predicated region body
PF: predicated region fallthrough
CT: control target
= control target key end

     0   :  { %s801_s21 = smov 0   ;;  %s803_s22 = smov 0   ;;  %s866_s0 = inlined_call_operand.vmem [shape: f32[2,8,256], index: 0, kind: input, shape index: {}, may-alias: {0,1}]   ;;  %s867_s1 = inlined_call_operand.vmem [shape: f32[2,8,256], index: 1, kind: input, shape index: {}, may-alias: {0,1}]   ;;  %s868_s2 = inlined_call_operand.vmem [shape: f32[8,16], index: 2, kind: input, shape index: {}]   ;;  %s869_s3 = inlined_call_operand.vmem [shape: f32[8,1], index: 3, kind: input, shape index: {}]   ;;  %s870_s4 = inlined_call_operand.vmem [shape: f32[2,8,128], index: 4, kind: output, shape index: {0}]   ;;  %s871_s5 = inlined_call_operand.vmem [shape: f32[8,1], index: 5, kind: output, shape index: {1}]   ;;  %s872_s6 = inlined_call_operand.vmem [shape: f32[8,1], index: 6, kind: output, shape index: {2}]  }
   0x1   :  { %s805_s23 = smov 0  }
   0x2 LB: > { %s29_s24 = sadd.s32 1, %s753_s22  ;;  %p667_p0 = scmp.ge.s32.totalorder %s757_s23, 1  ;;  %s757_s23 = sphi %s805_s23, %s17_s23   ;;  %s753_s22 = sphi %s803_s22, %s874_s22   ;;  %s749_s21 = sphi %s801_s21, %s873_s21  }
   0x3   : > { %p31_p1 = scmp.ge.s32.totalorder %s29_s24, 2  ;;  %p245_p2 = scmp.lt.s32.totalorder %s757_s23, 3 }
   0x5   : > { %s876_s24 = smov (%p31_p1, %s29_s24), 0  ;;  %p246_p3 = pnand %p667_p0, %p245_p2 }
   0x6   : > { %p289_p4 = scmp.lt.s32.totalorder (!%p246_p3), %s749_s21, 1  ;;  %p314_p5 = scmp.eq.s32.totalorder (!%p246_p3), %s749_s21, 0 }
   0x7   : > { %249 = sbr.rel (%p246_p3) target bundleno = 530 (0x212), region = 36 }
   0xe   : > { %s878_s21 = smov (!%p289_p4, %s749_s21), 1  ;;  %319 = sbr.rel (!%p314_p5) target bundleno = 21 (0x15), region = 40 }
   0xf   : > { %s679_s25 = sshll.u32 %s878_s21, 4  ;;  %s672_s26 = sshll.u32 %s878_s21, 3  ;;  %vm320_vm0 = vcmask (%p314_p5), 7168   ;;  %v759_v0 = vmov (%p314_p5), 0.0  }
  0x10   : > { %s296_s29 = scalar_lea.vmem %s866_s0, %s679_s25  ;;  %s681_s30 = sadd.s32 8, %s679_s25  ;;  %321 = vst.msk [vmem:[%s871_s5] sm:$0xff] (%p314_p5), %vm320_vm0, %v759_v0  ;;  %322 = vst.msk [vmem:[%s872_s6] sm:$0xff] (%p314_p5), %vm320_vm0, %v759_v0 }
  0x11   : > { %s305_s9 = scalar_lea.vmem %s867_s1, %s681_s30  ;;  %s828_s12 = scalar_lea.vmem %s870_s4, %s672_s26 }
  0x15 PF: > { %v323_v1 = vld [vmem:[%s296_s29] sm:$0xff]  ;;  %s760_s19 = smov 120   ;;  %v761_v6 = vmov 0.0   ;;  %vm762_vm1 = vmmov 0   ;;  %v763_v13 = vmov 0   ;;  %v764_v14 = vmov -1.0  }
  0x16   : > { %v335_v2 = vld [vmem:[%s305_s9] sm:$0xff]  ;;  %v326_v4 = vand.u32 2147483647, %v323_v1  ;;  %693 = vmatprep.subr.mxu1 %v761_v6  ;;  %688 = vmatprep.subr.mxu0 %v761_v6  ;;  %vm324_vm2 = vcmp.gt.f32.partialorder %v323_v1, 0.0  ;;  %vm360_vm8 = vcmask 64512   ;;  %s765_s25 = smov 127   ;;  %v538_v30 = vlaneseq }
  0x17   : > { %v347_v3 = vld [vmem:[%s868_s2] sm:$0xff]  ;;  %v338_v5 = vand.u32 2147483647, %v335_v2  ;;  %695 = vmatprep.mubr.msk.f32.mxu1 %vm762_vm1, %v761_v6  ;;  %690 = vmatprep.mubr.msk.f32.mxu0 %vm762_vm1, %v761_v6  ;;  %vm336_vm4 = vcmp.gt.f32.partialorder %v335_v2, 0.0  ;;  %v325_v15 = vsel %vm324_vm2, 1.0, %v764_v14  ;;  %vm357_vm9 = vcmask 1039360  }
  0x18   : > { %349 = vrot.lane.b32.xlu1 %v347_v3, %s760_s19  ;;  %731 = vrsqrt.f32 %v326_v4  ;;  %vm329_vm3 = vcmp.eq.f32.partialorder %v326_v4, inf  ;;  %v332_v8 = vand.u32 2147483648, %v326_v4  ;;  %v505_v9 = vld [vmem:[%s869_s3] sm:$0xff]  ;;  %vm331_vm5 = vcmp.eq.f32.partialorder %v326_v4, 0.0  ;;  %730 = vset.pattern.permute.xlu0 %v763_v13 }
  0x19   : > { %733 = vrsqrt.f32 %v338_v5  ;;  %vm341_vm6 = vcmp.eq.f32.partialorder %v338_v5, inf  ;;  %v344_v12 = vand.u32 2147483648, %v338_v5  ;;  %729 = vset.pattern.permute.xlu1 %v763_v13  ;;  %vm343_vm7 = vcmp.eq.f32.partialorder %v338_v5, 0.0  ;;  %v544_v41 = vld [vmem:[%s871_s5] sm:$0xff] }
  0x1a   : > { %v337_v19 = vsel %vm336_vm4, 1.0, %v764_v14  ;;  %v539_v35 = vand.u32 127, %v538_v30  ;;  %vm548_vm12 = vcmask 7168   ;;  %v550_v43 = vld [vmem:[%s872_s6] sm:$0xff] }
  0x1c   : > { %508 = vperm.xlu1 %729, %v505_v9   ;;  %vm542_vm10 = vcmp.lt.s32.totalorder %v539_v35, 8 }
  0x22   : > { %v732_v7 = vpop.eup %731 }
  0x23   : > { %v734_v10 = vpop.eup %733  ;;  %v328_v11 = vmul.f32 %v732_v7, %v326_v4 }
  0x24   : > { %v340_v16 = vmul.f32 %v734_v10, %v338_v5 }
  0x25   : > { %v330_v17 = vsel %vm329_vm3, %v326_v4, %v328_v11 }
  0x26   : > { %v333_v18 = vsel %vm331_vm5, %v332_v8, %v330_v17  ;;  %v342_v20 = vsel %vm341_vm6, %v338_v5, %v340_v16 }
  0x27   : > { %v334_v21 = vmul.f32 %v333_v18, %v325_v15  ;;  %v345_v22 = vsel %vm343_vm7, %v344_v12, %v342_v20 }
  0x28   : > { %v346_v23 = vmul.f32 %v345_v22, %v337_v19 }
  0x29   : > { %353 = vrot.lane.b32.xlu0 %v334_v21, %s765_s25  ;;  %694 = vmatpush3.msra.mxu1 %v334_v21 }
  0x2a   : > { %696 = vmatmul.mubr.msk.f32.vlgmr.msra.gmra.mrb[0].mxu1 %vm360_vm8, %v347_v3 }
  0x2d   : > { %355 = vrot.lane.b32.xlu0 %v346_v23, %s765_s25 }
  0x8a   : > { %v350_v26 = vpop.permute.xlu1 %349 }
  0x9b   : > { %v354_v24 = vpop.permute.xlu0 %353  ;;  %v509_v32 = vpop.permute.xlu1 %508 }
  0x9f   : > { %v356_v25 = vpop.permute.xlu0 %355 }
  0xa0   : > { %v358_v27 = vsel %vm357_vm9, %v354_v24, %v356_v25 }
  0xa1   : > { %689 = vmatpush3.msra.mxu0 %v358_v27 }
  0xa2   : > { %691 = vmatmul.mubr.msk.f32.vlgmr.msra.gmra.mrb[0].mxu0 %vm360_vm8, %v350_v26 }
  0xfd   : > { %v501_v28 = vpop.f32.mrb[0].mxu1 }
  0xfe   : > { %v697_v29 = vpop.f32.mrb[1].mxu1 }
 0x175   : > { %v429_v31 = vpop.f32.mrb[0].mxu0 }
 0x176   : > { %v502_v33 = vadd.f32 %v501_v28, %v429_v31  ;;  %v692_v34 = vpop.f32.mrb[1].mxu0 }
 0x178   : > { %v511_v36 = vadd.f32 %v509_v32, %v502_v33 }
 0x17a   : > { %v676_v37 = vclamps-f32 %v511_v36, 3.4028235e+38 }
 0x17c   : > { %vm514_vm11 = vcmp.ne.f32.partialorder %v676_v37, %v676_v37 }
 0x17d   : > { %v515_v38 = vsel %vm514_vm11, 0.0, %v676_v37 }
 0x17e   : > { %v543_v39 = vsel %vm542_vm10, %v515_v38, 0.0  ;;  %516 = vst [vmem:[%s828_s12] sm:$0xff] %v515_v38 }
 0x17f   : > { %545 = vadd.xlane.f32.xlu0 %v543_v39  ;;  %v551_v40 = vmul.f32 %v543_v39, %v543_v39 }
 0x181   : > { %552 = vadd.xlane.f32.xlu1 %v551_v40 }
 0x20c   : > { %v546_v42 = vpop.xlane.xlu0 %545 }
 0x20d   : > { %v547_v44 = vadd.f32 %v546_v42, %v544_v41 }
 0x20e   : > { %v553_v45 = vpop.xlane.xlu1 %552 }
 0x20f   : > { %549 = vst.msk [vmem:[%s871_s5] sm:$0xff] %vm548_vm12, %v547_v44  ;;  %v554_v46 = vadd.f32 %v553_v45, %v550_v43 }
 0x211   : > { %555 = vst.msk [vmem:[%s872_s6] sm:$0xff] %vm548_vm12, %v554_v46 }
 0x212 PF: > { %s17_s23 = sadd.s32 1, %s757_s23   ;;  %s873_s21 = smov %s753_s22 }
 0x213   : > { %p14_p6 = scmp.ge.s32.totalorder %s17_s23, 4   ;;  %s874_s22 = smov %s876_s24 }
 0x215   :  { %16 = sbr.rel (!%p14_p6) target bundleno = 2 (0x2), region = 97 }

// kernel: basic_unet_forward.17
= control target key start
LH: loop header
LB: loop body
LE: loop exit
PB: predicated region body
PF: predicated region fallthrough
CT: control target
= control target key end

     0   :  { %s474_s18 = smov 0   ;;  %s476_s19 = smov 0   ;;  %s523_s0 = inlined_call_operand.vmem [shape: f32[2,8,128], index: 0, kind: input, shape index: {}]   ;;  %s524_s1 = inlined_call_operand.vmem [shape: f32[8,1], index: 1, kind: input, shape index: {}]   ;;  %s525_s2 = inlined_call_operand.vmem [shape: f32[8,1], index: 2, kind: input, shape index: {}]   ;;  %s526_s3 = inlined_call_operand.vmem [shape: f32[8,1], index: 3, kind: input, shape index: {}]   ;;  %s527_s4 = inlined_call_operand.vmem [shape: f32[8,1], index: 4, kind: input, shape index: {}]   ;;  %s528_s5 = inlined_call_operand.vmem [shape: f32[2,8,128], index: 5, kind: output, shape index: {}]  }
   0x1   :  { %s478_s20 = smov 0  }
   0x2 LB: > { %s27_s21 = sadd.s32 1, %s437_s19  ;;  %p384_p0 = scmp.ge.s32.totalorder %s441_s20, 1  ;;  %s441_s20 = sphi %s478_s20, %s15_s20   ;;  %s437_s19 = sphi %s476_s19, %s530_s19   ;;  %s433_s18 = sphi %s474_s18, %s529_s18  }
   0x3   : > { %p29_p1 = scmp.ge.s32.totalorder %s27_s21, 2  ;;  %p205_p2 = scmp.lt.s32.totalorder %s441_s20, 3 }
   0x5   : > { %s532_s21 = smov (%p29_p1, %s27_s21), 0  ;;  %p206_p3 = pnand %p384_p0, %p205_p2 }
   0x6   : > { %v252_v0 = vld [vmem:[%s524_s1] sm:$0xff] (!%p206_p3)  ;;  %v443_v2 = vmov (!%p206_p3), 0   ;;  %p237_p4 = scmp.lt.s32.totalorder (!%p206_p3), %s433_s18, 1  ;;  %v299_v19 = vlaneseq (!%p206_p3) }
   0x7   : > { %209 = sbr.rel (%p206_p3) target bundleno = 171 (0xab), region = 40  ;;  %v254_v1 = vld [vmem:[%s525_s2] sm:$0xff] (!%p206_p3)  ;;  %415 = vset.pattern.permute.xlu0 (!%p206_p3), %v443_v2  ;;  %v253_v3 = vmul.f32 (!%p206_p3), 0.16666667, %v252_v0  ;;  %416 = vset.pattern.permute.xlu1 (!%p206_p3), %v443_v2 }
   0x8   : > { %v255_v4 = vmul.f32 (!%p206_p3), 0.16666667, %v254_v1  ;;  %v275_v5 = vld [vmem:[%s527_s4] sm:$0xff] (!%p206_p3)  ;;  %v300_v21 = vand.u32 (!%p206_p3), 127, %v299_v19 }
   0x9   : > { %278 = vperm.xlu1 (!%p206_p3), %416, %v275_v5   ;;  %265 = vperm.xlu0 (!%p206_p3), %415, %v253_v3   ;;  %v256_v6 = vmul.f32 (!%p206_p3), %v253_v3, %v253_v3  ;;  %v259_v10 = vld [vmem:[%s526_s3] sm:$0xff] (!%p206_p3) }
   0xa   : > { %vm303_vm1 = vcmp.lt.s32.totalorder (!%p206_p3), %v300_v21, 3 }
   0xb   : > { %v257_v7 = vsub.f32 (!%p206_p3), %v255_v4, %v256_v6 }
   0xd   : > { %v258_v8 = vmax.f32 (!%p206_p3), %v257_v7, 0.0 }
   0xe   : > { %s534_s18 = smov (!%p237_p4, %s433_s18), 1 }
   0xf   : > { %v260_v9 = vadd.f32 1e-05, %v258_v8  ;;  %s385_s30 = sshll.u32 %s534_s18, 3 }
  0x10   : > { %s243_s8 = scalar_lea.vmem %s523_s0, %s385_s30  ;;  %s250_s11 = scalar_lea.vmem %s528_s5, %s385_s30 }
  0x11   : > { %417 = vrsqrt.f32 %v260_v9  ;;  %v251_v14 = vld [vmem:[%s243_s8] sm:$0xff] }
  0x1b   : > { %v418_v11 = vpop.eup %417 }
  0x1c   : > { %v262_v12 = vmul.f32 %v418_v11, %v259_v10 }
  0x1e   : > { %271 = vperm.xlu0 %415, %v262_v12  }
  0x88   : > { %v266_v13 = vpop.permute.xlu0 %265  ;;  %v279_v17 = vpop.permute.xlu1 %278 }
  0x89   : > { %v268_v15 = vsub.f32 %v251_v14, %v266_v13 }
  0x9d   : > { %v272_v16 = vpop.permute.xlu0 %271 }
  0x9e   : > { %v274_v18 = vmul.f32 %v272_v16, %v268_v15 }
  0xa0   : > { %v281_v20 = vadd.f32 %v279_v17, %v274_v18 }
  0xa2   : > { %v387_v22 = vclamps-f32 %v281_v20, 3.4028235e+38 }
  0xa4   : > { %vm284_vm0 = vcmp.ne.f32.partialorder %v387_v22, %v387_v22 }
  0xa5   : > { %v285_v23 = vsel %vm284_vm0, 0.0, %v387_v22 }
  0xa6   : > { %vm286_vm2 = vcmp.ge.f32.partialorder %v285_v23, 0.0  ;;  %v287_v24 = vmul.f32 0.01, %v285_v23 }
  0xa8   : > { %v288_v25 = vsel %vm286_vm2, %v285_v23, %v287_v24 }
  0xa9   : > { %v304_v26 = vsel %vm303_vm1, %v288_v25, 0.0 }
  0xaa   : > { %305 = vst [vmem:[%s250_s11] sm:$0xff] %v304_v26 }
  0xab PF: > { %s15_s20 = sadd.s32 1, %s441_s20   ;;  %s529_s18 = smov %s437_s19 }
  0xac   : > { %p12_p5 = scmp.ge.s32.totalorder %s15_s20, 4   ;;  %s530_s19 = smov %s532_s21 }
  0xae   :  { %14 = sbr.rel (!%p12_p5) target bundleno = 2 (0x2), region = 78 }

// kernel: basic_unet_forward.16
= control target key start
LH: loop header
LB: loop body
LE: loop exit
PB: predicated region body
PF: predicated region fallthrough
CT: control target
= control target key end

     0   :  { %s907_s21 = smov 0   ;;  %s909_s22 = smov 0   ;;  %s1016_s0 = inlined_call_operand.vmem [shape: f32[2,16,256], index: 0, kind: input, shape index: {}, may-alias: {0,1}]   ;;  %s1017_s1 = inlined_call_operand.vmem [shape: f32[2,16,256], index: 1, kind: input, shape index: {}, may-alias: {0,1}]   ;;  %s1018_s2 = inlined_call_operand.vmem [shape: f32[8,32], index: 2, kind: input, shape index: {}]   ;;  %s1019_s3 = inlined_call_operand.vmem [shape: f32[8,1], index: 3, kind: input, shape index: {}]   ;;  %s1020_s4 = inlined_call_operand.vmem [shape: f32[2,8,128], index: 4, kind: output, shape index: {0}]   ;;  %s1021_s5 = inlined_call_operand.vmem [shape: f32[8,1], index: 5, kind: output, shape index: {1}]   ;;  %s1022_s6 = inlined_call_operand.vmem [shape: f32[8,1], index: 6, kind: output, shape index: {2}]  }
   0x1   :  { %s911_s23 = smov 0   ;;  %s913_s24 = smov 0  }
   0x2   :  { %s915_s25 = smov 0  }
   0x3 LB: > { %s29_s26 = sadd.s32 1, %s859_s24  ;;  %p45_p1 = scmp.ne.s32.totalorder %s851_s22, %s847_s21  ;;  %s863_s25 = sphi %s915_s25, %s17_s25   ;;  %s859_s24 = sphi %s913_s24, %s1027_s24   ;;  %s855_s23 = sphi %s911_s23, %s1026_s23   ;;  %s851_s22 = sphi %s909_s22, %s1025_s22   ;;  %s847_s21 = sphi %s907_s21, %s1024_s21  }
   0x4   : > { %p31_p0 = scmp.ge.s32.totalorder %s29_s26, 2  ;;  %p46_p2 = scmp.eq.s32.totalorder %s863_s25, 0 }
   0x5   : > { %s38_s29 = sadd.s32 1, %s851_s22  ;;  %p718_p5 = scmp.ge.s32.totalorder %s863_s25, 2 }
   0x6   : > { %s1029_s26 = smov (%p31_p0, %s29_s26), 0  ;;  %p938_p3 = por %p46_p2, %p45_p1 }
   0x7   : > { %s33_s28 = ssub.s32 %s859_s24, %s1029_s26  ;;  %219 = sbr.rel (%p718_p5) target bundleno = 28 (0x1c), region = 24 }
   0x8   : > { %p36_p4 = scmp.eq.s32.totalorder %s33_s28, 0 }
   0xa   : > { %s946_s30 = scalar_select %p36_p4, %s851_s22, %s38_s29  }
   0xe   : > { %222 = sbr.rel (!%p938_p3) target bundleno = 21 (0x15), region = 28  ;;  %s224_s7 = sand.u32 (%p938_p3), 1, %s851_s22  }
   0xf   : > { %s737_s8 = sshll.u32 (%p938_p3), %s859_s24, 5  ;;  %s719_s9 = sshll.u32 (%p938_p3), %s224_s7, 4 }
  0x10   : > { %s230_s12 = scalar_lea.vmem (%p938_p3), %s1016_s0, %s737_s8  ;;  %s226_s13 = scalar_lea.vmem (%p938_p3), [#allocation2], %s719_s9 }
  0x11   : > { %v260_v0 = vld [vmem:[%s230_s12] sm:$0xff] (%p938_p3)  ;;  %v262_v1 = vld [vmem:[%s230_s12 + $0x10] sm:$0xff] (%p938_p3) }
  0x12   : > { %261 = vst [vmem:[%s226_s13] sm:$0xff] (%p938_p3), %v260_v0  ;;  %263 = vst [vmem:[%s226_s13 + $0x8] sm:$0xff] (%p938_p3), %v262_v1 }
  0x15 PF: > { %269 = sbr.rel (!%p938_p3) target bundleno = 28 (0x1c), region = 66  ;;  %s271_s14 = sand.u32 (%p938_p3), 1, %s851_s22  }
  0x16   : > { %s738_s15 = sshll.u32 (%p938_p3), %s859_s24, 5  ;;  %s722_s16 = sshll.u32 (%p938_p3), %s271_s14, 4 }
  0x17   : > { %s651_s19 = scalar_lea.vmem (%p938_p3), %s1017_s1, %s738_s15  ;;  %s273_s20 = scalar_lea.vmem (%p938_p3), [#allocation3], %s722_s16 }
  0x18   : > { %v725_v2 = vld [vmem:[%s651_s19 + $0x8] sm:$0xff] (%p938_p3)  ;;  %v726_v3 = vld [vmem:[%s651_s19 + $0x18] sm:$0xff] (%p938_p3) }
  0x19   : > { %309 = vst [vmem:[%s273_s20] sm:$0xff] (%p938_p3), %v725_v2  ;;  %311 = vst [vmem:[%s273_s20 + $0x8] sm:$0xff] (%p938_p3), %v726_v3 }
  0x1c PF: > { %p727_p6 = scmp.ge.s32.totalorder %s863_s25, 1  ;;  %p316_p7 = scmp.lt.s32.totalorder %s863_s25, 3 }
  0x1e   : > { %p317_p8 = pnand %p727_p6, %p316_p7 }
  0x1f   : > { %s323_s27 = sand.u32 (!%p317_p8), 1, %s847_s21   ;;  %p366_p9 = scmp.lt.s32.totalorder (!%p317_p8), %s855_s23, 1 }
  0x20   : > { %320 = sbr.rel (%p317_p8) target bundleno = 545 (0x221), region = 104  ;;  %s728_s28 = sshll.u32 (!%p317_p8), %s323_s27, 4 }
  0x21   : > { %p373_p10 = scmp.eq.s32.totalorder (!%p317_p8), %s855_s23, 0  ;;  %s325_s10 = scalar_lea.vmem (!%p317_p8), [#allocation2], %s728_s28 }
  0x22   : > { %s332_s11 = scalar_lea.vmem (!%p317_p8), [#allocation3], %s728_s28 }
  0x27   : > { %s1031_s23 = smov (!%p366_p9, %s855_s23), 1  ;;  %378 = sbr.rel (!%p373_p10) target bundleno = 46 (0x2e), region = 116 }
  0x28   : > { %s730_s29 = sshll.u32 %s1031_s23, 3  ;;  %vm379_vm0 = vcmask (%p373_p10), 7168   ;;  %v865_v4 = vmov (%p373_p10), 0.0  }
  0x29   : > { %s972_s9 = scalar_lea.vmem %s1020_s4, %s730_s29  ;;  %380 = vst.msk [vmem:[%s1021_s5] sm:$0xff] (%p373_p10), %vm379_vm0, %v865_v4  ;;  %381 = vst.msk [vmem:[%s1022_s6] sm:$0xff] (%p373_p10), %vm379_vm0, %v865_v4 }
  0x2e PF: > { %v382_v5 = vld [vmem:[%s325_s10] sm:$0xff]  ;;  %v383_v7 = vld [vmem:[%s325_s10 + $0x8] sm:$0xff]  ;;  %v866_v11 = vmov 0.0|0.0   ;;  %s867_s16 = smov 112   ;;  %s868_s17 = smov 127   ;;  %vm407_vm1 = vcmask 130048   ;;  %v585_v29 = vlaneseq }
  0x2f   : > { %v384_v6 = vld [vmem:[%s332_s11] sm:$0xff]  ;;  %v385_v9 = vld [vmem:[%s332_s11 + $0x8] sm:$0xff]  ;;  %763 = vmatprep.subr.bf16.mxu1 %v866_v11  ;;  %760 = vmatprep.subr.bf16.mxu0 %v866_v11  ;;  %v764_v12 = vpack.c.bf16 %v383_v7, %v382_v5  ;;  %vm869_vm2 = vmmov 0   ;;  %v870_v15 = vmov 0.0   ;;  %v871_v16 = vmov 0  }
  0x30   : > { %v813_v8 = vpack.i.bf16 %v384_v6, %v382_v5  ;;  %v386_v10 = vld [vmem:[%s1018_s2] sm:$0xff]  ;;  %v818_v13 = vpack.i.bf16 %v385_v9, %v383_v7  ;;  %757 = vmatprep.mubr.msk.f32.mxu1 %vm869_vm2, %v870_v15  ;;  %750 = vmatprep.mubr.msk.f32.mxu0 %vm869_vm2, %v870_v15  ;;  %vm402_vm3 = vcmask 1039360   ;;  %v586_v34 = vand.u32 127, %v585_v29 }
  0x31   : > { %388 = vrot.lane.b32.xlu1 %v386_v10, %s867_s16  ;;  %765 = vmatpush3.bf16.msra.mxu1 %v764_v12  ;;  %v552_v14 = vld [vmem:[%s1019_s3] sm:$0xff]  ;;  %vm595_vm6 = vcmask 7168  }
  0x32   : > { %814 = vrot.lane.b32.xlu0 %v813_v8, %s868_s17  ;;  %823 = vset.pattern.permute.xlu1 %v871_v16  ;;  %vm589_vm4 = vcmp.lt.s32.totalorder %v586_v34, 3  ;;  %v591_v40 = vld [vmem:[%s1021_s5] sm:$0xff] }
  0x33   : > { %824 = vset.pattern.permute.xlu0 %v871_v16  ;;  %v597_v42 = vld [vmem:[%s1022_s6] sm:$0xff] }
  0x34   : > { %758 = vmatmul.mubr.msk.f32.vlgmr.msra.gmra.mrb[0].mxu1 %vm407_vm1, %v386_v10 }
  0x35   : > { %555 = vperm.xlu1 %823, %v552_v14  }
  0x36   : > { %819 = vrot.lane.b32.xlu0 %v818_v13, %s868_s17 }
  0xa3   : > { %v389_v26 = vpop.permute.xlu1 %388 }
  0xa4   : > { %v815_v17 = vpop.permute.xlu0 %814 }
  0xa5   : > { %v817_v18 = vunpack.i.h.bf16 %v815_v17  ;;  %v816_v19 = vunpack.i.l.bf16 %v815_v17 }
  0xa7   : > { %v403_v23 = vsel %vm402_vm3, %v816_v19, %v817_v18 }
  0xa8   : > { %v820_v20 = vpop.permute.xlu0 %819 }
  0xa9   : > { %v822_v21 = vunpack.i.h.bf16 %v820_v20  ;;  %v821_v22 = vunpack.i.l.bf16 %v820_v20 }
  0xab   : > { %v404_v24 = vsel %vm402_vm3, %v821_v22, %v822_v21 }
  0xac   : > { %v761_v25 = vpack.c.bf16 %v404_v24, %v403_v23 }
  0xae   : > { %762 = vmatpush3.bf16.msra.mxu0 %v761_v25 }
  0xb1   : > { %751 = vmatmul.mubr.msk.f32.vlgmr.msra.gmra.mrb[0].mxu0 %vm407_vm1, %v389_v26 }
  0xb4   : > { %v556_v31 = vpop.permute.xlu1 %555 }
 0x107   : > { %v548_v27 = vpop.f32.mrb[0].mxu1 }
 0x108   : > { %v759_v28 = vpop.f32.mrb[1].mxu1 }
 0x184   : > { %v476_v30 = vpop.f32.mrb[0].mxu0 }
 0x185   : > { %v549_v32 = vadd.f32 %v548_v27, %v476_v30  ;;  %v752_v33 = vpop.f32.mrb[1].mxu0 }
 0x187   : > { %v558_v35 = vadd.f32 %v556_v31, %v549_v32 }
 0x189   : > { %v734_v36 = vclamps-f32 %v558_v35, 3.4028235e+38 }
 0x18b   : > { %vm561_vm5 = vcmp.ne.f32.partialorder %v734_v36, %v734_v36 }
 0x18c   : > { %v562_v37 = vsel %vm561_vm5, 0.0, %v734_v36 }
 0x18d   : > { %v590_v38 = vsel %vm589_vm4, %v562_v37, 0.0  ;;  %563 = vst [vmem:[%s972_s9] sm:$0xff] %v562_v37 }
 0x18e   : > { %592 = vadd.xlane.f32.xlu0 %v590_v38  ;;  %v598_v39 = vmul.f32 %v590_v38, %v590_v38 }
 0x190   : > { %599 = vadd.xlane.f32.xlu1 %v598_v39 }
 0x21b   : > { %v593_v41 = vpop.xlane.xlu0 %592 }
 0x21c   : > { %v594_v43 = vadd.f32 %v593_v41, %v591_v40 }
 0x21d   : > { %v600_v44 = vpop.xlane.xlu1 %599 }
 0x21e   : > { %596 = vst.msk [vmem:[%s1021_s5] sm:$0xff] %vm595_vm6, %v594_v43  ;;  %v601_v45 = vadd.f32 %v600_v44, %v597_v42 }
 0x220   : > { %602 = vst.msk [vmem:[%s1022_s6] sm:$0xff] %vm595_vm6, %v601_v45 }
 0x221 PF: > { %s17_s25 = sadd.s32 1, %s863_s25   ;;  %s1024_s21 = smov %s851_s22 }
 0x222   : > { %p14_p11 = scmp.ge.s32.totalorder %s17_s25, 4   ;;  %s1025_s22 = smov %s946_s30 }
 0x223   : > { %s1026_s23 = smov %s859_s24  ;;  %s1027_s24 = smov %s1029_s26 }
 0x224   :  { %16 = sbr.rel (!%p14_p11) target bundleno = 3 (0x3), region = 183 }

// kernel: basic_unet_forward.18
= control target key start
LH: loop header
LB: loop body
LE: loop exit
PB: predicated region body
PF: predicated region fallthrough
CT: control target
= control target key end

     0   :  { %s574_s18 = smov 0   ;;  %s576_s19 = smov 0   ;;  %s634_s0 = inlined_call_operand.vmem [shape: f32[2,8,128], index: 0, kind: input, shape index: {}]   ;;  %s635_s1 = inlined_call_operand.vmem [shape: f32[8,8], index: 1, kind: input, shape index: {}]   ;;  %s636_s2 = inlined_call_operand.vmem [shape: f32[8,1], index: 2, kind: input, shape index: {}]   ;;  %s637_s3 = inlined_call_operand.vmem [shape: f32[2,8,128], index: 3, kind: output, shape index: {0}]   ;;  %s638_s4 = inlined_call_operand.vmem [shape: f32[8,1], index: 4, kind: output, shape index: {1}]   ;;  %s639_s5 = inlined_call_operand.vmem [shape: f32[8,1], index: 5, kind: output, shape index: {2}]  }
   0x1   :  { %s578_s20 = smov 0  }
   0x2 LB: > { %s28_s21 = sadd.s32 1, %s534_s19  ;;  %p471_p0 = scmp.ge.s32.totalorder %s538_s20, 1  ;;  %s538_s20 = sphi %s578_s20, %s16_s20   ;;  %s534_s19 = sphi %s576_s19, %s641_s19   ;;  %s530_s18 = sphi %s574_s18, %s640_s18  }
   0x3   : > { %p30_p1 = scmp.ge.s32.totalorder %s28_s21, 2  ;;  %p200_p2 = scmp.lt.s32.totalorder %s538_s20, 3 }
   0x5   : > { %s643_s21 = smov (%p30_p1, %s28_s21), 0  ;;  %p201_p3 = pnand %p471_p0, %p200_p2 }
   0x6   : > { %p232_p4 = scmp.lt.s32.totalorder (!%p201_p3), %s530_s18, 1  ;;  %p246_p5 = scmp.eq.s32.totalorder (!%p201_p3), %s530_s18, 0 }
   0x7   : > { %204 = sbr.rel (%p201_p3) target bundleno = 390 (0x186), region = 32 }
   0xe   : > { %s645_s18 = smov (!%p232_p4, %s530_s18), 1  ;;  %251 = sbr.rel (!%p246_p5) target bundleno = 21 (0x15), region = 36 }
   0xf   : > { %s472_s22 = sshll.u32 %s645_s18, 3  ;;  %vm252_vm0 = vcmask (%p246_p5), 7168   ;;  %v540_v0 = vmov (%p246_p5), 0.0  }
  0x10   : > { %s238_s25 = scalar_lea.vmem %s634_s0, %s472_s22  ;;  %s598_s28 = scalar_lea.vmem %s637_s3, %s472_s22  ;;  %253 = vst.msk [vmem:[%s638_s4] sm:$0xff] (%p246_p5), %vm252_vm0, %v540_v0  ;;  %254 = vst.msk [vmem:[%s639_s5] sm:$0xff] (%p246_p5), %vm252_vm0, %v540_v0 }
  0x15 PF: > { %v255_v1 = vld [vmem:[%s238_s25] sm:$0xff]  ;;  %vm263_vm1 = vcmask 64512   ;;  %v541_v3 = vmov 0.0   ;;  %vm542_vm2 = vmmov 0   ;;  %v543_v5 = vmov 0  }
  0x16   : > { %v256_v2 = vld [vmem:[%s635_s1] sm:$0xff]  ;;  %482 = vmatprep.subr.mxu0 %v541_v3  ;;  %484 = vmatprep.mubr.msk.f32.mxu0 %vm542_vm2, %v541_v3  ;;  %v363_v6 = vlaneseq  ;;  %vm373_vm5 = vcmask 7168  }
  0x17   : > { %v257_v4 = vld [vmem:[%s636_s2] sm:$0xff]  ;;  %483 = vmatpush3.msra.mxu0 %v255_v1  ;;  %515 = vset.pattern.permute.xlu0 %v543_v5 }
  0x18   : > { %485 = vmatmul.mubr.msk.f32.vlgmr.msra.gmra.mrb[0].mxu0 %vm263_vm1, %v256_v2  ;;  %260 = vperm.xlu0 %515, %v257_v4   ;;  %v364_v9 = vand.u32 127, %v363_v6  ;;  %v369_v16 = vld [vmem:[%s638_s4] sm:$0xff] }
  0x19   : > { %v375_v18 = vld [vmem:[%s639_s5] sm:$0xff] }
  0x1a   : > { %vm367_vm3 = vcmp.lt.s32.totalorder %v364_v9, 3 }
  0x97   : > { %v261_v7 = vpop.permute.xlu0 %260 }
  0xeb   : > { %v333_v8 = vpop.f32.mrb[0].mxu0 }
  0xec   : > { %v334_v10 = vadd.f32 %v333_v8, %v261_v7  ;;  %v486_v11 = vpop.f32.mrb[1].mxu0 }
  0xee   : > { %v476_v12 = vclamps-f32 %v334_v10, 3.4028235e+38 }
  0xf0   : > { %vm339_vm4 = vcmp.ne.f32.partialorder %v476_v12, %v476_v12 }
  0xf1   : > { %v340_v13 = vsel %vm339_vm4, 0.0, %v476_v12 }
  0xf2   : > { %v368_v14 = vsel %vm367_vm3, %v340_v13, 0.0  ;;  %341 = vst [vmem:[%s598_s28] sm:$0xff] %v340_v13 }
  0xf3   : > { %370 = vadd.xlane.f32.xlu0 %v368_v14  ;;  %v376_v15 = vmul.f32 %v368_v14, %v368_v14 }
  0xf5   : > { %377 = vadd.xlane.f32.xlu1 %v376_v15 }
 0x180   : > { %v371_v17 = vpop.xlane.xlu0 %370 }
 0x181   : > { %v372_v19 = vadd.f32 %v371_v17, %v369_v16 }
 0x182   : > { %v378_v20 = vpop.xlane.xlu1 %377 }
 0x183   : > { %374 = vst.msk [vmem:[%s638_s4] sm:$0xff] %vm373_vm5, %v372_v19  ;;  %v379_v21 = vadd.f32 %v378_v20, %v375_v18 }
 0x185   : > { %380 = vst.msk [vmem:[%s639_s5] sm:$0xff] %vm373_vm5, %v379_v21 }
 0x186 PF: > { %s16_s20 = sadd.s32 1, %s538_s20   ;;  %s640_s18 = smov %s534_s19 }
 0x187   : > { %p13_p6 = scmp.ge.s32.totalorder %s16_s20, 4   ;;  %s641_s19 = smov %s643_s21 }
 0x189   :  { %15 = sbr.rel (!%p13_p6) target bundleno = 2 (0x2), region = 90 }

// kernel: basic_unet_forward.20
= control target key start
LH: loop header
LB: loop body
LE: loop exit
PB: predicated region body
PF: predicated region fallthrough
CT: control target
= control target key end

     0   :  { %s829_s21 = smov 0   ;;  %s831_s22 = smov 0   ;;  %s926_s0 = inlined_call_operand.vmem [shape: f32[2,8,128], index: 0, kind: input, shape index: {}, may-alias: {0,1}]   ;;  %s927_s1 = inlined_call_operand.vmem [shape: f32[2,8,128], index: 1, kind: input, shape index: {}, may-alias: {0,1}]   ;;  %s928_s2 = inlined_call_operand.vmem [shape: f32[32,8], index: 2, kind: input, shape index: {}]   ;;  %s929_s3 = inlined_call_operand.vmem [shape: f32[8,1], index: 3, kind: input, shape index: {}]   ;;  %s930_s4 = inlined_call_operand.vmem [shape: f32[2,16,128], index: 4, kind: output, shape index: {0}]   ;;  %s931_s5 = inlined_call_operand.vmem [shape: f32[16,1], index: 5, kind: output, shape index: {1}]   ;;  %s932_s6 = inlined_call_operand.vmem [shape: f32[16,1], index: 6, kind: output, shape index: {2}]  }
   0x1   :  { %s833_s1 = smov 0  }
   0x2 LB: > { %s29_s23 = sadd.s32 1, %s783_s22  ;;  %p714_p0 = scmp.ge.s32.totalorder %s787_s1, 1  ;;  %s787_s1 = sphi %s833_s1, %s17_s1   ;;  %s783_s22 = sphi %s831_s22, %s934_s22   ;;  %s779_s21 = sphi %s829_s21, %s933_s21  }
   0x3   : > { %p31_p1 = scmp.ge.s32.totalorder %s29_s23, 2  ;;  %p251_p2 = scmp.lt.s32.totalorder %s787_s1, 3 }
   0x5   : > { %s936_s23 = smov (%p31_p1, %s29_s23), 0  ;;  %p252_p3 = pnand %p714_p0, %p251_p2 }
   0x6   : > { %p296_p4 = scmp.lt.s32.totalorder (!%p252_p3), %s779_s21, 1  ;;  %p324_p5 = scmp.eq.s32.totalorder (!%p252_p3), %s779_s21, 0 }
   0x7   : > { %255 = sbr.rel (%p252_p3) target bundleno = 746 (0x2ea), region = 36 }
   0xe   : > { %s938_s21 = smov (!%p296_p4, %s779_s21), 1  ;;  %329 = sbr.rel (!%p324_p5) target bundleno = 21 (0x15), region = 40 }
   0xf   : > { %s715_s24 = sshll.u32 %s938_s21, 3  ;;  %s730_s25 = sshll.u32 %s938_s21, 4  ;;  %vm330_vm0 = vcmask (%p324_p5), 7168   ;;  %v789_v0 = vmov (%p324_p5), 0.0  }
  0x10   : > { %s302_s28 = scalar_lea.vmem %s926_s0, %s715_s24  ;;  %s853_s7 = scalar_lea.vmem %s930_s4, %s730_s25  ;;  %331 = vst.msk [vmem:[%s931_s5] sm:$0xff] (%p324_p5), %vm330_vm0, %v789_v0  ;;  %332 = vst.msk [vmem:[%s931_s5 + $0x8] sm:$0xff] (%p324_p5), %vm330_vm0, %v789_v0 }
  0x11   : > { %333 = vst.msk [vmem:[%s932_s6] sm:$0xff] (%p324_p5), %vm330_vm0, %v789_v0  ;;  %334 = vst.msk [vmem:[%s932_s6 + $0x8] sm:$0xff] (%p324_p5), %vm330_vm0, %v789_v0 }
  0x15 PF: > { %v790_v1 = vmov 0.0   ;;  %s791_s16 = smov 1   ;;  %v339_v2 = vld [vmem:[%s302_s28] sm:$0xff]  ;;  %v792_v3 = vmov 0   ;;  %vm354_vm1 = vcmask 7168   ;;  %v337_v7 = vld [vmem:[%s928_s2 + $0x10] sm:$0xff]  ;;  %v517_v39 = vlaneseq }
  0x16   : > { %347 = vrot.lane.b32.xlu0 %v790_v1, %s791_s16  ;;  %445 = vmatprep.mubr.f32.mxu1 %v790_v1  ;;  %v456_v4 = vld [vmem:[%s929_s3] sm:$0xff]  ;;  %vm356_vm2 = vcmask 64512   ;;  %v338_v10 = vld [vmem:[%s928_s2 + $0x18] sm:$0xff]  ;;  %v336_v11 = vld [vmem:[%s928_s2 + $0x8] sm:$0xff]  ;;  %s793_s29 = smov 127   ;;  %vm484_vm7 = vcmask 1039360  }
  0x17   : > { %433 = vmatprep.mubr.f32.mxu0 %v790_v1  ;;  %763 = vset.pattern.permute.xlu1 %v792_v3  ;;  %v335_v8 = vld [vmem:[%s928_s2] sm:$0xff]  ;;  %v518_v40 = vand.u32 127, %v517_v39  ;;  %v592_v58 = vld [vmem:[%s931_s5 + $0x8] sm:$0xff] }
  0x18   : > { %465 = vperm.xlu1 %763, %v456_v4   ;;  %764 = vset.pattern.permute.xlu0 %v792_v3  ;;  %v523_v51 = vld [vmem:[%s931_s5] sm:$0xff]  ;;  %v597_v57 = vld [vmem:[%s932_s6 + $0x8] sm:$0xff] }
  0x19   : > { %vm521_vm8 = vcmp.lt.s32.totalorder %v518_v40, 4  ;;  %v528_v53 = vld [vmem:[%s932_s6] sm:$0xff] }
  0x1a   : > { %351 = vrot.lane.b32.xlu0 %v339_v2, %s791_s16 }
  0x88   : > { %v348_v5 = vpop.permute.xlu0 %347 }
  0x8c   : > { %v352_v6 = vpop.permute.xlu0 %351 }
  0x8d   : > { %369 = vmatprep.subr.mxu0 %v352_v6  ;;  %732 = vmatprep.subr.mxu1 %v352_v6  ;;  %v355_v9 = vsel %vm354_vm1, %v348_v5, %v352_v6 }
  0x8e   : > { %370 = vmatpush1.msra.mxu0 %v355_v9  ;;  %733 = vmatpush1.msra.mxu1 %v355_v9 }
  0x8f   : > { %722 = vmatmul.mubr.msk.f32.vlgmr.msra.gmra.mrb[0].mxu1 %vm356_vm2, %v337_v7  ;;  %720 = vmatmul.mubr.msk.f32.vlgmr.msra.gmra.mrb[0].mxu0 %vm356_vm2, %v335_v8 }
  0x90   : > { %450 = vmatprep.mubr.f32.mxu1 %v790_v1  ;;  %439 = vmatprep.mubr.f32.mxu0 %v790_v1 }
  0x93   : > { %723 = vmatmul.mubr.msk.f32.gmra.mrb[2].mxu1 %vm356_vm2, %v338_v10  ;;  %721 = vmatmul.mubr.msk.f32.gmra.mrb[2].mxu0 %vm356_vm2, %v336_v11 }
  0x97   : > { %v466_v20 = vpop.permute.xlu1 %465 }
 0x162   : > { %v447_v12 = vpop.f32.mrb[0].mxu1  ;;  %v435_v13 = vpop.f32.mrb[0].mxu0 }
 0x163   : > { %458 = vrot.lane.b32.xlu1 %v447_v12, %s791_s16  ;;  %v449_v14 = vpop.f32.mrb[1].mxu1  ;;  %v437_v15 = vpop.f32.mrb[1].mxu0 }
 0x166   : > { %v452_v16 = vpop.f32.mrb[2].mxu1  ;;  %v441_v17 = vpop.f32.mrb[2].mxu0 }
 0x167   : > { %535 = vrot.lane.b32.xlu0 %v452_v16, %s791_s16  ;;  %v454_v18 = vpop.f32.mrb[3].mxu1  ;;  %v443_v19 = vpop.f32.mrb[3].mxu0 }
 0x1d5   : > { %v459_v21 = vpop.permute.xlu1 %458 }
 0x1d6   : > { %v461_v22 = vadd.f32 %v459_v21, %v435_v13  ;;  %v462_v23 = vadd.f32 %v459_v21, %v437_v15 }
 0x1d8   : > { %v468_v24 = vadd.f32 %v466_v20, %v461_v22  ;;  %v469_v25 = vadd.f32 %v466_v20, %v462_v23 }
 0x1d9   : > { %v536_v26 = vpop.permute.xlu0 %535 }
 0x1da   : > { %v538_v27 = vadd.f32 %v536_v26, %v441_v17  ;;  %v539_v28 = vadd.f32 %v536_v26, %v443_v19  ;;  %v724_v29 = vclamps-f32 %v468_v24, 3.4028235e+38  ;;  %v725_v30 = vclamps-f32 %v469_v25, 3.4028235e+38 }
 0x1dc   : > { %v540_v31 = vadd.f32 %v538_v27, %v466_v20  ;;  %v541_v32 = vadd.f32 %v539_v28, %v466_v20  ;;  %vm474_vm3 = vcmp.ne.f32.partialorder %v724_v29, %v724_v29  ;;  %vm475_vm4 = vcmp.ne.f32.partialorder %v725_v30, %v725_v30 }
 0x1dd   : > { %v476_v33 = vsel %vm474_vm3, 0.0, %v724_v29  ;;  %v477_v34 = vsel %vm475_vm4, 0.0, %v725_v30 }
 0x1de   : > { %480 = vrot.lane.b32.xlu1 %v476_v33, %s793_s29  ;;  %482 = vrot.lane.b32.xlu0 %v477_v34, %s793_s29  ;;  %v726_v35 = vclamps-f32 %v540_v31, 3.4028235e+38  ;;  %v727_v36 = vclamps-f32 %v541_v32, 3.4028235e+38 }
 0x1e0   : > { %vm546_vm5 = vcmp.ne.f32.partialorder %v726_v35, %v726_v35  ;;  %vm547_vm6 = vcmp.ne.f32.partialorder %v727_v36, %v727_v36 }
 0x1e1   : > { %v548_v37 = vsel %vm546_vm5, 0.0, %v726_v35  ;;  %v549_v38 = vsel %vm547_vm6, 0.0, %v727_v36 }
 0x1e2   : > { %552 = vrot.lane.b32.xlu1 %v548_v37, %s793_s29  ;;  %554 = vrot.lane.b32.xlu0 %v549_v38, %s793_s29 }
 0x250   : > { %v481_v41 = vpop.permute.xlu1 %480  ;;  %v483_v42 = vpop.permute.xlu0 %482 }
 0x251   : > { %v485_v43 = vsel %vm484_vm7, %v481_v41, %v483_v42 }
 0x252   : > { %487 = vst [vmem:[%s853_s7] sm:$0xff] %v485_v43  ;;  %v522_v44 = vsel %vm521_vm8, %v485_v43, 0.0 }
 0x253   : > { %524 = vadd.xlane.f32.xlu1 %v522_v44  ;;  %v529_v45 = vmul.f32 %v522_v44, %v522_v44 }
 0x254   : > { %v553_v46 = vpop.permute.xlu1 %552  ;;  %v555_v47 = vpop.permute.xlu0 %554 }
 0x255   : > { %530 = vadd.xlane.f32.xlu0 %v529_v45  ;;  %v556_v48 = vsel %vm484_vm7, %v553_v46, %v555_v47 }
 0x256   : > { %v591_v49 = vsel %vm521_vm8, %v556_v48, 0.0  ;;  %558 = vst [vmem:[%s853_s7 + $0x8] sm:$0xff] %v556_v48 }
 0x257   : > { %v598_v50 = vmul.f32 %v591_v49, %v591_v49 }
 0x259   : > { %593 = vadd.xlane.f32.xlu0 %v591_v49  ;;  %599 = vadd.xlane.f32.xlu1 %v598_v50 }
 0x2e0   : > { %v525_v52 = vpop.xlane.xlu1 %524 }
 0x2e1   : > { %v526_v54 = vadd.f32 %v525_v52, %v523_v51 }
 0x2e2   : > { %v531_v55 = vpop.xlane.xlu0 %530 }
 0x2e3   : > { %527 = vst.msk [vmem:[%s931_s5] sm:$0xff] %vm354_vm1, %v526_v54  ;;  %v532_v56 = vadd.f32 %v531_v55, %v528_v53 }
 0x2e5   : > { %533 = vst.msk [vmem:[%s932_s6] sm:$0xff] %vm354_vm1, %v532_v56 }
 0x2e6   : > { %v600_v59 = vpop.xlane.xlu1 %599  ;;  %v594_v60 = vpop.xlane.xlu0 %593 }
 0x2e7   : > { %v601_v61 = vadd.f32 %v600_v59, %v597_v57  ;;  %v595_v62 = vadd.f32 %v594_v60, %v592_v58 }
 0x2e9   : > { %602 = vst.msk [vmem:[%s932_s6 + $0x8] sm:$0xff] %vm354_vm1, %v601_v61  ;;  %596 = vst.msk [vmem:[%s931_s5 + $0x8] sm:$0xff] %vm354_vm1, %v595_v62 }
 0x2ea PF: > { %s17_s1 = sadd.s32 1, %s787_s1   ;;  %s933_s21 = smov %s783_s22 }
 0x2eb   : > { %p14_p6 = scmp.ge.s32.totalorder %s17_s1, 4   ;;  %s934_s22 = smov %s936_s23 }
 0x2ed   :  { %16 = sbr.rel (!%p14_p6) target bundleno = 2 (0x2), region = 105 }

// kernel: basic_unet_forward.21
= control target key start
LH: loop header
LB: loop body
LE: loop exit
PB: predicated region body
PF: predicated region fallthrough
CT: control target
= control target key end

     0   :  { %s524_s18 = smov 0   ;;  %s526_s19 = smov 0   ;;  %s569_s0 = inlined_call_operand.vmem [shape: f32[2,8,256], index: 0, kind: input, shape index: {}]   ;;  %s570_s1 = inlined_call_operand.vmem [shape: f32[8,1], index: 1, kind: input, shape index: {}]   ;;  %s571_s2 = inlined_call_operand.vmem [shape: f32[8,1], index: 2, kind: input, shape index: {}]   ;;  %s572_s3 = inlined_call_operand.vmem [shape: f32[8,1], index: 3, kind: input, shape index: {}]   ;;  %s573_s4 = inlined_call_operand.vmem [shape: f32[8,1], index: 4, kind: input, shape index: {}]   ;;  %s574_s5 = inlined_call_operand.vmem [shape: f32[2,8,256], index: 5, kind: output, shape index: {}]  }
   0x1   :  { %s528_s20 = smov 0  }
   0x2 LB: > { %s27_s21 = sadd.s32 1, %s486_s19  ;;  %p427_p0 = scmp.ge.s32.totalorder %s490_s20, 1  ;;  %s490_s20 = sphi %s528_s20, %s15_s20   ;;  %s486_s19 = sphi %s526_s19, %s576_s19   ;;  %s482_s18 = sphi %s524_s18, %s575_s18  }
   0x3   : > { %p29_p1 = scmp.ge.s32.totalorder %s27_s21, 2  ;;  %p208_p2 = scmp.lt.s32.totalorder %s490_s20, 3 }
   0x5   : > { %s578_s21 = smov (%p29_p1, %s27_s21), 0  ;;  %p209_p3 = pnand %p427_p0, %p208_p2 }
   0x6   : > { %v266_v0 = vld [vmem:[%s570_s1] sm:$0xff] (!%p209_p3)  ;;  %v492_v2 = vmov (!%p209_p3), 0   ;;  %p245_p4 = scmp.lt.s32.totalorder (!%p209_p3), %s482_s18, 1  ;;  %v493_v9 = vmov (!%p209_p3), 0.0   ;;  %v324_v20 = vlaneseq (!%p209_p3) }
   0x7   : > { %212 = sbr.rel (%p209_p3) target bundleno = 171 (0xab), region = 40  ;;  %v268_v1 = vld [vmem:[%s571_s2] sm:$0xff] (!%p209_p3)  ;;  %464 = vset.pattern.permute.xlu0 (!%p209_p3), %v492_v2  ;;  %v267_v3 = vmul.f32 (!%p209_p3), 0.0625, %v266_v0  ;;  %465 = vset.pattern.permute.xlu1 (!%p209_p3), %v492_v2 }
   0x8   : > { %v269_v4 = vmul.f32 (!%p209_p3), 0.0625, %v268_v1  ;;  %v291_v5 = vld [vmem:[%s573_s4] sm:$0xff] (!%p209_p3)  ;;  %v325_v22 = vand.u32 (!%p209_p3), 127, %v324_v20 }
   0x9   : > { %294 = vperm.xlu1 (!%p209_p3), %465, %v291_v5   ;;  %279 = vperm.xlu0 (!%p209_p3), %464, %v267_v3   ;;  %v270_v6 = vmul.f32 (!%p209_p3), %v267_v3, %v267_v3  ;;  %v273_v11 = vld [vmem:[%s572_s3] sm:$0xff] (!%p209_p3) }
   0xa   : > { %vm330_vm1 = vcmp.lt.s32.totalorder (!%p209_p3), %v325_v22, 8 }
   0xb   : > { %v271_v7 = vsub.f32 (!%p209_p3), %v269_v4, %v270_v6 }
   0xd   : > { %v272_v8 = vmax.f32 (!%p209_p3), %v271_v7, 0.0 }
   0xe   : > { %s580_s18 = smov (!%p245_p4, %s482_s18), 1 }
   0xf   : > { %s436_s28 = sshll.u32 %s580_s18, 4  ;;  %v274_v10 = vadd.f32 1e-05, %v272_v8 }
  0x10   : > { %s262_s6 = scalar_lea.vmem %s574_s5, %s436_s28  ;;  %s252_s11 = scalar_lea.vmem %s569_s0, %s436_s28 }
  0x11   : > { %335 = vst [vmem:[%s262_s6 + $0x8] sm:$0xff] %v493_v9  ;;  %466 = vrsqrt.f32 %v274_v10  ;;  %v264_v15 = vld [vmem:[%s252_s11] sm:$0xff] }
  0x1b   : > { %v467_v12 = vpop.eup %466 }
  0x1c   : > { %v276_v13 = vmul.f32 %v467_v12, %v273_v11 }
  0x1e   : > { %286 = vperm.xlu0 %464, %v276_v13  }
  0x88   : > { %v280_v14 = vpop.permute.xlu0 %279  ;;  %v295_v18 = vpop.permute.xlu1 %294 }
  0x89   : > { %v282_v16 = vsub.f32 %v264_v15, %v280_v14 }
  0x9d   : > { %v287_v17 = vpop.permute.xlu0 %286 }
  0x9e   : > { %v289_v19 = vmul.f32 %v287_v17, %v282_v16 }
  0xa0   : > { %v297_v21 = vadd.f32 %v295_v18, %v289_v19 }
  0xa2   : > { %v432_v23 = vclamps-f32 %v297_v21, 3.4028235e+38 }
  0xa4   : > { %vm303_vm0 = vcmp.ne.f32.partialorder %v432_v23, %v432_v23 }
  0xa5   : > { %v305_v24 = vsel %vm303_vm0, 0.0, %v432_v23 }
  0xa6   : > { %vm307_vm2 = vcmp.ge.f32.partialorder %v305_v24, 0.0  ;;  %v309_v25 = vmul.f32 0.01, %v305_v24 }
  0xa8   : > { %v311_v26 = vsel %vm307_vm2, %v305_v24, %v309_v25 }
  0xa9   : > { %v332_v27 = vsel %vm330_vm1, %v311_v26, 0.0 }
  0xaa   : > { %334 = vst [vmem:[%s262_s6] sm:$0xff] %v332_v27 }
  0xab PF: > { %s15_s20 = sadd.s32 1, %s490_s20   ;;  %s575_s18 = smov %s486_s19 }
  0xac   : > { %p12_p5 = scmp.ge.s32.totalorder %s15_s20, 4   ;;  %s576_s19 = smov %s578_s21 }
  0xae   :  { %14 = sbr.rel (!%p12_p5) target bundleno = 2 (0x2), region = 78 }

// kernel: basic_unet_forward.22
= control target key start
LH: loop header
LB: loop body
LE: loop exit
PB: predicated region body
PF: predicated region fallthrough
CT: control target
= control target key end

     0   :  { %s574_s18 = smov 0   ;;  %s576_s19 = smov 0   ;;  %s634_s0 = inlined_call_operand.vmem [shape: f32[2,8,128], index: 0, kind: input, shape index: {}]   ;;  %s635_s1 = inlined_call_operand.vmem [shape: f32[8,8], index: 1, kind: input, shape index: {}]   ;;  %s636_s2 = inlined_call_operand.vmem [shape: f32[8,1], index: 2, kind: input, shape index: {}]   ;;  %s637_s3 = inlined_call_operand.vmem [shape: f32[2,8,128], index: 3, kind: output, shape index: {0}]   ;;  %s638_s4 = inlined_call_operand.vmem [shape: f32[8,1], index: 4, kind: output, shape index: {1}]   ;;  %s639_s5 = inlined_call_operand.vmem [shape: f32[8,1], index: 5, kind: output, shape index: {2}]  }
   0x1   :  { %s578_s20 = smov 0  }
   0x2 LB: > { %s28_s21 = sadd.s32 1, %s534_s19  ;;  %p471_p0 = scmp.ge.s32.totalorder %s538_s20, 1  ;;  %s538_s20 = sphi %s578_s20, %s16_s20   ;;  %s534_s19 = sphi %s576_s19, %s641_s19   ;;  %s530_s18 = sphi %s574_s18, %s640_s18  }
   0x3   : > { %p30_p1 = scmp.ge.s32.totalorder %s28_s21, 2  ;;  %p200_p2 = scmp.lt.s32.totalorder %s538_s20, 3 }
   0x5   : > { %s643_s21 = smov (%p30_p1, %s28_s21), 0  ;;  %p201_p3 = pnand %p471_p0, %p200_p2 }
   0x6   : > { %p232_p4 = scmp.lt.s32.totalorder (!%p201_p3), %s530_s18, 1  ;;  %p246_p5 = scmp.eq.s32.totalorder (!%p201_p3), %s530_s18, 0 }
   0x7   : > { %204 = sbr.rel (%p201_p3) target bundleno = 390 (0x186), region = 32 }
   0xe   : > { %s645_s18 = smov (!%p232_p4, %s530_s18), 1  ;;  %251 = sbr.rel (!%p246_p5) target bundleno = 21 (0x15), region = 36 }
   0xf   : > { %s472_s22 = sshll.u32 %s645_s18, 3  ;;  %vm252_vm0 = vcmask (%p246_p5), 7168   ;;  %v540_v0 = vmov (%p246_p5), 0.0  }
  0x10   : > { %s238_s25 = scalar_lea.vmem %s634_s0, %s472_s22  ;;  %s598_s28 = scalar_lea.vmem %s637_s3, %s472_s22  ;;  %253 = vst.msk [vmem:[%s638_s4] sm:$0xff] (%p246_p5), %vm252_vm0, %v540_v0  ;;  %254 = vst.msk [vmem:[%s639_s5] sm:$0xff] (%p246_p5), %vm252_vm0, %v540_v0 }
  0x15 PF: > { %v255_v1 = vld [vmem:[%s238_s25] sm:$0xff]  ;;  %vm263_vm1 = vcmask 64512   ;;  %v541_v3 = vmov 0.0   ;;  %vm542_vm2 = vmmov 0   ;;  %v543_v5 = vmov 0  }
  0x16   : > { %v256_v2 = vld [vmem:[%s635_s1] sm:$0xff]  ;;  %482 = vmatprep.subr.mxu0 %v541_v3  ;;  %484 = vmatprep.mubr.msk.f32.mxu0 %vm542_vm2, %v541_v3  ;;  %v363_v6 = vlaneseq  ;;  %vm373_vm5 = vcmask 7168  }
  0x17   : > { %v257_v4 = vld [vmem:[%s636_s2] sm:$0xff]  ;;  %483 = vmatpush3.msra.mxu0 %v255_v1  ;;  %515 = vset.pattern.permute.xlu0 %v543_v5 }
  0x18   : > { %485 = vmatmul.mubr.msk.f32.vlgmr.msra.gmra.mrb[0].mxu0 %vm263_vm1, %v256_v2  ;;  %260 = vperm.xlu0 %515, %v257_v4   ;;  %v364_v9 = vand.u32 127, %v363_v6  ;;  %v369_v16 = vld [vmem:[%s638_s4] sm:$0xff] }
  0x19   : > { %v375_v18 = vld [vmem:[%s639_s5] sm:$0xff] }
  0x1a   : > { %vm367_vm3 = vcmp.lt.s32.totalorder %v364_v9, 8 }
  0x97   : > { %v261_v7 = vpop.permute.xlu0 %260 }
  0xeb   : > { %v333_v8 = vpop.f32.mrb[0].mxu0 }
  0xec   : > { %v334_v10 = vadd.f32 %v333_v8, %v261_v7  ;;  %v486_v11 = vpop.f32.mrb[1].mxu0 }
  0xee   : > { %v476_v12 = vclamps-f32 %v334_v10, 3.4028235e+38 }
  0xf0   : > { %vm339_vm4 = vcmp.ne.f32.partialorder %v476_v12, %v476_v12 }
  0xf1   : > { %v340_v13 = vsel %vm339_vm4, 0.0, %v476_v12 }
  0xf2   : > { %v368_v14 = vsel %vm367_vm3, %v340_v13, 0.0  ;;  %341 = vst [vmem:[%s598_s28] sm:$0xff] %v340_v13 }
  0xf3   : > { %370 = vadd.xlane.f32.xlu0 %v368_v14  ;;  %v376_v15 = vmul.f32 %v368_v14, %v368_v14 }
  0xf5   : > { %377 = vadd.xlane.f32.xlu1 %v376_v15 }
 0x180   : > { %v371_v17 = vpop.xlane.xlu0 %370 }
 0x181   : > { %v372_v19 = vadd.f32 %v371_v17, %v369_v16 }
 0x182   : > { %v378_v20 = vpop.xlane.xlu1 %377 }
 0x183   : > { %374 = vst.msk [vmem:[%s638_s4] sm:$0xff] %vm373_vm5, %v372_v19  ;;  %v379_v21 = vadd.f32 %v378_v20, %v375_v18 }
 0x185   : > { %380 = vst.msk [vmem:[%s639_s5] sm:$0xff] %vm373_vm5, %v379_v21 }
 0x186 PF: > { %s16_s20 = sadd.s32 1, %s538_s20   ;;  %s640_s18 = smov %s534_s19 }
 0x187   : > { %p13_p6 = scmp.ge.s32.totalorder %s16_s20, 4   ;;  %s641_s19 = smov %s643_s21 }
 0x189   :  { %15 = sbr.rel (!%p13_p6) target bundleno = 2 (0x2), region = 90 }

// kernel: basic_unet_forward.23
= control target key start
LH: loop header
LB: loop body
LE: loop exit
PB: predicated region body
PF: predicated region fallthrough
CT: control target
= control target key end

     0   :  { %s536_s21 = smov 0   ;;  %s538_s22 = smov 0   ;;  %s588_s0 = inlined_call_operand.vmem [shape: f32[2,8,128], index: 0, kind: input, shape index: {}]   ;;  %s589_s1 = inlined_call_operand.vmem [shape: f32[2,8,128], index: 1, kind: input, shape index: {}]   ;;  %s590_s2 = inlined_call_operand.vmem [shape: f32[8,1], index: 2, kind: input, shape index: {}]   ;;  %s591_s3 = inlined_call_operand.vmem [shape: f32[8,1], index: 3, kind: input, shape index: {}]   ;;  %s592_s4 = inlined_call_operand.vmem [shape: f32[8,1], index: 4, kind: input, shape index: {}]   ;;  %s593_s5 = inlined_call_operand.vmem [shape: f32[8,1], index: 5, kind: input, shape index: {}]   ;;  %s594_s6 = inlined_call_operand.vmem [shape: f32[2,8,128], index: 6, kind: output, shape index: {}]  }
   0x1   :  { %s540_s23 = smov 0  }
   0x2 LB: > { %s28_s24 = sadd.s32 1, %s494_s22  ;;  %p438_p0 = scmp.ge.s32.totalorder %s498_s23, 1  ;;  %s498_s23 = sphi %s540_s23, %s16_s23   ;;  %s494_s22 = sphi %s538_s22, %s596_s22   ;;  %s490_s21 = sphi %s536_s21, %s595_s21  }
   0x3   : > { %p30_p1 = scmp.ge.s32.totalorder %s28_s24, 2  ;;  %p244_p2 = scmp.lt.s32.totalorder %s498_s23, 3 }
   0x5   : > { %s598_s24 = smov (%p30_p1, %s28_s24), 0  ;;  %p245_p3 = pnand %p438_p0, %p244_p2 }
   0x6   : > { %v307_v0 = vld [vmem:[%s590_s2] sm:$0xff] (!%p245_p3)  ;;  %v500_v2 = vmov (!%p245_p3), 0   ;;  %p285_p4 = scmp.lt.s32.totalorder (!%p245_p3), %s490_s21, 1 }
   0x7   : > { %248 = sbr.rel (%p245_p3) target bundleno = 180 (0xb4), region = 44  ;;  %v309_v1 = vld [vmem:[%s591_s3] sm:$0xff] (!%p245_p3)  ;;  %470 = vset.pattern.permute.xlu0 (!%p245_p3), %v500_v2  ;;  %v308_v3 = vmul.f32 (!%p245_p3), 0.0625, %v307_v0  ;;  %471 = vset.pattern.permute.xlu1 (!%p245_p3), %v500_v2 }
   0x8   : > { %v310_v4 = vmul.f32 (!%p245_p3), 0.0625, %v309_v1  ;;  %v330_v5 = vld [vmem:[%s593_s5] sm:$0xff] (!%p245_p3) }
   0x9   : > { %333 = vperm.xlu1 (!%p245_p3), %471, %v330_v5   ;;  %320 = vperm.xlu0 (!%p245_p3), %470, %v308_v3   ;;  %v311_v6 = vmul.f32 (!%p245_p3), %v308_v3, %v308_v3  ;;  %v314_v10 = vld [vmem:[%s592_s4] sm:$0xff] (!%p245_p3) }
   0xb   : > { %v312_v7 = vsub.f32 (!%p245_p3), %v310_v4, %v311_v6 }
   0xd   : > { %v313_v8 = vmax.f32 (!%p245_p3), %v312_v7, 0.0 }
   0xe   : > { %s600_s21 = smov (!%p285_p4, %s490_s21), 1 }
   0xf   : > { %v315_v9 = vadd.f32 1e-05, %v313_v8  ;;  %s439_s9 = sshll.u32 %s600_s21, 3 }
  0x10   : > { %s291_s12 = scalar_lea.vmem %s588_s0, %s439_s9  ;;  %s298_s15 = scalar_lea.vmem %s589_s1, %s439_s9 }
  0x11   : > { %472 = vrsqrt.f32 %v315_v9  ;;  %v306_v14 = vld [vmem:[%s291_s12] sm:$0xff]  ;;  %s305_s18 = scalar_lea.vmem %s594_s6, %s439_s9 }
  0x12   : > { %v342_v22 = vld [vmem:[%s298_s15] sm:$0xff] }
  0x1b   : > { %v473_v11 = vpop.eup %472 }
  0x1c   : > { %v317_v12 = vmul.f32 %v473_v11, %v314_v10 }
  0x1e   : > { %326 = vperm.xlu0 %470, %v317_v12  }
  0x88   : > { %v321_v13 = vpop.permute.xlu0 %320  ;;  %v334_v17 = vpop.permute.xlu1 %333 }
  0x89   : > { %v323_v15 = vsub.f32 %v306_v14, %v321_v13 }
  0x9d   : > { %v327_v16 = vpop.permute.xlu0 %326 }
  0x9e   : > { %v329_v18 = vmul.f32 %v327_v16, %v323_v15 }
  0xa0   : > { %v336_v19 = vadd.f32 %v334_v17, %v329_v18 }
  0xa2   : > { %v442_v20 = vclamps-f32 %v336_v19, 3.4028235e+38 }
  0xa4   : > { %vm339_vm0 = vcmp.ne.f32.partialorder %v442_v20, %v442_v20 }
  0xa5   : > { %v340_v21 = vsel %vm339_vm0, 0.0, %v442_v20 }
  0xa6   : > { %474 = vtanh.f32 %v340_v21 }
  0xb0   : > { %v475_v23 = vpop.eup %474 }
  0xb1   : > { %v343_v24 = vmul.f32 %v475_v23, %v342_v22 }
  0xb3   : > { %344 = vst [vmem:[%s305_s18] sm:$0xff] %v343_v24 }
  0xb4 PF: > { %s16_s23 = sadd.s32 1, %s498_s23   ;;  %s595_s21 = smov %s494_s22 }
  0xb5   : > { %p13_p5 = scmp.ge.s32.totalorder %s16_s23, 4   ;;  %s596_s22 = smov %s598_s24 }
  0xb7   :  { %15 = sbr.rel (!%p13_p5) target bundleno = 2 (0x2), region = 77 }

// kernel: basic_unet_forward.24
= control target key start
LH: loop header
LB: loop body
LE: loop exit
PB: predicated region body
PF: predicated region fallthrough
CT: control target
= control target key end

     0   :  { %s1117_s26 = smov 0   ;;  %s1119_s27 = smov 0   ;;  %s1209_s0 = inlined_call_operand.vmem [shape: f32[2,8,256], index: 0, kind: input, shape index: {}, may-alias: {0,1}]   ;;  %s1210_s1 = inlined_call_operand.vmem [shape: f32[2,8,256], index: 1, kind: input, shape index: {}, may-alias: {0,1}]   ;;  %s1211_s2 = inlined_call_operand.vmem [shape: f32[2,8,128], index: 2, kind: input, shape index: {}, may-alias: {2,3}]   ;;  %s1212_s3 = inlined_call_operand.vmem [shape: f32[2,8,128], index: 3, kind: input, shape index: {}, may-alias: {2,3}]   ;;  %s1213_s4 = inlined_call_operand.vmem [shape: f32[16,16], index: 4, kind: input, shape index: {}]   ;;  %s1214_s5 = inlined_call_operand.vmem [shape: f32[4,1], index: 5, kind: input, shape index: {}]   ;;  %s1215_s6 = inlined_call_operand.vmem [shape: f32[2,8,128], index: 6, kind: output, shape index: {0}]   ;;  %s1216_s7 = inlined_call_operand.vmem [shape: f32[8,1], index: 7, kind: output, shape index: {1}]   ;;  %s1217_s8 = inlined_call_operand.vmem [shape: f32[8,1], index: 8, kind: output, shape index: {2}]  }
   0x1   :  { %s1121_s3 = smov 0  }
   0x2 LB: > { %s31_s28 = sadd.s32 1, %s1060_s27  ;;  %p980_p0 = scmp.ge.s32.totalorder %s1064_s3, 1  ;;  %s1064_s3 = sphi %s1121_s3, %s19_s3   ;;  %s1060_s27 = sphi %s1119_s27, %s1219_s27   ;;  %s1056_s26 = sphi %s1117_s26, %s1218_s26  }
   0x3   : > { %p33_p1 = scmp.ge.s32.totalorder %s31_s28, 2  ;;  %p343_p2 = scmp.lt.s32.totalorder %s1064_s3, 3 }
   0x5   : > { %s1221_s28 = smov (%p33_p1, %s31_s28), 0  ;;  %p344_p3 = pnand %p980_p0, %p343_p2 }
   0x6   : > { %p410_p4 = scmp.lt.s32.totalorder (!%p344_p3), %s1056_s26, 1  ;;  %p459_p5 = scmp.eq.s32.totalorder (!%p344_p3), %s1056_s26, 0 }
   0x7   : > { %347 = sbr.rel (%p344_p3) target bundleno = 759 (0x2f7), region = 44 }
   0xe   : > { %s1223_s26 = smov (!%p410_p4, %s1056_s26), 1  ;;  %464 = sbr.rel (!%p459_p5) target bundleno = 21 (0x15), region = 48 }
   0xf   : > { %s999_s29 = sshll.u32 %s1223_s26, 4  ;;  %s985_s30 = sshll.u32 %s1223_s26, 3  ;;  %vm465_vm0 = vcmask (%p459_p5), 7168   ;;  %v1066_v0 = vmov (%p459_p5), 0.0  }
  0x10   : > { %s417_s11 = scalar_lea.vmem %s1209_s0, %s999_s29  ;;  %s438_s14 = scalar_lea.vmem %s1211_s2, %s985_s30  ;;  %466 = vst.msk [vmem:[%s1216_s7] sm:$0xff] (%p459_p5), %vm465_vm0, %v1066_v0  ;;  %467 = vst.msk [vmem:[%s1217_s8] sm:$0xff] (%p459_p5), %vm465_vm0, %v1066_v0 }
  0x11   : > { %s1144_s17 = scalar_lea.vmem %s1215_s6, %s985_s30 }
  0x15 PF: > { %v487_v1 = vld [vmem:[%s438_s14] sm:$0xff]  ;;  %s1067_s22 = smov 1   ;;  %v1068_v2 = vmov 0.0   ;;  %v1069_v4 = vmov 0   ;;  %s1070_s25 = smov 120   ;;  %v469_v7 = vld [vmem:[%s1213_s4 + $0x8] sm:$0xff]  ;;  %v731_v47 = vlaneseq }
  0x16   : > { %495 = vrot.lane.b32.xlu1 %v487_v1, %s1067_s22  ;;  %574 = vmatprep.mubr.f32.mxu1 %v1068_v2  ;;  %v468_v3 = vld [vmem:[%s1213_s4] sm:$0xff]  ;;  %vm485_vm1 = vcmask 7168   ;;  %vm505_vm2 = vcmask 64512   ;;  %s1071_s9 = smov 127   ;;  %vm694_vm7 = vcmask 1039360   ;;  %vm738_vm9 = vcmask 1043456  }
  0x17   : > { %654 = vmatprep.mubr.f32.mxu0 %v1068_v2  ;;  %1040 = vset.pattern.permute.xlu1 %v1069_v4  ;;  %v470_v5 = vld [vmem:[%s417_s11] sm:$0xff]  ;;  %v732_v48 = vand.u32 127, %v731_v47  ;;  %vm743_vm10 = vcmask 3072  }
  0x18   : > { %1036 = vrot.lane.b32.xlu0 %v1068_v2, %s1067_s22  ;;  %v666_v6 = vld [vmem:[%s1214_s5] sm:$0xf] }
  0x19   : > { %1041 = vset.pattern.permute.xlu0 %v1069_v4  ;;  %vm735_vm8 = vcmp.lt.s32.totalorder %v732_v48, 9  ;;  %v737_v63 = vld [vmem:[%s1216_s7] sm:$0xf] }
  0x1a   : > { %501 = vrot.lane.b32.xlu1 %v468_v3, %s1070_s25  ;;  %v745_v1 = vld [vmem:[%s1217_s8] sm:$0xf] }
  0x1c   : > { %482 = vrot.lane.b32.xlu0 %v470_v5, %s1067_s22  ;;  %v824_v5 = vld [vmem:[%s1216_s7 + $0x4] sm:$0xf] }
  0x1e   : > { %675 = vperm.xlu1 %1040, %v666_v6   ;;  %v832_v6 = vld [vmem:[%s1217_s8 + $0x4] sm:$0xf] }
  0x20   : > { %503 = vrot.lane.b32.xlu0 %v469_v7, %s1070_s25 }
  0x88   : > { %v496_v8 = vpop.permute.xlu1 %495 }
  0x89   : > { %510 = vmatprep.subr.mxu1 %v496_v8 }
  0x8a   : > { %v1037_v9 = vpop.permute.xlu0 %1036 }
  0x8b   : > { %v1039_v10 = vunpack.i.h.bf16 %v1037_v9  ;;  %v1038_v12 = vunpack.i.l.bf16 %v1037_v9 }
  0x8c   : > { %v502_v11 = vpop.permute.xlu1 %501 }
  0x8d   : > { %v498_v13 = vsel %vm485_vm1, %v1039_v10, %v496_v8 }
  0x8e   : > { %511 = vmatpush1.msra.mxu1 %v498_v13  ;;  %v483_v14 = vpop.permute.xlu0 %482 }
  0x8f   : > { %590 = vmatprep.subr.mxu0 %v483_v14  ;;  %989 = vmatmul.mubr.msk.f32.vlgmr.msra.gmra.mrb[0].mxu1 %vm505_vm2, %v502_v11  ;;  %v486_v15 = vsel %vm485_vm1, %v1038_v12, %v483_v14 }
  0x90   : > { %591 = vmatpush1.msra.mxu0 %v486_v15  ;;  %580 = vmatprep.mubr.f32.mxu1 %v1068_v2 }
  0x91   : > { %991 = vmatmul.mubr.msk.f32.vlgmr.msra.gmra.mrb[0].mxu0 %vm505_vm2, %v468_v3 }
  0x92   : > { %v504_v16 = vpop.permute.xlu0 %503  ;;  %660 = vmatprep.mubr.f32.mxu0 %v1068_v2 }
  0x93   : > { %990 = vmatmul.mubr.msk.f32.gmra.mrb[2].mxu1 %vm505_vm2, %v504_v16 }
  0x95   : > { %992 = vmatmul.mubr.msk.f32.gmra.mrb[2].mxu0 %vm505_vm2, %v469_v7 }
  0x9d   : > { %v676_v28 = vpop.permute.xlu1 %675 }
  0x9e   : > { %v752_v29 = vrot.slane %v676_v28, 4 }
 0x162   : > { %v576_v17 = vpop.f32.mrb[0].mxu1 }
 0x163   : > { %v578_v18 = vpop.f32.mrb[1].mxu1 }
 0x164   : > { %v656_v19 = vpop.f32.mrb[0].mxu0 }
 0x165   : > { %v657_v20 = vadd.f32 %v656_v19, %v576_v17  ;;  %v658_v21 = vpop.f32.mrb[1].mxu0 }
 0x166   : > { %v659_v22 = vadd.f32 %v658_v21, %v578_v18  ;;  %v582_v23 = vpop.f32.mrb[2].mxu1 }
 0x167   : > { %v584_v24 = vpop.f32.mrb[3].mxu1 }
 0x168   : > { %v662_v25 = vpop.f32.mrb[2].mxu0 }
 0x169   : > { %v663_v26 = vadd.f32 %v662_v25, %v582_v23  ;;  %v664_v27 = vpop.f32.mrb[3].mxu0 }
 0x16b   : > { %668 = vrot.lane.b32.xlu0 %v663_v26, %s1067_s22 }
 0x1dd   : > { %v669_v30 = vpop.permute.xlu0 %668 }
 0x1de   : > { %v671_v31 = vadd.f32 %v669_v30, %v657_v20  ;;  %v672_v32 = vadd.f32 %v669_v30, %v659_v22 }
 0x1e0   : > { %v678_v33 = vadd.f32 %v676_v28, %v671_v31  ;;  %v679_v34 = vadd.f32 %v676_v28, %v672_v32  ;;  %v754_v35 = vadd.f32 %v752_v29, %v671_v31  ;;  %v755_v36 = vadd.f32 %v752_v29, %v672_v32 }
 0x1e2   : > { %v995_v37 = vclamps-f32 %v754_v35, 3.4028235e+38  ;;  %v996_v38 = vclamps-f32 %v755_v36, 3.4028235e+38  ;;  %v994_v39 = vclamps-f32 %v679_v34, 3.4028235e+38 }
 0x1e3   : > { %v993_v40 = vclamps-f32 %v678_v33, 3.4028235e+38 }
 0x1e4   : > { %vm685_vm3 = vcmp.ne.f32.partialorder %v994_v39, %v994_v39  ;;  %vm761_vm4 = vcmp.ne.f32.partialorder %v996_v38, %v996_v38  ;;  %vm760_vm5 = vcmp.ne.f32.partialorder %v995_v37, %v995_v37 }
 0x1e5   : > { %v687_v41 = vsel %vm685_vm3, 0.0, %v994_v39  ;;  %vm684_vm6 = vcmp.ne.f32.partialorder %v993_v40, %v993_v40  ;;  %v763_v42 = vsel %vm761_vm4, 0.0, %v996_v38  ;;  %v762_v44 = vsel %vm760_vm5, 0.0, %v995_v37 }
 0x1e6   : > { %692 = vrot.lane.b32.xlu0 %v687_v41, %s1071_s9  ;;  %v686_v43 = vsel %vm684_vm6, 0.0, %v993_v40  ;;  %v816_v45 = vrot.slane %v763_v42, 4  ;;  %v815_v46 = vrot.slane %v762_v44, 4 }
 0x1e7   : > { %690 = vrot.lane.b32.xlu1 %v686_v43, %s1071_s9 }
 0x1ea   : > { %819 = vrot.lane.b32.xlu0 %v816_v45, %s1071_s9 }
 0x1eb   : > { %817 = vrot.lane.b32.xlu1 %v815_v46, %s1071_s9 }
 0x258   : > { %v693_v49 = vpop.permute.xlu0 %692 }
 0x259   : > { %v691_v50 = vpop.permute.xlu1 %690 }
 0x25a   : > { %v695_v51 = vsel %vm694_vm7, %v691_v50, %v693_v49 }
 0x25b   : > { %697 = vst [vmem:[%s1144_s17] sm:$0xf] %v695_v51  ;;  %v736_v52 = vsel %vm735_vm8, %v695_v51, 0.0 }
 0x25c   : > { %v820_v53 = vpop.permute.xlu0 %819  ;;  %v739_v54 = vsel %vm738_vm9, %v736_v52, 0.0  ;;  %v746_v55 = vmul.f32 %v736_v52, %v736_v52 }
 0x25d   : > { %740 = vadd.xlane.f32.xlu1 %v739_v54  ;;  %v818_v56 = vpop.permute.xlu1 %817 }
 0x25e   : > { %v821_v57 = vsel %vm694_vm7, %v818_v56, %v820_v53  ;;  %v747_v58 = vsel %vm738_vm9, %v746_v55, 0.0 }
 0x25f   : > { %v823_v59 = vsel %vm735_vm8, %v821_v57, 0.0  ;;  %748 = vadd.xlane.f32.xlu0 %v747_v58 }
 0x260   : > { %v833_v60 = vmul.f32 %v823_v59, %v823_v59  ;;  %v826_v62 = vsel %vm738_vm9, %v823_v59, 0.0 }
 0x262   : > { %v834_v61 = vsel %vm738_vm9, %v833_v60, 0.0 }
 0x263   : > { %835 = vadd.xlane.f32.xlu1 %v834_v61  ;;  %827 = vadd.xlane.f32.xlu0 %v826_v62 }
 0x274   : > { %768 = vrot.lane.b32.xlu1 %v763_v42, %s1071_s9 }
 0x279   : > { %766 = vrot.lane.b32.xlu0 %v762_v44, %s1071_s9 }
 0x2ea   : > { %v741_v0 = vpop.xlane.xlu1 %740 }
 0x2eb   : > { %v742_v2 = vadd.f32 %v741_v0, %v737_v63 }
 0x2ec   : > { %v749_v3 = vpop.xlane.xlu0 %748 }
 0x2ed   : > { %744 = vst.msk [vmem:[%s1216_s7] sm:$0xf] %vm743_vm10, %v742_v2  ;;  %v750_v4 = vadd.f32 %v749_v3, %v745_v1 }
 0x2ef   : > { %751 = vst.msk [vmem:[%s1217_s8] sm:$0xf] %vm743_vm10, %v750_v4 }
 0x2f0   : > { %v828_v7 = vpop.xlane.xlu0 %827  ;;  %v836_v8 = vpop.xlane.xlu1 %835 }
 0x2f1   : > { %v829_v9 = vadd.f32 %v828_v7, %v824_v5  ;;  %v837_v10 = vadd.f32 %v836_v8, %v832_v6 }
 0x2f3   : > { %831 = vst.msk [vmem:[%s1216_s7 + $0x4] sm:$0xf] %vm743_vm10, %v829_v9  ;;  %838 = vst.msk [vmem:[%s1217_s8 + $0x4] sm:$0xf] %vm743_vm10, %v837_v10 }
 0x2f4   : > { %v767_v11 = vpop.permute.xlu0 %766  ;;  %v769_v12 = vpop.permute.xlu1 %768 }
 0x2f5   : > { %v770_v13 = vsel %vm694_vm7, %v767_v11, %v769_v12 }
 0x2f6   : > { %772 = vst [vmem:[%s1144_s17] sm:$0xf0] %v770_v13 }
 0x2f7 PF: > { %s19_s3 = sadd.s32 1, %s1064_s3   ;;  %s1218_s26 = smov %s1060_s27 }
 0x2f8   : > { %p16_p6 = scmp.ge.s32.totalorder %s19_s3, 4   ;;  %s1219_s27 = smov %s1221_s28 }
 0x2fa   :  { %18 = sbr.rel (!%p16_p6) target bundleno = 2 (0x2), region = 119 }

// kernel: basic_unet_forward.26
= control target key start
LH: loop header
LB: loop body
LE: loop exit
PB: predicated region body
PF: predicated region fallthrough
CT: control target
= control target key end

     0   :  { %s591_s18 = smov 0   ;;  %s593_s19 = smov 0   ;;  %s654_s0 = inlined_call_operand.vmem [shape: f32[2,4,256], index: 0, kind: input, shape index: {}]   ;;  %s655_s1 = inlined_call_operand.vmem [shape: f32[4,4], index: 1, kind: input, shape index: {}]   ;;  %s656_s2 = inlined_call_operand.vmem [shape: f32[4,1], index: 2, kind: input, shape index: {}]   ;;  %s657_s3 = inlined_call_operand.vmem [shape: f32[2,4,128], index: 3, kind: output, shape index: {0}]   ;;  %s658_s4 = inlined_call_operand.vmem [shape: f32[4,1], index: 4, kind: output, shape index: {1}]   ;;  %s659_s5 = inlined_call_operand.vmem [shape: f32[4,1], index: 5, kind: output, shape index: {2}]  }
   0x1   :  { %s595_s20 = smov 0  }
   0x2 LB: > { %s28_s21 = sadd.s32 1, %s551_s19  ;;  %p485_p0 = scmp.ge.s32.totalorder %s555_s20, 1  ;;  %s555_s20 = sphi %s595_s20, %s16_s20   ;;  %s551_s19 = sphi %s593_s19, %s661_s19   ;;  %s547_s18 = sphi %s591_s18, %s660_s18  }
   0x3   : > { %p30_p1 = scmp.ge.s32.totalorder %s28_s21, 2  ;;  %p201_p2 = scmp.lt.s32.totalorder %s555_s20, 3 }
   0x5   : > { %s663_s21 = smov (%p30_p1, %s28_s21), 0  ;;  %p202_p3 = pnand %p485_p0, %p201_p2 }
   0x6   : > { %p234_p4 = scmp.lt.s32.totalorder (!%p202_p3), %s547_s18, 1  ;;  %p249_p5 = scmp.eq.s32.totalorder (!%p202_p3), %s547_s18, 0 }
   0x7   : > { %205 = sbr.rel (%p202_p3) target bundleno = 391 (0x187), region = 32 }
   0xe   : > { %s665_s18 = smov (!%p234_p4, %s547_s18), 1  ;;  %254 = sbr.rel (!%p249_p5) target bundleno = 21 (0x15), region = 36 }
   0xf   : > { %s495_s22 = sshll.u32 %s665_s18, 3  ;;  %s488_s23 = sshll.u32 %s665_s18, 2  ;;  %vm255_vm0 = vcmask (%p249_p5), 3072   ;;  %v557_v0 = vmov (%p249_p5), 0.0  }
  0x10   : > { %s241_s26 = scalar_lea.vmem %s654_s0, %s495_s22  ;;  %s615_s29 = scalar_lea.vmem %s657_s3, %s488_s23  ;;  %256 = vst.msk [vmem:[%s658_s4] sm:$0xf] (%p249_p5), %vm255_vm0, %v557_v0  ;;  %257 = vst.msk [vmem:[%s659_s5] sm:$0xf] (%p249_p5), %vm255_vm0, %v557_v0 }
  0x15 PF: > { %v258_v1 = vld [vmem:[%s241_s26] sm:$0xf]  ;;  %vm270_vm1 = vcmask 1043456   ;;  %vm266_vm2 = vcmask 31744   ;;  %v558_v2 = vmov 0.0   ;;  %vm559_vm3 = vmmov 0  }
  0x16   : > { %499 = vmatprep.subr.mxu0 %v558_v2  ;;  %501 = vmatprep.mubr.msk.f32.mxu0 %vm559_vm3, %v558_v2  ;;  %v259_v3 = vld [vmem:[%s655_s1] sm:$0xf]  ;;  %v560_v5 = vmov 0   ;;  %v372_v6 = vlaneseq  ;;  %vm383_vm6 = vcmask 3072  }
  0x17   : > { %v260_v4 = vld [vmem:[%s656_s2] sm:$0xf]  ;;  %500 = vmatpush3.msk.msra.mxu0 %vm270_vm1, %v258_v1  ;;  %532 = vset.pattern.permute.xlu0 %v560_v5 }
  0x18   : > { %502 = vmatmul.mubr.msk.f32.vlgmr.msra.gmra.mrb[0].mxu0 %vm266_vm2, %v259_v3  ;;  %263 = vperm.xlu0 %532, %v260_v4   ;;  %v373_v9 = vand.u32 127, %v372_v6  ;;  %v378_v18 = vld [vmem:[%s658_s4] sm:$0xf] }
  0x19   : > { %v385_v20 = vld [vmem:[%s659_s5] sm:$0xf] }
  0x1a   : > { %vm376_vm4 = vcmp.lt.s32.totalorder %v373_v9, 18 }
  0x97   : > { %v264_v7 = vpop.permute.xlu0 %263 }
  0xeb   : > { %v340_v8 = vpop.f32.mrb[0].mxu0 }
  0xec   : > { %v341_v10 = vadd.f32 %v340_v8, %v264_v7  ;;  %v503_v11 = vpop.f32.mrb[1].mxu0 }
  0xee   : > { %v492_v12 = vclamps-f32 %v341_v10, 3.4028235e+38 }
  0xf0   : > { %vm346_vm5 = vcmp.ne.f32.partialorder %v492_v12, %v492_v12 }
  0xf1   : > { %v347_v13 = vsel %vm346_vm5, 0.0, %v492_v12 }
  0xf2   : > { %v377_v14 = vsel %vm376_vm4, %v347_v13, 0.0  ;;  %348 = vst [vmem:[%s615_s29] sm:$0xf] %v347_v13 }
  0xf3   : > { %v379_v15 = vsel %vm270_vm1, %v377_v14, 0.0  ;;  %v386_v16 = vmul.f32 %v377_v14, %v377_v14 }
  0xf4   : > { %380 = vadd.xlane.f32.xlu0 %v379_v15 }
  0xf5   : > { %v387_v17 = vsel %vm270_vm1, %v386_v16, 0.0 }
  0xf6   : > { %388 = vadd.xlane.f32.xlu1 %v387_v17 }
 0x181   : > { %v381_v19 = vpop.xlane.xlu0 %380 }
 0x182   : > { %v382_v21 = vadd.f32 %v381_v19, %v378_v18 }
 0x183   : > { %v389_v22 = vpop.xlane.xlu1 %388 }
 0x184   : > { %384 = vst.msk [vmem:[%s658_s4] sm:$0xf] %vm383_vm6, %v382_v21  ;;  %v390_v23 = vadd.f32 %v389_v22, %v385_v20 }
 0x186   : > { %391 = vst.msk [vmem:[%s659_s5] sm:$0xf] %vm383_vm6, %v390_v23 }
 0x187 PF: > { %s16_s20 = sadd.s32 1, %s555_s20   ;;  %s660_s18 = smov %s551_s19 }
 0x188   : > { %p13_p6 = scmp.ge.s32.totalorder %s16_s20, 4   ;;  %s661_s19 = smov %s663_s21 }
 0x18a   :  { %15 = sbr.rel (!%p13_p6) target bundleno = 2 (0x2), region = 90 }

// kernel: basic_unet_forward.27
= control target key start
LH: loop header
LB: loop body
LE: loop exit
PB: predicated region body
PF: predicated region fallthrough
CT: control target
= control target key end

     0   :  { %10 = vsyncpa [#allocation3], 0  ;;  %s694_s0 = inlined_call_operand.vmem [shape: f32[2,4,128], index: 0, kind: input, shape index: {}]   ;;  %s695_s1 = inlined_call_operand.vmem [shape: f32[4,1], index: 1, kind: input, shape index: {}]   ;;  %s696_s2 = inlined_call_operand.vmem [shape: f32[4,1], index: 2, kind: input, shape index: {}]   ;;  %s697_s3 = inlined_call_operand.vmem [shape: f32[4,1], index: 3, kind: input, shape index: {}]   ;;  %s698_s4 = inlined_call_operand.vmem [shape: f32[4,1], index: 4, kind: input, shape index: {}]   ;;  %s699_s5 = inlined_call_operand.hbm [shape: f32[2,4,128], index: 5, kind: output, shape index: {}]  }
   0x1   :  { %12 = vsyncpa [#allocation3 + $0x1], 0  ;;  %s570_s18 = smov 0   ;;  %s572_s19 = smov 0  }
   0x2   :  { %s574_s20 = smov 0   ;;  %s576_s21 = smov 0  }
   0x3   :  { %s578_s22 = smov 0   ;;  %s580_s23 = smov 0  }
   0x4 LB: > { %s384_s24 = sadd.s32 4294967295, %s536_s23   ;;  %s385_s25 = sadd.s32 4294967294, %s536_s23   ;;  %s536_s23 = sphi %s580_s23, %s18_s23   ;;  %s532_s22 = sphi %s578_s22, %s706_s22   ;;  %s528_s21 = sphi %s576_s21, %s705_s21   ;;  %s524_s20 = sphi %s574_s20, %s704_s20   ;;  %s520_s19 = sphi %s572_s19, %s703_s19   ;;  %s516_s18 = sphi %s570_s18, %s702_s18  }
   0x5   : > { %s30_s26 = sadd.s32 1, %s532_s22  ;;  %s151_s27 = sadd.s32 1, %s524_s20 }
   0x6   : > { %p32_p0 = scmp.ge.s32.totalorder %s30_s26, 2  ;;  %p161_p1 = scmp.ne.s32.totalorder %s524_s20, %s520_s19 }
   0x7   : > { %p162_p2 = scmp.eq.s32.totalorder %s384_s24, 1  ;;  %p167_p3 = scmp.ne.s32.totalorder %s520_s19, %s516_s18 }
   0x8   : > { %s708_s26 = smov (%p32_p0, %s30_s26), 0  ;;  %p168_p5 = scmp.eq.s32.totalorder %s385_s25, 1 }
   0x9   : > { %p610_p4 = por %p162_p2, %p161_p1  ;;  %s146_s29 = ssub.s32 %s532_s22, %s708_s26 }
   0xa   : > { %p388_p6 = scmp.ge.s32.totalorder %s536_s23, 1  ;;  %p149_p7 = scmp.eq.s32.totalorder %s146_s29, 0 }
   0xb   : > { %p617_p8 = por %p168_p5, %p167_p3  ;;  %p208_p9 = scmp.lt.s32.totalorder %s536_s23, 3 }
   0xc   : > { %s623_s6 = scalar_select %p149_p7, %s524_s20, %s151_s27  }
   0xd   : > { %p209_p10 = pnand %p388_p6, %p208_p9 }
   0xe   : > { %v246_v0 = vld [vmem:[%s695_s1] sm:$0xf] (!%p209_p10)  ;;  %v538_v2 = vmov (!%p209_p10), 0   ;;  %p238_p11 = scmp.lt.s32.totalorder (!%p209_p10), %s528_s21, 1  ;;  %s235_s27 = sand.u32 (!%p209_p10), 1, %s520_s19   ;;  %v291_v22 = vlaneseq (!%p209_p10) }
   0xf   : > { %212 = sbr.rel (%p209_p10) target bundleno = 200 (0xc8), region = 40  ;;  %v248_v1 = vld [vmem:[%s696_s2] sm:$0xf] (!%p209_p10)  ;;  %452 = vset.pattern.permute.xlu0 (!%p209_p10), %v538_v2  ;;  %v247_v3 = vmul.f32 (!%p209_p10), 0.027777778, %v246_v0  ;;  %453 = vset.pattern.permute.xlu1 (!%p209_p10), %v538_v2  ;;  %s389_s29 = sshll.u32 (!%p209_p10), %s235_s27, 2 }
  0x10   : > { %v249_v4 = vmul.f32 (!%p209_p10), 0.027777778, %v248_v1  ;;  %v269_v5 = vld [vmem:[%s698_s4] sm:$0xf] (!%p209_p10)  ;;  %v292_v23 = vand.u32 (!%p209_p10), 127, %v291_v22  ;;  %s393_s7 = sshll.u32 (!%p209_p10), %s528_s21, 6 }
  0x11   : > { %259 = vperm.xlu0 (!%p209_p10), %452, %v247_v3   ;;  %v250_v6 = vmul.f32 (!%p209_p10), %v247_v3, %v247_v3  ;;  %272 = vperm.xlu1 (!%p209_p10), %453, %v269_v5   ;;  %v253_v10 = vld [vmem:[%s697_s3] sm:$0xf] (!%p209_p10)  ;;  %s237_s8 = scalar_lea.vmem (!%p209_p10), [#allocation2], %s389_s29  ;;  %s647_s12 = scalar_lea.hbm (!%p209_p10), %s699_s5, %s393_s7 }
  0x12   : > { %s313_s9 = sshll.u32 (!%p209_p10), %s237_s8, 4  ;;  %vm295_vm1 = vcmp.lt.s32.totalorder (!%p209_p10), %v292_v23, 18  ;;  %s299_s13 = scalar_lea.sflag (!%p209_p10), [#allocation3], %s235_s27  ;;  %s649_s9 = int_to_ptr.vmem [resolvable:$true] %s313_s9 }
  0x13   : > { %v251_v7 = vsub.f32 (!%p209_p10), %v249_v4, %v250_v6  ;;  %s458_s14 = scalar_lea.vmem (!%p209_p10), %s649_s9, 64 }
  0x14   : > { %p459_p12 = scmp.ne.s32.totalorder (!%p209_p10), %s649_s9, %s458_s14 }
  0x15   : > { %v252_v8 = vmax.f32 (!%p209_p10), %v251_v7, 0.0 }
  0x16   : > { %s239_s15 = scalar_select %p238_p11, %s528_s21, 1 }
  0x17   : > { %v254_v9 = vadd.f32 1e-05, %v252_v8  ;;  %p460_p13 = pnand %p459_p12, %p610_p4  ;;  %s539_s21 = smov [#allocation2]  }
  0x18   : > { %s390_s16 = sshll.u32 %s239_s15, 2  ;;  %s462_s15 = sshll.u32 %s539_s21, 4  ;;  %s463_s15 = int_to_ptr.vmem [resolvable:$false] %s462_s15 }
  0x19   : > { %454 = vrsqrt.f32 %v254_v9  ;;  %s244_s25 = scalar_lea.vmem %s694_s0, %s390_s16  ;;  %p461_p0 = pneg %p460_p13 }
  0x1a   : > { %v245_v14 = vld [vmem:[%s244_s25] sm:$0xf]  ;;  %s464_s16 = scalar_lea.vmem %s463_s15, 128  ;;  %p465_p1 = scmp.lt.s32.totalorder %s649_s9, %s463_s15 }
  0x1b   : > { %p466_p2 = scmp.lt.s32.totalorder %s464_s16, %s458_s14 }
  0x1d   : > { %p467_p3 = por %p466_p2, %p465_p1 }
  0x1f   : > { %p468_p5 = pnand %p467_p3, %p461_p0 }
  0x23   : > { %v455_v11 = vpop.eup %454 }
  0x24   : > { %v256_v12 = vmul.f32 %v455_v11, %v253_v10 }
  0x26   : > { %265 = vperm.xlu0 %452, %v256_v12  }
  0x90   : > { %v260_v13 = vpop.permute.xlu0 %259  ;;  %v273_v17 = vpop.permute.xlu1 %272 }
  0x91   : > { %v262_v15 = vsub.f32 %v245_v14, %v260_v13 }
  0xa5   : > { %v266_v16 = vpop.permute.xlu0 %265 }
  0xa6   : > { %v268_v18 = vmul.f32 %v266_v16, %v262_v15 }
  0xa8   : > { %v275_v19 = vadd.f32 %v273_v17, %v268_v18 }
  0xaa   : > { %v391_v20 = vclamps-f32 %v275_v19, 3.4028235e+38 }
  0xac   : > { %vm278_vm0 = vcmp.ne.f32.partialorder %v391_v20, %v391_v20 }
  0xad   : > { %v279_v21 = vsel %vm278_vm0, 0.0, %v391_v20 }
  0xae   : > { %456 = vtanh.f32 %v279_v21 }
  0xb8   : > { %v457_v24 = vpop.eup %456 }
  0xb9   : > { %v296_v25 = vsel %vm295_vm1, %v457_v24, 0.0 }
  0xba   : > { %297 = vst [vmem:[%s237_s8] sm:$0xf] %v296_v25 }
  0xbb   : > { %471 = shalt.err (!%p468_p5)
}
  0xbc   : > { %s472_s17 = scalar_lea.hbm %s647_s12, 64  ;;  %s476_s27 = scalar_lea.hbm %s699_s5, 128 }
  0xbd   : > { %p473_p6 = scmp.ne.s32.totalorder %s647_s12, %s472_s17  ;;  %p477_p10 = scmp.lt.u32.totalorder %s647_s12, %s699_s5 }
  0xbe   : > { %p478_p11 = scmp.lt.u32.totalorder %s476_s27, %s472_s17  ;;  %p480_p13 = scmp.lt.u32.totalorder %s472_s17, %s647_s12 }
  0xbf   : > { %p474_p7 = pnand %p473_p6, %p610_p4 }
  0xc0   : > { %p479_p12 = por %p478_p11, %p477_p10 }
  0xc1   : > { %p475_p9 = pneg %p474_p7 }
  0xc2   : > { %p481_p0 = por %p480_p13, %p479_p12 }
  0xc4   : > { %p482_p1 = pnand %p481_p0, %p475_p9 }
  0xc6   : > { %485 = shalt.err (!%p482_p1)
}
  0xc7   : > { %396 = dma.vmem_to_hbm [thread:$0]  (%p610_p4), %s649_s9, 64, %s647_s12, %s299_s13  }
  0xc8 PF: > { %p402_p2 = scmp.ge.s32.totalorder %s536_s23, 2  ;;  %s325_s8 = sand.u32 1, %s516_s18  }
  0xc9   : > { %s326_s10 = scalar_lea.sflag [#allocation3], %s325_s8 }
  0xca   : > { %p399_p3 = pnand %p402_p2, %p617_p8 }
  0xcc   : > { %511 = dma.done.wait (!%p399_p3), %s326_s10, 64  }
  0xcd   : > { %513 = vsyncadd (!%p399_p3), %s326_s10, 4294967232  ;;  %s18_s23 = sadd.s32 1, %s536_s23   ;;  %s702_s18 = smov %s520_s19 }
  0xce   : > { %p15_p5 = scmp.ge.s32.totalorder %s18_s23, 4   ;;  %s703_s19 = smov %s524_s20 }
  0xcf   : > { %s704_s20 = smov %s623_s6  ;;  %s705_s21 = smov %s532_s22 }
  0xd0   : > { %s706_s22 = smov %s708_s26  ;;  %17 = sbr.rel (!%p15_p5) target bundleno = 4 (0x4), region = 83 }
  0xd7   :  { %331 = vsyncpa [#allocation3], 1 }
  0xd8   :  { %333 = vsyncpa [#allocation3 + $0x1], 1 }

// kernel: basic_unet_forward.25
= control target key start
LH: loop header
LB: loop body
LE: loop exit
PB: predicated region body
PF: predicated region fallthrough
CT: control target
= control target key end

     0   :  { %s540_s18 = smov 0   ;;  %s542_s19 = smov 0   ;;  %s589_s0 = inlined_call_operand.vmem [shape: f32[2,4,256], index: 0, kind: input, shape index: {}]   ;;  %s590_s1 = inlined_call_operand.vmem [shape: f32[4,1], index: 1, kind: input, shape index: {}]   ;;  %s591_s2 = inlined_call_operand.vmem [shape: f32[4,1], index: 2, kind: input, shape index: {}]   ;;  %s592_s3 = inlined_call_operand.vmem [shape: f32[4,1], index: 3, kind: input, shape index: {}]   ;;  %s593_s4 = inlined_call_operand.vmem [shape: f32[4,1], index: 4, kind: input, shape index: {}]   ;;  %s594_s5 = inlined_call_operand.vmem [shape: f32[2,4,256], index: 5, kind: output, shape index: {}]  }
   0x1   :  { %s544_s20 = smov 0  }
   0x2 LB: > { %s27_s21 = sadd.s32 1, %s501_s19  ;;  %p442_p0 = scmp.ge.s32.totalorder %s505_s20, 1  ;;  %s505_s20 = sphi %s544_s20, %s15_s20   ;;  %s501_s19 = sphi %s542_s19, %s596_s19   ;;  %s497_s18 = sphi %s540_s18, %s595_s18  }
   0x3   : > { %p29_p1 = scmp.ge.s32.totalorder %s27_s21, 2  ;;  %p208_p2 = scmp.lt.s32.totalorder %s505_s20, 3 }
   0x5   : > { %s598_s21 = smov (%p29_p1, %s27_s21), 0  ;;  %p209_p3 = pnand %p442_p0, %p208_p2 }
   0x6   : > { %v265_v0 = vld [vmem:[%s590_s1] sm:$0xf] (!%p209_p3)  ;;  %v507_v2 = vmov (!%p209_p3), 0   ;;  %p245_p4 = scmp.lt.s32.totalorder (!%p209_p3), %s497_s18, 1  ;;  %v508_v13 = vmov (!%p209_p3), 839922192   ;;  %v283_v15 = vlaneseq (!%p209_p3) }
   0x7   : > { %212 = sbr.rel (%p209_p3) target bundleno = 175 (0xaf), region = 40  ;;  %v267_v1 = vld [vmem:[%s591_s2] sm:$0xf] (!%p209_p3)  ;;  %479 = vset.pattern.permute.xlu0 (!%p209_p3), %v507_v2  ;;  %v266_v3 = vmul.f32 (!%p209_p3), 0.027777778, %v265_v0  ;;  %480 = vset.pattern.permute.xlu1 (!%p209_p3), %v507_v2  ;;  %v281_v14 = vunpack.c.l.s4 (!%p209_p3), %v508_v13  ;;  %v509_v35 = vmov (!%p209_p3), 0.0  }
   0x8   : > { %v268_v4 = vmul.f32 (!%p209_p3), 0.027777778, %v267_v1  ;;  %v302_v5 = vld [vmem:[%s593_s4] sm:$0xf] (!%p209_p3)  ;;  %v284_v17 = vshrl.u32 (!%p209_p3), %v283_v15, 7  ;;  %v334_v29 = vand.u32 (!%p209_p3), 127, %v283_v15 }
   0x9   : > { %278 = vperm.xlu0 (!%p209_p3), %479, %v266_v3   ;;  %v269_v6 = vmul.f32 (!%p209_p3), %v266_v3, %v266_v3  ;;  %305 = vperm.xlu1 (!%p209_p3), %480, %v302_v5   ;;  %v272_v10 = vld [vmem:[%s592_s3] sm:$0xf] (!%p209_p3)  ;;  %v282_v16 = vunpack.c.0.s8 (!%p209_p3), %v281_v14 }
   0xa   : > { %vm339_vm1 = vcmp.lt.s32.totalorder (!%p209_p3), %v334_v29, 18 }
   0xb   : > { %v270_v7 = vsub.f32 (!%p209_p3), %v268_v4, %v269_v6  ;;  %v285_v18 = vsub.s32 (!%p209_p3), %v282_v16, %v284_v17 }
   0xd   : > { %v271_v8 = vmax.f32 (!%p209_p3), %v270_v7, 0.0 }
   0xe   : > { %s600_s18 = smov (!%p245_p4, %s497_s18), 1 }
   0xf   : > { %v273_v9 = vadd.f32 1e-05, %v271_v8  ;;  %s450_s30 = sshll.u32 %s600_s18, 3 }
  0x10   : > { %s252_s8 = scalar_lea.vmem %s589_s0, %s450_s30  ;;  %s262_s11 = scalar_lea.vmem %s594_s5, %s450_s30 }
  0x11   : > { %481 = vrsqrt.f32 %v273_v9  ;;  %v264_v21 = vld [vmem:[%s252_s8] sm:$0xff] }
  0x1b   : > { %v482_v11 = vpop.eup %481 }
  0x1c   : > { %v275_v12 = vmul.f32 %v482_v11, %v272_v10 }
  0x1e   : > { %291 = vperm.xlu0 %479, %v275_v12  }
  0x88   : > { %v279_v19 = vpop.permute.xlu0 %278  ;;  %v306_v22 = vpop.permute.xlu1 %305 }
  0x89   : > { %v286_v20 = vrot.slane %v279_v19, %v285_v18  ;;  %v313_v26 = vrot.slane %v306_v22, %v285_v18 }
  0x8b   : > { %v288_v24 = vsub.f32 %v264_v21, %v286_v20 }
  0x9d   : > { %v292_v23 = vpop.permute.xlu0 %291 }
  0x9e   : > { %v299_v25 = vrot.slane %v292_v23, %v285_v18 }
  0xa0   : > { %v301_v27 = vmul.f32 %v299_v25, %v288_v24 }
  0xa2   : > { %v315_v28 = vadd.f32 %v313_v26, %v301_v27 }
  0xa4   : > { %v447_v30 = vclamps-f32 %v315_v28, 3.4028235e+38 }
  0xa6   : > { %vm318_vm0 = vcmp.ne.f32.partialorder %v447_v30, %v447_v30 }
  0xa7   : > { %v319_v31 = vsel %vm318_vm0, 0.0, %v447_v30 }
  0xa8   : > { %vm320_vm2 = vcmp.ge.f32.partialorder %v319_v31, 0.0  ;;  %v321_v32 = vmul.f32 0.01, %v319_v31 }
  0xaa   : > { %v322_v33 = vsel %vm320_vm2, %v319_v31, %v321_v32 }
  0xab   : > { %v344_v34 = vsel %vm339_vm1, %v322_v33, 0.0 }
  0xac   : > { %v348_v36 = vcombine.low %v344_v34, %v509_v35 }
  0xae   : > { %350 = vst [vmem:[%s262_s11] sm:$0xff] %v348_v36 }
  0xaf PF: > { %s15_s20 = sadd.s32 1, %s505_s20   ;;  %s595_s18 = smov %s501_s19 }
  0xb0   : > { %p12_p5 = scmp.ge.s32.totalorder %s15_s20, 4   ;;  %s596_s19 = smov %s598_s21 }
  0xb2   :  { %14 = sbr.rel (!%p12_p5) target bundleno = 2 (0x2), region = 78 }

</bundles_post_ra>
